<compile_context>
chip_gen: v5e
topology: v5e:2x2
jax: 0.10.0
libtpu: 0.0.40
codegen_flags: <defaults>
</compile_context>

<pallas_src>
import jax
import jax.numpy as jnp
from jax.experimental import pallas as pl
from jax.experimental.pallas import tpu as pltpu


def _round_up(x, m):
    return (x + m - 1) // m * m


def _pick_tile(total, unit, cap, prefer_split=False):
    """Largest multiple of `unit` dividing `total`, <= cap.  With prefer_split the
    cap is lowered so the axis gets >=2 tiles when possible (keeps both v7x
    TensorCores busy on mid-size layers)."""
    cap = max(unit, min(cap, total))
    if prefer_split and total >= 2 * unit:
        cap = min(cap, max(unit, (total // 2) // unit * unit))
    best = unit
    t = unit
    while t <= cap:
        if total % t == 0:
            best = t
        t += unit
    return best


_VMEM_LIMIT = 32 * 1024 * 1024  # explicit, safe on all generations incl. v7x


# ----------------------------------------------------------------------------
# Pallas kernel 1: [prev-layer BN + LeakyReLU prologue] -> conv GEMM (bf16 MXU,
# f32 result) -> fused per-tile BN partial statistics.  No K grid axis: the
# weight block is VMEM-resident (constant index_map).
# ----------------------------------------------------------------------------
def _make_conv_kernel(apply_act, mask_rows, tm, m_real):
    def kernel(a_ref, s_ref, t_ref, w_ref, o_ref, sum_ref, sq_ref):
        a = a_ref[...].astype(jnp.float32)          # f32 VPU math (v5e-safe)
        if apply_act:
            # previous layer's BatchNorm affine + LeakyReLU(0.2), per K column
            a = a * s_ref[...] + t_ref[...]
            a = jnp.where(a >= 0.0, a, 0.2 * a)
        if mask_rows:
            # zero the M-padding rows AFTER the prologue so they contribute
            # nothing to the GEMM output nor to the BN statistics.
            row = pl.program_id(0) * tm + jax.lax.broadcasted_iota(
                jnp.int32, a.shape, 0)
            a = jnp.where(row < m_real, a, 0.0)
        y = jnp.dot(a.astype(jnp.bfloat16), w_ref[...],
                    preferred_element_type=jnp.float32)
        o_ref[...] = y.astype(o_ref.dtype)
        # per-M-tile partial channel sums (row 0 of an 8-row block; rows 1..7 = 0)
        ps = jnp.sum(y, axis=0, keepdims=True)
        pq = jnp.sum(y * y, axis=0, keepdims=True)
        rows = jax.lax.broadcasted_iota(jnp.int32, sum_ref.shape, 0)
        sum_ref[...] = jnp.where(rows == 0, ps, 0.0)
        sq_ref[...] = jnp.where(rows == 0, pq, 0.0)
    return kernel


def conv_gemm_fused(A, s_cols, t_cols, Wm, *, apply_act, m_real):
    """A:[M,Kp] bf16 raw im2col patches, s/t:[1,Kp] f32 per-column BN scale/shift
    of the previous layer, Wm:[Kp,Np] bf16 (Kp,Np multiples of 128, no bias).
    Returns (y:[Mp,Np] bf16 raw conv output, ch_sum:[Np] f32, ch_sumsq:[Np] f32)."""
    M, Kp = A.shape
    Kw, Np = Wm.shape
    assert Kp == Kw and Kp % 128 == 0 and Np % 128 == 0
    Mp = _round_up(M, 16)                       # bf16 packs 16 sublanes / vreg
    if Mp != M:
        A = jnp.pad(A, ((0, Mp - M), (0, 0)))
    tm = _pick_tile(Mp, 16, 512, prefer_split=True)
    mt = Mp // tm
    mask_rows = apply_act and (Mp != M)
    kernel = _make_conv_kernel(apply_act, mask_rows, tm, m_real)
    y, sums, sqs = pl.pallas_call(
        kernel,
        out_shape=(
            jax.ShapeDtypeStruct((Mp, Np), jnp.bfloat16),
            jax.ShapeDtypeStruct((mt * 8, Np), jnp.float32),
            jax.ShapeDtypeStruct((mt * 8, Np), jnp.float32),
        ),
        grid=(mt,),
        in_specs=[
            pl.BlockSpec((tm, Kp), lambda i: (i, 0)),
            pl.BlockSpec((1, Kp), lambda i: (0, 0)),
            pl.BlockSpec((1, Kp), lambda i: (0, 0)),
            pl.BlockSpec((Kp, Np), lambda i: (0, 0)),   # weight: VMEM-resident
        ],
        out_specs=(
            pl.BlockSpec((tm, Np), lambda i: (i, 0)),
            pl.BlockSpec((8, Np), lambda i: (i, 0)),
            pl.BlockSpec((8, Np), lambda i: (i, 0)),
        ),
        compiler_params=pltpu.CompilerParams(
            dimension_semantics=("parallel",),
            vmem_limit_bytes=_VMEM_LIMIT),
    )(A, s_cols, t_cols, Wm)
    return y, jnp.sum(sums, axis=0), jnp.sum(sqs, axis=0)


# ----------------------------------------------------------------------------
# Pallas kernel 2: Linear head with the last conv's BN + LeakyReLU fused in as a
# prologue (GEMM + bias, f32 output).
# ----------------------------------------------------------------------------
def _linear_bn_kernel(x_ref, s_ref, t_ref, w_ref, b_ref, o_ref):
    a = x_ref[...].astype(jnp.float32) * s_ref[...] + t_ref[...]
    a = jnp.where(a >= 0.0, a, 0.2 * a)
    o_ref[...] = (jnp.dot(a.astype(jnp.bfloat16), w_ref[...],
                          preferred_element_type=jnp.float32) + b_ref[...])


def linear_bn(x, scale, shift, Wm, b):
    Mp, K = x.shape
    Kw, Np = Wm.shape
    assert K == Kw
    return pl.pallas_call(
        _linear_bn_kernel,
        out_shape=jax.ShapeDtypeStruct((Mp, Np), jnp.float32),
        grid=(1,),
        in_specs=[
            pl.BlockSpec((Mp, K), lambda i: (0, 0)),
            pl.BlockSpec((1, K), lambda i: (0, 0)),
            pl.BlockSpec((1, K), lambda i: (0, 0)),
            pl.BlockSpec((K, Np), lambda i: (0, 0)),
            pl.BlockSpec((1, Np), lambda i: (0, 0)),
        ],
        out_specs=pl.BlockSpec((Mp, Np), lambda i: (0, 0)),
        compiler_params=pltpu.CompilerParams(
            dimension_semantics=("arbitrary",),
            vmem_limit_bytes=_VMEM_LIMIT),
    )(x, scale.reshape(1, K).astype(jnp.float32),
      shift.reshape(1, K).astype(jnp.float32), Wm, b.reshape(1, Np))


# ----------------------------------------------------------------------------
# XLA glue: im2col on the REAL channel count, spatial padding with the value that
# maps to 0 under the fused prologue, single K pad to a multiple of 128, and the
# per-K-column scale/shift vectors.
# ----------------------------------------------------------------------------
def _build_conv_operand(x_raw, scale, shift, p):
    """x_raw: (N,H,W,C) raw conv output of the previous layer (real channels), or
    the network input when scale is None.  Returns (A bf16 [M,Kp], s_cols, t_cols
    f32 [1,Kp], OH, OW, M)."""
    N, H, W, C = x_raw.shape
    KH, KW = p["KH"], p["KW"]
    sh, sw = p["stride"]
    ph, pw = p["padding"]
    if scale is None:
        s_c = t_c = None
        xp = (jnp.pad(x_raw, ((0, 0), (ph, ph), (pw, pw), (0, 0)))
              if (ph or pw) else x_raw)
    else:
        s_c = scale[:C]
        t_c = shift[:C]
        if ph or pw:
            # pad the raw activation with -shift/scale so the in-kernel prologue
            # (a*s + t, leaky) maps border taps to exactly ~0, matching PyTorch's
            # zero-padding of the activated input (exact up to bf16 rounding).
            pv = (-t_c / jnp.where(s_c != 0, s_c, 1.0)).astype(x_raw.dtype)
            xp = jnp.broadcast_to(pv.reshape(1, 1, 1, C),
                                  (N, H + 2 * ph, W + 2 * pw, C))
            xp = xp.at[:, ph:ph + H, pw:pw + W, :].set(x_raw)
        else:
            xp = x_raw
    OH = (H + 2 * ph - KH) // sh + 1
    OW = (W + 2 * pw - KW) // sw + 1
    pats = []
    for kh in range(KH):
        for kw in range(KW):
            pats.append(xp[:, kh: kh + sh * (OH - 1) + 1: sh,
                              kw: kw + sw * (OW - 1) + 1: sw, :])
    K0 = KH * KW * C
    A = jnp.concatenate(pats, axis=-1).reshape(N * OH * OW, K0)
    Kp = _round_up(K0, 128)
    if Kp != K0:
        A = jnp.pad(A, ((0, 0), (0, Kp - K0)))
    if scale is None:
        s_cols = jnp.zeros((1, Kp), jnp.float32)
        t_cols = jnp.zeros((1, Kp), jnp.float32)
    else:
        s_cols = jnp.pad(jnp.tile(s_c, KH * KW), (0, Kp - K0)).reshape(1, Kp)
        t_cols = jnp.pad(jnp.tile(t_c, KH * KW), (0, Kp - K0)).reshape(1, Kp)
        s_cols = s_cols.astype(jnp.float32)
        t_cols = t_cols.astype(jnp.float32)
    return A.astype(jnp.bfloat16), s_cols, t_cols, OH, OW, N * OH * OW


# ----------------------------------------------------------------------------
# Parameter construction (deterministic, synthetic; weights pre-transposed to
# (KH*KW*cin padded-to-128, cout padded-to-128) and pre-cast to bf16)
# ----------------------------------------------------------------------------
def _prep_conv(key, cin, cout, k, stride, padding):
    kh, kw = (k, k) if isinstance(k, int) else k
    fan_in = cin * kh * kw
    w = jax.random.normal(key, (cout, cin, kh, kw), jnp.float32) / jnp.sqrt(float(fan_in))
    k0 = kh * kw * cin
    kp = _round_up(k0, 128)
    coutp = _round_up(cout, 128)
    wm = jnp.zeros((kp, coutp), jnp.float32)
    wm = wm.at[:k0, :cout].set(jnp.transpose(w, (2, 3, 1, 0)).reshape(k0, cout))
    wm = wm.astype(jnp.bfloat16)
    gamma = jnp.zeros((coutp,), jnp.float32).at[:cout].set(1.0)  # padded ch stay 0
    beta = jnp.zeros((coutp,), jnp.float32)
    return dict(wm=wm, gamma=gamma, beta=beta, KH=kh, KW=kw, cin=cin, cout=cout,
                stride=stride, padding=padding)


def _prep_linear(key, cin, cout):
    k1, k2 = jax.random.split(key)
    lim = 1.0 / jnp.sqrt(float(cin))
    w = jax.random.uniform(k1, (cout, cin), jnp.float32, -lim, lim)
    b = jax.random.uniform(k2, (cout,), jnp.float32, -lim, lim)
    cinp, coutp = _round_up(cin, 128), _round_up(cout, 128)
    wm = jnp.zeros((cinp, coutp), jnp.float32).at[:cin, :cout].set(w.T).astype(jnp.bfloat16)
    bp = jnp.zeros((coutp,), jnp.float32).at[:cout].set(b)
    return dict(wm=wm, b=bp, cout=cout)


def init_encoder_rad(key, n_out, dim1, dim2, dim3, dim4, dim5):
    specs = [
        ("convblock1",   1,    dim1, 3, (1, 1), (1, 1)),
        ("convblock2_1", dim1, dim1, 5, (2, 2), (2, 2)),
        ("convblock2_2", dim1, dim2, 3, (1, 1), (1, 1)),
        ("convblock4_1", dim2, dim2, 3, (2, 2), (1, 1)),
        ("convblock4_2", dim2, dim3, 3, (1, 1), (1, 1)),
        ("convblock5_1", dim3, dim3, 3, (2, 2), (1, 1)),
        ("convblock5_2", dim3, dim4, 3, (1, 1), (1, 1)),
        ("convblock6_1", dim4, dim4, 3, (2, 2), (1, 1)),
        ("convblock6_2", dim4, dim5, 3, (1, 1), (1, 1)),
        ("convblock7_1", dim5, dim5, 3, (2, 2), (1, 1)),
    ]
    params = {}
    for i, (name, cin, cout, k, s, p) in enumerate(specs):
        params[name] = _prep_conv(jax.random.fold_in(key, i), cin, cout, k, s, p)
    params["linear"] = _prep_linear(jax.random.fold_in(key, 100), dim5, n_out)
    return params


# ----------------------------------------------------------------------------
# Forward pass (mirrors EncoderRad.forward).  Conv bias is dropped (cancels under
# training-mode BatchNorm batch-mean); BN uses biased batch variance, eps=1e-5.
# ----------------------------------------------------------------------------
_CONV_SEQ = ["convblock1", "convblock2_1", "convblock2_2", "convblock4_1",
             "convblock4_2", "convblock5_1", "convblock5_2", "convblock6_1",
             "convblock6_2", "convblock7_1"]


def encoder_rad_forward(params, x_nhwc):
    N = x_nhwc.shape[0]
    x = x_nhwc.astype(jnp.float32)     # raw activation carried between layers
    scale = shift = None               # pending BN affine of the previous conv
    last_y = None
    for name in _CONV_SEQ:
        p = params[name]
        A, s_cols, t_cols, OH, OW, M = _build_conv_operand(x, scale, shift, p)
        y, ssum, ssq = conv_gemm_fused(A, s_cols, t_cols, p["wm"],
                                       apply_act=(scale is not None), m_real=M)
        # finalize BN batch statistics (tiny per-channel ops -> XLA glue)
        mean = ssum / M
        var = jnp.maximum(ssq / M - mean * mean, 0.0)   # biased variance
        scale = p["gamma"] * jax.lax.rsqrt(var + 1e-5)
        shift = p["beta"] - mean * scale
        # carry the RAW conv output (real channels); its BN+LeakyReLU is applied
        # fused inside the next kernel's prologue.
        x = y[:M].reshape(N, OH, OW, -1)[..., :p["cout"]]
        last_y = y
    _, OH, OW, _ = x.shape
    assert OH == 1 and OW == 1, (OH, OW)   # Flatten == take channels
    lp = params["linear"]
    out = linear_bn(last_y, scale, shift, lp["wm"], lp["b"])
    return out[:N, :lp["cout"]]


if __name__ == "__main__":
    key = jax.random.PRNGKey(0)
    # small configuration consistent with the module: 5 stride-2 stages reduce
    # 32x32 -> 1x1 so Flatten yields dim5 features for the Linear head.
    dim1, dim2, dim3, dim4, dim5 = 8, 16, 16, 32, 32
    n_out = 10
    params = init_encoder_rad(jax.random.fold_in(key, 1),
                              n_out, dim1, dim2, dim3, dim4, dim5)
    # torch input would be NCHW (2, 1, 32, 32); the same data is fed as NHWC here
    x = jax.random.normal(jax.random.fold_in(key, 2), (2, 32, 32, 1), jnp.float32)

    fwd = jax.jit(lambda xx: encoder_rad_forward(params, xx))
    out = jax.block_until_ready(fwd(x))

    assert out.shape == (2, n_out), out.shape
    assert bool(jnp.all(jnp.isfinite(out)))
    print("KERNEL_OK")
</pallas_src>

<mosaic_0001>
module attributes {stable_mosaic.version = 11 : i64} {
  func.func @kernel(%arg0: i32, %arg1: memref<512x128xbf16, #tpu.memory_space<vmem>>, %arg2: memref<1x128xf32, #tpu.memory_space<vmem>>, %arg3: memref<1x128xf32, #tpu.memory_space<vmem>>, %arg4: memref<128x128xbf16, #tpu.memory_space<vmem>>, %arg5: memref<512x128xbf16, #tpu.memory_space<vmem>>, %arg6: memref<8x128xf32, #tpu.memory_space<vmem>>, %arg7: memref<8x128xf32, #tpu.memory_space<vmem>>) attributes {dimension_semantics = [#tpu.dimension_semantics<parallel>], iteration_bounds = array<i64: 4>, scalar_prefetch = 0 : i64, scratch_operands = 0 : i64, tpu.core_type = #tpu.core_type<tc>, window_params = [{transform_indices = @transform_0, window_bounds = array<i64: 512, 128>}, {pipeline_mode = #tpu.pipeline_mode<synchronous>, transform_indices = @transform_1, window_bounds = array<i64: 1, 128>}, {pipeline_mode = #tpu.pipeline_mode<synchronous>, transform_indices = @transform_2, window_bounds = array<i64: 1, 128>}, {pipeline_mode = #tpu.pipeline_mode<synchronous>, transform_indices = @transform_3, window_bounds = array<i64: 128, 128>}, {transform_indices = @transform_4, window_bounds = array<i64: 512, 128>}, {transform_indices = @transform_5, window_bounds = array<i64: 8, 128>}, {transform_indices = @transform_6, window_bounds = array<i64: 8, 128>}]} {
    %c0 = arith.constant 0 : index
    %c0_0 = arith.constant 0 : index
    %0 = vector.load %arg1[%c0, %c0_0] : memref<512x128xbf16, #tpu.memory_space<vmem>>, vector<512x128xbf16>
    %1 = arith.extf %0 : vector<512x128xbf16> to vector<512x128xf32>
    %2 = arith.truncf %1 : vector<512x128xf32> to vector<512x128xbf16>
    %c0_1 = arith.constant 0 : index
    %c0_2 = arith.constant 0 : index
    %3 = vector.load %arg4[%c0_1, %c0_2] : memref<128x128xbf16, #tpu.memory_space<vmem>>, vector<128x128xbf16>
    %cst = arith.constant dense<0.000000e+00> : vector<512x128xf32>
    %4 = tpu.matmul %2, %3, %cst {dimension_numbers = #tpu.dot_dimension_numbers<[1], [0], [0], [1], [0, 0, 1, 1], [], []>} : vector<512x128xbf16>, vector<128x128xbf16>, vector<512x128xf32> -> vector<512x128xf32>
    %5 = arith.truncf %4 : vector<512x128xf32> to vector<512x128xbf16>
    %c0_3 = arith.constant 0 : index
    %c0_4 = arith.constant 0 : index
    %6 = vector.load %arg5[%c0_3, %c0_4] : memref<512x128xbf16, #tpu.memory_space<vmem>>, vector<512x128xbf16>
    tpu.vector_store %arg5[%c0_3, %c0_4], %5 {strides = array<i32>} : memref<512x128xbf16, #tpu.memory_space<vmem>>, vector<512x128xbf16>,
    %cst_5 = arith.constant dense<0.000000e+00> : vector<128xf32>
    %7 = vector.multi_reduction <add>, %4, %cst_5 [0] : vector<512x128xf32> to vector<128xf32>
    %8 = vector.shape_cast %7 : vector<128xf32> to vector<1x128xf32>
    %9 = arith.mulf %4, %4 : vector<512x128xf32>
    %cst_6 = arith.constant dense<0.000000e+00> : vector<128xf32>
    %10 = vector.multi_reduction <add>, %9, %cst_6 [0] : vector<512x128xf32> to vector<128xf32>
    %11 = vector.shape_cast %10 : vector<128xf32> to vector<1x128xf32>
    %12 = tpu.iota {dimensions = array<i32: 0>} : vector<8x128xi32>
    %c0_i32 = arith.constant 0 : i32
    %13 = vector.broadcast %c0_i32 : i32 to vector<8x128xi32>
    %14 = arith.cmpi eq, %12, %13 : vector<8x128xi32>
    %cst_7 = arith.constant 0.000000e+00 : f32
    %15 = vector.shape_cast %8 : vector<1x128xf32> to vector<1x128xf32>
    %16 = vector.broadcast %15 : vector<1x128xf32> to vector<8x128xf32>
    %17 = vector.broadcast %cst_7 : f32 to vector<8x128xf32>
    %18 = arith.select %14, %16, %17 : vector<8x128xi1>, vector<8x128xf32>
    %c0_8 = arith.constant 0 : index
    %c0_9 = arith.constant 0 : index
    %19 = vector.load %arg6[%c0_8, %c0_9] : memref<8x128xf32, #tpu.memory_space<vmem>>, vector<8x128xf32>
    tpu.vector_store %arg6[%c0_8, %c0_9], %18 {strides = array<i32>} : memref<8x128xf32, #tpu.memory_space<vmem>>, vector<8x128xf32>,
    %c0_i32_10 = arith.constant 0 : i32
    %20 = vector.broadcast %c0_i32_10 : i32 to vector<8x128xi32>
    %21 = arith.cmpi eq, %12, %20 : vector<8x128xi32>
    %cst_11 = arith.constant 0.000000e+00 : f32
    %22 = vector.shape_cast %11 : vector<1x128xf32> to vector<1x128xf32>
    %23 = vector.broadcast %22 : vector<1x128xf32> to vector<8x128xf32>
    %24 = vector.broadcast %cst_11 : f32 to vector<8x128xf32>
    %25 = arith.select %21, %23, %24 : vector<8x128xi1>, vector<8x128xf32>
    %c0_12 = arith.constant 0 : index
    %c0_13 = arith.constant 0 : index
    %26 = vector.load %arg7[%c0_12, %c0_13] : memref<8x128xf32, #tpu.memory_space<vmem>>, vector<8x128xf32>
    tpu.vector_store %arg7[%c0_12, %c0_13], %25 {strides = array<i32>} : memref<8x128xf32, #tpu.memory_space<vmem>>, vector<8x128xf32>,
    return
  }
  func.func @transform_0(%arg0: i32) -> (i32, i32) {
    %c0_i32 = arith.constant 0 : i32
    %c0_i32_0 = arith.constant 0 : i32
    return %arg0, %c0_i32 : i32, i32
  }
  func.func @transform_1(%arg0: i32) -> (i32, i32) {
    %c0_i32 = arith.constant 0 : i32
    %c0_i32_0 = arith.constant 0 : i32
    %c0_i32_1 = arith.constant 0 : i32
    return %c0_i32, %c0_i32_0 : i32, i32
  }
  func.func @transform_2(%arg0: i32) -> (i32, i32) {
    %c0_i32 = arith.constant 0 : i32
    %c0_i32_0 = arith.constant 0 : i32
    %c0_i32_1 = arith.constant 0 : i32
    return %c0_i32, %c0_i32_0 : i32, i32
  }
  func.func @transform_3(%arg0: i32) -> (i32, i32) {
    %c0_i32 = arith.constant 0 : i32
    %c0_i32_0 = arith.constant 0 : i32
    %c0_i32_1 = arith.constant 0 : i32
    return %c0_i32, %c0_i32_0 : i32, i32
  }
  func.func @transform_4(%arg0: i32) -> (i32, i32) {
    %c0_i32 = arith.constant 0 : i32
    %c0_i32_0 = arith.constant 0 : i32
    return %arg0, %c0_i32 : i32, i32
  }
  func.func @transform_5(%arg0: i32) -> (i32, i32) {
    %c0_i32 = arith.constant 0 : i32
    %c0_i32_0 = arith.constant 0 : i32
    return %arg0, %c0_i32 : i32, i32
  }
  func.func @transform_6(%arg0: i32) -> (i32, i32) {
    %c0_i32 = arith.constant 0 : i32
    %c0_i32_0 = arith.constant 0 : i32
    return %arg0, %c0_i32 : i32, i32
  }
}

module attributes {stable_mosaic.version = 11 : i64} {
  func.func @kernel(%arg0: i32, %arg1: memref<256x256xbf16, #tpu.memory_space<vmem>>, %arg2: memref<1x256xf32, #tpu.memory_space<vmem>>, %arg3: memref<1x256xf32, #tpu.memory_space<vmem>>, %arg4: memref<256x128xbf16, #tpu.memory_space<vmem>>, %arg5: memref<256x128xbf16, #tpu.memory_space<vmem>>, %arg6: memref<8x128xf32, #tpu.memory_space<vmem>>, %arg7: memref<8x128xf32, #tpu.memory_space<vmem>>) attributes {dimension_semantics = [#tpu.dimension_semantics<parallel>], iteration_bounds = array<i64: 2>, scalar_prefetch = 0 : i64, scratch_operands = 0 : i64, tpu.core_type = #tpu.core_type<tc>, window_params = [{transform_indices = @transform_0, window_bounds = array<i64: 256, 256>}, {pipeline_mode = #tpu.pipeline_mode<synchronous>, transform_indices = @transform_1, window_bounds = array<i64: 1, 256>}, {pipeline_mode = #tpu.pipeline_mode<synchronous>, transform_indices = @transform_2, window_bounds = array<i64: 1, 256>}, {pipeline_mode = #tpu.pipeline_mode<synchronous>, transform_indices = @transform_3, window_bounds = array<i64: 256, 128>}, {transform_indices = @transform_4, window_bounds = array<i64: 256, 128>}, {transform_indices = @transform_5, window_bounds = array<i64: 8, 128>}, {transform_indices = @transform_6, window_bounds = array<i64: 8, 128>}]} {
    %c0 = arith.constant 0 : index
    %c0_0 = arith.constant 0 : index
    %0 = vector.load %arg1[%c0, %c0_0] : memref<256x256xbf16, #tpu.memory_space<vmem>>, vector<256x256xbf16>
    %1 = arith.extf %0 : vector<256x256xbf16> to vector<256x256xf32>
    %c0_1 = arith.constant 0 : index
    %c0_2 = arith.constant 0 : index
    %2 = vector.load %arg2[%c0_1, %c0_2] : memref<1x256xf32, #tpu.memory_space<vmem>>, vector<1x256xf32>
    %3 = vector.broadcast %2 : vector<1x256xf32> to vector<256x256xf32>
    %4 = arith.mulf %1, %3 : vector<256x256xf32>
    %c0_3 = arith.constant 0 : index
    %c0_4 = arith.constant 0 : index
    %5 = vector.load %arg3[%c0_3, %c0_4] : memref<1x256xf32, #tpu.memory_space<vmem>>, vector<1x256xf32>
    %6 = vector.broadcast %5 : vector<1x256xf32> to vector<256x256xf32>
    %7 = arith.addf %4, %6 : vector<256x256xf32>
    %cst = arith.constant 0.000000e+00 : f32
    %8 = vector.broadcast %cst : f32 to vector<256x256xf32>
    %9 = arith.cmpf oge, %7, %8 : vector<256x256xf32>
    %cst_5 = arith.constant 2.000000e-01 : f32
    %10 = vector.broadcast %cst_5 : f32 to vector<256x256xf32>
    %11 = arith.mulf %10, %7 : vector<256x256xf32>
    %12 = arith.select %9, %7, %11 : vector<256x256xi1>, vector<256x256xf32>
    %13 = arith.truncf %12 : vector<256x256xf32> to vector<256x256xbf16>
    %c0_6 = arith.constant 0 : index
    %c0_7 = arith.constant 0 : index
    %14 = vector.load %arg4[%c0_6, %c0_7] : memref<256x128xbf16, #tpu.memory_space<vmem>>, vector<256x128xbf16>
    %cst_8 = arith.constant dense<0.000000e+00> : vector<256x128xf32>
    %15 = tpu.matmul %13, %14, %cst_8 {dimension_numbers = #tpu.dot_dimension_numbers<[1], [0], [0], [1], [0, 0, 1, 1], [], []>} : vector<256x256xbf16>, vector<256x128xbf16>, vector<256x128xf32> -> vector<256x128xf32>
    %16 = arith.truncf %15 : vector<256x128xf32> to vector<256x128xbf16>
    %c0_9 = arith.constant 0 : index
    %c0_10 = arith.constant 0 : index
    %17 = vector.load %arg5[%c0_9, %c0_10] : memref<256x128xbf16, #tpu.memory_space<vmem>>, vector<256x128xbf16>
    tpu.vector_store %arg5[%c0_9, %c0_10], %16 {strides = array<i32>} : memref<256x128xbf16, #tpu.memory_space<vmem>>, vector<256x128xbf16>,
    %cst_11 = arith.constant dense<0.000000e+00> : vector<128xf32>
    %18 = vector.multi_reduction <add>, %15, %cst_11 [0] : vector<256x128xf32> to vector<128xf32>
    %19 = vector.shape_cast %18 : vector<128xf32> to vector<1x128xf32>
    %20 = arith.mulf %15, %15 : vector<256x128xf32>
    %cst_12 = arith.constant dense<0.000000e+00> : vector<128xf32>
    %21 = vector.multi_reduction <add>, %20, %cst_12 [0] : vector<256x128xf32> to vector<128xf32>
    %22 = vector.shape_cast %21 : vector<128xf32> to vector<1x128xf32>
    %23 = tpu.iota {dimensions = array<i32: 0>} : vector<8x128xi32>
    %c0_i32 = arith.constant 0 : i32
    %24 = vector.broadcast %c0_i32 : i32 to vector<8x128xi32>
    %25 = arith.cmpi eq, %23, %24 : vector<8x128xi32>
    %cst_13 = arith.constant 0.000000e+00 : f32
    %26 = vector.shape_cast %19 : vector<1x128xf32> to vector<1x128xf32>
    %27 = vector.broadcast %26 : vector<1x128xf32> to vector<8x128xf32>
    %28 = vector.broadcast %cst_13 : f32 to vector<8x128xf32>
    %29 = arith.select %25, %27, %28 : vector<8x128xi1>, vector<8x128xf32>
    %c0_14 = arith.constant 0 : index
    %c0_15 = arith.constant 0 : index
    %30 = vector.load %arg6[%c0_14, %c0_15] : memref<8x128xf32, #tpu.memory_space<vmem>>, vector<8x128xf32>
    tpu.vector_store %arg6[%c0_14, %c0_15], %29 {strides = array<i32>} : memref<8x128xf32, #tpu.memory_space<vmem>>, vector<8x128xf32>,
    %c0_i32_16 = arith.constant 0 : i32
    %31 = vector.broadcast %c0_i32_16 : i32 to vector<8x128xi32>
    %32 = arith.cmpi eq, %23, %31 : vector<8x128xi32>
    %cst_17 = arith.constant 0.000000e+00 : f32
    %33 = vector.shape_cast %22 : vector<1x128xf32> to vector<1x128xf32>
    %34 = vector.broadcast %33 : vector<1x128xf32> to vector<8x128xf32>
    %35 = vector.broadcast %cst_17 : f32 to vector<8x128xf32>
    %36 = arith.select %32, %34, %35 : vector<8x128xi1>, vector<8x128xf32>
    %c0_18 = arith.constant 0 : index
    %c0_19 = arith.constant 0 : index
    %37 = vector.load %arg7[%c0_18, %c0_19] : memref<8x128xf32, #tpu.memory_space<vmem>>, vector<8x128xf32>
    tpu.vector_store %arg7[%c0_18, %c0_19], %36 {strides = array<i32>} : memref<8x128xf32, #tpu.memory_space<vmem>>, vector<8x128xf32>,
    return
  }
  func.func @transform_0(%arg0: i32) -> (i32, i32) {
    %c0_i32 = arith.constant 0 : i32
    %c0_i32_0 = arith.constant 0 : i32
    return %arg0, %c0_i32 : i32, i32
  }
  func.func @transform_1(%arg0: i32) -> (i32, i32) {
    %c0_i32 = arith.constant 0 : i32
    %c0_i32_0 = arith.constant 0 : i32
    %c0_i32_1 = arith.constant 0 : i32
    return %c0_i32, %c0_i32_0 : i32, i32
  }
  func.func @transform_2(%arg0: i32) -> (i32, i32) {
    %c0_i32 = arith.constant 0 : i32
    %c0_i32_0 = arith.constant 0 : i32
    %c0_i32_1 = arith.constant 0 : i32
    return %c0_i32, %c0_i32_0 : i32, i32
  }
  func.func @transform_3(%arg0: i32) -> (i32, i32) {
    %c0_i32 = arith.constant 0 : i32
    %c0_i32_0 = arith.constant 0 : i32
    %c0_i32_1 = arith.constant 0 : i32
    return %c0_i32, %c0_i32_0 : i32, i32
  }
  func.func @transform_4(%arg0: i32) -> (i32, i32) {
    %c0_i32 = arith.constant 0 : i32
    %c0_i32_0 = arith.constant 0 : i32
    return %arg0, %c0_i32 : i32, i32
  }
  func.func @transform_5(%arg0: i32) -> (i32, i32) {
    %c0_i32 = arith.constant 0 : i32
    %c0_i32_0 = arith.constant 0 : i32
    return %arg0, %c0_i32 : i32, i32
  }
  func.func @transform_6(%arg0: i32) -> (i32, i32) {
    %c0_i32 = arith.constant 0 : i32
    %c0_i32_0 = arith.constant 0 : i32
    return %arg0, %c0_i32 : i32, i32
  }
}

module attributes {stable_mosaic.version = 11 : i64} {
  func.func @kernel(%arg0: i32, %arg1: memref<256x128xbf16, #tpu.memory_space<vmem>>, %arg2: memref<1x128xf32, #tpu.memory_space<vmem>>, %arg3: memref<1x128xf32, #tpu.memory_space<vmem>>, %arg4: memref<128x128xbf16, #tpu.memory_space<vmem>>, %arg5: memref<256x128xbf16, #tpu.memory_space<vmem>>, %arg6: memref<8x128xf32, #tpu.memory_space<vmem>>, %arg7: memref<8x128xf32, #tpu.memory_space<vmem>>) attributes {dimension_semantics = [#tpu.dimension_semantics<parallel>], iteration_bounds = array<i64: 2>, scalar_prefetch = 0 : i64, scratch_operands = 0 : i64, tpu.core_type = #tpu.core_type<tc>, window_params = [{transform_indices = @transform_0, window_bounds = array<i64: 256, 128>}, {pipeline_mode = #tpu.pipeline_mode<synchronous>, transform_indices = @transform_1, window_bounds = array<i64: 1, 128>}, {pipeline_mode = #tpu.pipeline_mode<synchronous>, transform_indices = @transform_2, window_bounds = array<i64: 1, 128>}, {pipeline_mode = #tpu.pipeline_mode<synchronous>, transform_indices = @transform_3, window_bounds = array<i64: 128, 128>}, {transform_indices = @transform_4, window_bounds = array<i64: 256, 128>}, {transform_indices = @transform_5, window_bounds = array<i64: 8, 128>}, {transform_indices = @transform_6, window_bounds = array<i64: 8, 128>}]} {
    %c0 = arith.constant 0 : index
    %c0_0 = arith.constant 0 : index
    %0 = vector.load %arg1[%c0, %c0_0] : memref<256x128xbf16, #tpu.memory_space<vmem>>, vector<256x128xbf16>
    %1 = arith.extf %0 : vector<256x128xbf16> to vector<256x128xf32>
    %c0_1 = arith.constant 0 : index
    %c0_2 = arith.constant 0 : index
    %2 = vector.load %arg2[%c0_1, %c0_2] : memref<1x128xf32, #tpu.memory_space<vmem>>, vector<1x128xf32>
    %3 = vector.broadcast %2 : vector<1x128xf32> to vector<256x128xf32>
    %4 = arith.mulf %1, %3 : vector<256x128xf32>
    %c0_3 = arith.constant 0 : index
    %c0_4 = arith.constant 0 : index
    %5 = vector.load %arg3[%c0_3, %c0_4] : memref<1x128xf32, #tpu.memory_space<vmem>>, vector<1x128xf32>
    %6 = vector.broadcast %5 : vector<1x128xf32> to vector<256x128xf32>
    %7 = arith.addf %4, %6 : vector<256x128xf32>
    %cst = arith.constant 0.000000e+00 : f32
    %8 = vector.broadcast %cst : f32 to vector<256x128xf32>
    %9 = arith.cmpf oge, %7, %8 : vector<256x128xf32>
    %cst_5 = arith.constant 2.000000e-01 : f32
    %10 = vector.broadcast %cst_5 : f32 to vector<256x128xf32>
    %11 = arith.mulf %10, %7 : vector<256x128xf32>
    %12 = arith.select %9, %7, %11 : vector<256x128xi1>, vector<256x128xf32>
    %13 = arith.truncf %12 : vector<256x128xf32> to vector<256x128xbf16>
    %c0_6 = arith.constant 0 : index
    %c0_7 = arith.constant 0 : index
    %14 = vector.load %arg4[%c0_6, %c0_7] : memref<128x128xbf16, #tpu.memory_space<vmem>>, vector<128x128xbf16>
    %cst_8 = arith.constant dense<0.000000e+00> : vector<256x128xf32>
    %15 = tpu.matmul %13, %14, %cst_8 {dimension_numbers = #tpu.dot_dimension_numbers<[1], [0], [0], [1], [0, 0, 1, 1], [], []>} : vector<256x128xbf16>, vector<128x128xbf16>, vector<256x128xf32> -> vector<256x128xf32>
    %16 = arith.truncf %15 : vector<256x128xf32> to vector<256x128xbf16>
    %c0_9 = arith.constant 0 : index
    %c0_10 = arith.constant 0 : index
    %17 = vector.load %arg5[%c0_9, %c0_10] : memref<256x128xbf16, #tpu.memory_space<vmem>>, vector<256x128xbf16>
    tpu.vector_store %arg5[%c0_9, %c0_10], %16 {strides = array<i32>} : memref<256x128xbf16, #tpu.memory_space<vmem>>, vector<256x128xbf16>,
    %cst_11 = arith.constant dense<0.000000e+00> : vector<128xf32>
    %18 = vector.multi_reduction <add>, %15, %cst_11 [0] : vector<256x128xf32> to vector<128xf32>
    %19 = vector.shape_cast %18 : vector<128xf32> to vector<1x128xf32>
    %20 = arith.mulf %15, %15 : vector<256x128xf32>
    %cst_12 = arith.constant dense<0.000000e+00> : vector<128xf32>
    %21 = vector.multi_reduction <add>, %20, %cst_12 [0] : vector<256x128xf32> to vector<128xf32>
    %22 = vector.shape_cast %21 : vector<128xf32> to vector<1x128xf32>
    %23 = tpu.iota {dimensions = array<i32: 0>} : vector<8x128xi32>
    %c0_i32 = arith.constant 0 : i32
    %24 = vector.broadcast %c0_i32 : i32 to vector<8x128xi32>
    %25 = arith.cmpi eq, %23, %24 : vector<8x128xi32>
    %cst_13 = arith.constant 0.000000e+00 : f32
    %26 = vector.shape_cast %19 : vector<1x128xf32> to vector<1x128xf32>
    %27 = vector.broadcast %26 : vector<1x128xf32> to vector<8x128xf32>
    %28 = vector.broadcast %cst_13 : f32 to vector<8x128xf32>
    %29 = arith.select %25, %27, %28 : vector<8x128xi1>, vector<8x128xf32>
    %c0_14 = arith.constant 0 : index
    %c0_15 = arith.constant 0 : index
    %30 = vector.load %arg6[%c0_14, %c0_15] : memref<8x128xf32, #tpu.memory_space<vmem>>, vector<8x128xf32>
    tpu.vector_store %arg6[%c0_14, %c0_15], %29 {strides = array<i32>} : memref<8x128xf32, #tpu.memory_space<vmem>>, vector<8x128xf32>,
    %c0_i32_16 = arith.constant 0 : i32
    %31 = vector.broadcast %c0_i32_16 : i32 to vector<8x128xi32>
    %32 = arith.cmpi eq, %23, %31 : vector<8x128xi32>
    %cst_17 = arith.constant 0.000000e+00 : f32
    %33 = vector.shape_cast %22 : vector<1x128xf32> to vector<1x128xf32>
    %34 = vector.broadcast %33 : vector<1x128xf32> to vector<8x128xf32>
    %35 = vector.broadcast %cst_17 : f32 to vector<8x128xf32>
    %36 = arith.select %32, %34, %35 : vector<8x128xi1>, vector<8x128xf32>
    %c0_18 = arith.constant 0 : index
    %c0_19 = arith.constant 0 : index
    %37 = vector.load %arg7[%c0_18, %c0_19] : memref<8x128xf32, #tpu.memory_space<vmem>>, vector<8x128xf32>
    tpu.vector_store %arg7[%c0_18, %c0_19], %36 {strides = array<i32>} : memref<8x128xf32, #tpu.memory_space<vmem>>, vector<8x128xf32>,
    return
  }
  func.func @transform_0(%arg0: i32) -> (i32, i32) {
    %c0_i32 = arith.constant 0 : i32
    %c0_i32_0 = arith.constant 0 : i32
    return %arg0, %c0_i32 : i32, i32
  }
  func.func @transform_1(%arg0: i32) -> (i32, i32) {
    %c0_i32 = arith.constant 0 : i32
    %c0_i32_0 = arith.constant 0 : i32
    %c0_i32_1 = arith.constant 0 : i32
    return %c0_i32, %c0_i32_0 : i32, i32
  }
  func.func @transform_2(%arg0: i32) -> (i32, i32) {
    %c0_i32 = arith.constant 0 : i32
    %c0_i32_0 = arith.constant 0 : i32
    %c0_i32_1 = arith.constant 0 : i32
    return %c0_i32, %c0_i32_0 : i32, i32
  }
  func.func @transform_3(%arg0: i32) -> (i32, i32) {
    %c0_i32 = arith.constant 0 : i32
    %c0_i32_0 = arith.constant 0 : i32
    %c0_i32_1 = arith.constant 0 : i32
    return %c0_i32, %c0_i32_0 : i32, i32
  }
  func.func @transform_4(%arg0: i32) -> (i32, i32) {
    %c0_i32 = arith.constant 0 : i32
    %c0_i32_0 = arith.constant 0 : i32
    return %arg0, %c0_i32 : i32, i32
  }
  func.func @transform_5(%arg0: i32) -> (i32, i32) {
    %c0_i32 = arith.constant 0 : i32
    %c0_i32_0 = arith.constant 0 : i32
    return %arg0, %c0_i32 : i32, i32
  }
  func.func @transform_6(%arg0: i32) -> (i32, i32) {
    %c0_i32 = arith.constant 0 : i32
    %c0_i32_0 = arith.constant 0 : i32
    return %arg0, %c0_i32 : i32, i32
  }
}

module attributes {stable_mosaic.version = 11 : i64} {
  func.func @kernel(%arg0: i32, %arg1: memref<64x256xbf16, #tpu.memory_space<vmem>>, %arg2: memref<1x256xf32, #tpu.memory_space<vmem>>, %arg3: memref<1x256xf32, #tpu.memory_space<vmem>>, %arg4: memref<256x128xbf16, #tpu.memory_space<vmem>>, %arg5: memref<64x128xbf16, #tpu.memory_space<vmem>>, %arg6: memref<8x128xf32, #tpu.memory_space<vmem>>, %arg7: memref<8x128xf32, #tpu.memory_space<vmem>>) attributes {dimension_semantics = [#tpu.dimension_semantics<parallel>], iteration_bounds = array<i64: 2>, scalar_prefetch = 0 : i64, scratch_operands = 0 : i64, tpu.core_type = #tpu.core_type<tc>, window_params = [{transform_indices = @transform_0, window_bounds = array<i64: 64, 256>}, {pipeline_mode = #tpu.pipeline_mode<synchronous>, transform_indices = @transform_1, window_bounds = array<i64: 1, 256>}, {pipeline_mode = #tpu.pipeline_mode<synchronous>, transform_indices = @transform_2, window_bounds = array<i64: 1, 256>}, {pipeline_mode = #tpu.pipeline_mode<synchronous>, transform_indices = @transform_3, window_bounds = array<i64: 256, 128>}, {transform_indices = @transform_4, window_bounds = array<i64: 64, 128>}, {transform_indices = @transform_5, window_bounds = array<i64: 8, 128>}, {transform_indices = @transform_6, window_bounds = array<i64: 8, 128>}]} {
    %c0 = arith.constant 0 : index
    %c0_0 = arith.constant 0 : index
    %0 = vector.load %arg1[%c0, %c0_0] : memref<64x256xbf16, #tpu.memory_space<vmem>>, vector<64x256xbf16>
    %1 = arith.extf %0 : vector<64x256xbf16> to vector<64x256xf32>
    %c0_1 = arith.constant 0 : index
    %c0_2 = arith.constant 0 : index
    %2 = vector.load %arg2[%c0_1, %c0_2] : memref<1x256xf32, #tpu.memory_space<vmem>>, vector<1x256xf32>
    %3 = vector.broadcast %2 : vector<1x256xf32> to vector<64x256xf32>
    %4 = arith.mulf %1, %3 : vector<64x256xf32>
    %c0_3 = arith.constant 0 : index
    %c0_4 = arith.constant 0 : index
    %5 = vector.load %arg3[%c0_3, %c0_4] : memref<1x256xf32, #tpu.memory_space<vmem>>, vector<1x256xf32>
    %6 = vector.broadcast %5 : vector<1x256xf32> to vector<64x256xf32>
    %7 = arith.addf %4, %6 : vector<64x256xf32>
    %cst = arith.constant 0.000000e+00 : f32
    %8 = vector.broadcast %cst : f32 to vector<64x256xf32>
    %9 = arith.cmpf oge, %7, %8 : vector<64x256xf32>
    %cst_5 = arith.constant 2.000000e-01 : f32
    %10 = vector.broadcast %cst_5 : f32 to vector<64x256xf32>
    %11 = arith.mulf %10, %7 : vector<64x256xf32>
    %12 = arith.select %9, %7, %11 : vector<64x256xi1>, vector<64x256xf32>
    %13 = arith.truncf %12 : vector<64x256xf32> to vector<64x256xbf16>
    %c0_6 = arith.constant 0 : index
    %c0_7 = arith.constant 0 : index
    %14 = vector.load %arg4[%c0_6, %c0_7] : memref<256x128xbf16, #tpu.memory_space<vmem>>, vector<256x128xbf16>
    %cst_8 = arith.constant dense<0.000000e+00> : vector<64x128xf32>
    %15 = tpu.matmul %13, %14, %cst_8 {dimension_numbers = #tpu.dot_dimension_numbers<[1], [0], [0], [1], [0, 0, 1, 1], [], []>} : vector<64x256xbf16>, vector<256x128xbf16>, vector<64x128xf32> -> vector<64x128xf32>
    %16 = arith.truncf %15 : vector<64x128xf32> to vector<64x128xbf16>
    %c0_9 = arith.constant 0 : index
    %c0_10 = arith.constant 0 : index
    %17 = vector.load %arg5[%c0_9, %c0_10] : memref<64x128xbf16, #tpu.memory_space<vmem>>, vector<64x128xbf16>
    tpu.vector_store %arg5[%c0_9, %c0_10], %16 {strides = array<i32>} : memref<64x128xbf16, #tpu.memory_space<vmem>>, vector<64x128xbf16>,
    %cst_11 = arith.constant dense<0.000000e+00> : vector<128xf32>
    %18 = vector.multi_reduction <add>, %15, %cst_11 [0] : vector<64x128xf32> to vector<128xf32>
    %19 = vector.shape_cast %18 : vector<128xf32> to vector<1x128xf32>
    %20 = arith.mulf %15, %15 : vector<64x128xf32>
    %cst_12 = arith.constant dense<0.000000e+00> : vector<128xf32>
    %21 = vector.multi_reduction <add>, %20, %cst_12 [0] : vector<64x128xf32> to vector<128xf32>
    %22 = vector.shape_cast %21 : vector<128xf32> to vector<1x128xf32>
    %23 = tpu.iota {dimensions = array<i32: 0>} : vector<8x128xi32>
    %c0_i32 = arith.constant 0 : i32
    %24 = vector.broadcast %c0_i32 : i32 to vector<8x128xi32>
    %25 = arith.cmpi eq, %23, %24 : vector<8x128xi32>
    %cst_13 = arith.constant 0.000000e+00 : f32
    %26 = vector.shape_cast %19 : vector<1x128xf32> to vector<1x128xf32>
    %27 = vector.broadcast %26 : vector<1x128xf32> to vector<8x128xf32>
    %28 = vector.broadcast %cst_13 : f32 to vector<8x128xf32>
    %29 = arith.select %25, %27, %28 : vector<8x128xi1>, vector<8x128xf32>
    %c0_14 = arith.constant 0 : index
    %c0_15 = arith.constant 0 : index
    %30 = vector.load %arg6[%c0_14, %c0_15] : memref<8x128xf32, #tpu.memory_space<vmem>>, vector<8x128xf32>
    tpu.vector_store %arg6[%c0_14, %c0_15], %29 {strides = array<i32>} : memref<8x128xf32, #tpu.memory_space<vmem>>, vector<8x128xf32>,
    %c0_i32_16 = arith.constant 0 : i32
    %31 = vector.broadcast %c0_i32_16 : i32 to vector<8x128xi32>
    %32 = arith.cmpi eq, %23, %31 : vector<8x128xi32>
    %cst_17 = arith.constant 0.000000e+00 : f32
    %33 = vector.shape_cast %22 : vector<1x128xf32> to vector<1x128xf32>
    %34 = vector.broadcast %33 : vector<1x128xf32> to vector<8x128xf32>
    %35 = vector.broadcast %cst_17 : f32 to vector<8x128xf32>
    %36 = arith.select %32, %34, %35 : vector<8x128xi1>, vector<8x128xf32>
    %c0_18 = arith.constant 0 : index
    %c0_19 = arith.constant 0 : index
    %37 = vector.load %arg7[%c0_18, %c0_19] : memref<8x128xf32, #tpu.memory_space<vmem>>, vector<8x128xf32>
    tpu.vector_store %arg7[%c0_18, %c0_19], %36 {strides = array<i32>} : memref<8x128xf32, #tpu.memory_space<vmem>>, vector<8x128xf32>,
    return
  }
  func.func @transform_0(%arg0: i32) -> (i32, i32) {
    %c0_i32 = arith.constant 0 : i32
    %c0_i32_0 = arith.constant 0 : i32
    return %arg0, %c0_i32 : i32, i32
  }
  func.func @transform_1(%arg0: i32) -> (i32, i32) {
    %c0_i32 = arith.constant 0 : i32
    %c0_i32_0 = arith.constant 0 : i32
    %c0_i32_1 = arith.constant 0 : i32
    return %c0_i32, %c0_i32_0 : i32, i32
  }
  func.func @transform_2(%arg0: i32) -> (i32, i32) {
    %c0_i32 = arith.constant 0 : i32
    %c0_i32_0 = arith.constant 0 : i32
    %c0_i32_1 = arith.constant 0 : i32
    return %c0_i32, %c0_i32_0 : i32, i32
  }
  func.func @transform_3(%arg0: i32) -> (i32, i32) {
    %c0_i32 = arith.constant 0 : i32
    %c0_i32_0 = arith.constant 0 : i32
    %c0_i32_1 = arith.constant 0 : i32
    return %c0_i32, %c0_i32_0 : i32, i32
  }
  func.func @transform_4(%arg0: i32) -> (i32, i32) {
    %c0_i32 = arith.constant 0 : i32
    %c0_i32_0 = arith.constant 0 : i32
    return %arg0, %c0_i32 : i32, i32
  }
  func.func @transform_5(%arg0: i32) -> (i32, i32) {
    %c0_i32 = arith.constant 0 : i32
    %c0_i32_0 = arith.constant 0 : i32
    return %arg0, %c0_i32 : i32, i32
  }
  func.func @transform_6(%arg0: i32) -> (i32, i32) {
    %c0_i32 = arith.constant 0 : i32
    %c0_i32_0 = arith.constant 0 : i32
    return %arg0, %c0_i32 : i32, i32
  }
}

module attributes {stable_mosaic.version = 11 : i64} {
  func.func @kernel(%arg0: i32, %arg1: memref<16x256xbf16, #tpu.memory_space<vmem>>, %arg2: memref<1x256xf32, #tpu.memory_space<vmem>>, %arg3: memref<1x256xf32, #tpu.memory_space<vmem>>, %arg4: memref<256x128xbf16, #tpu.memory_space<vmem>>, %arg5: memref<16x128xbf16, #tpu.memory_space<vmem>>, %arg6: memref<8x128xf32, #tpu.memory_space<vmem>>, %arg7: memref<8x128xf32, #tpu.memory_space<vmem>>) attributes {dimension_semantics = [#tpu.dimension_semantics<parallel>], iteration_bounds = array<i64: 2>, scalar_prefetch = 0 : i64, scratch_operands = 0 : i64, tpu.core_type = #tpu.core_type<tc>, window_params = [{transform_indices = @transform_0, window_bounds = array<i64: 16, 256>}, {pipeline_mode = #tpu.pipeline_mode<synchronous>, transform_indices = @transform_1, window_bounds = array<i64: 1, 256>}, {pipeline_mode = #tpu.pipeline_mode<synchronous>, transform_indices = @transform_2, window_bounds = array<i64: 1, 256>}, {pipeline_mode = #tpu.pipeline_mode<synchronous>, transform_indices = @transform_3, window_bounds = array<i64: 256, 128>}, {transform_indices = @transform_4, window_bounds = array<i64: 16, 128>}, {transform_indices = @transform_5, window_bounds = array<i64: 8, 128>}, {transform_indices = @transform_6, window_bounds = array<i64: 8, 128>}]} {
    %c0 = arith.constant 0 : index
    %c0_0 = arith.constant 0 : index
    %0 = vector.load %arg1[%c0, %c0_0] : memref<16x256xbf16, #tpu.memory_space<vmem>>, vector<16x256xbf16>
    %1 = arith.extf %0 : vector<16x256xbf16> to vector<16x256xf32>
    %c0_1 = arith.constant 0 : index
    %c0_2 = arith.constant 0 : index
    %2 = vector.load %arg2[%c0_1, %c0_2] : memref<1x256xf32, #tpu.memory_space<vmem>>, vector<1x256xf32>
    %3 = vector.broadcast %2 : vector<1x256xf32> to vector<16x256xf32>
    %4 = arith.mulf %1, %3 : vector<16x256xf32>
    %c0_3 = arith.constant 0 : index
    %c0_4 = arith.constant 0 : index
    %5 = vector.load %arg3[%c0_3, %c0_4] : memref<1x256xf32, #tpu.memory_space<vmem>>, vector<1x256xf32>
    %6 = vector.broadcast %5 : vector<1x256xf32> to vector<16x256xf32>
    %7 = arith.addf %4, %6 : vector<16x256xf32>
    %cst = arith.constant 0.000000e+00 : f32
    %8 = vector.broadcast %cst : f32 to vector<16x256xf32>
    %9 = arith.cmpf oge, %7, %8 : vector<16x256xf32>
    %cst_5 = arith.constant 2.000000e-01 : f32
    %10 = vector.broadcast %cst_5 : f32 to vector<16x256xf32>
    %11 = arith.mulf %10, %7 : vector<16x256xf32>
    %12 = arith.select %9, %7, %11 : vector<16x256xi1>, vector<16x256xf32>
    %13 = arith.truncf %12 : vector<16x256xf32> to vector<16x256xbf16>
    %c0_6 = arith.constant 0 : index
    %c0_7 = arith.constant 0 : index
    %14 = vector.load %arg4[%c0_6, %c0_7] : memref<256x128xbf16, #tpu.memory_space<vmem>>, vector<256x128xbf16>
    %cst_8 = arith.constant dense<0.000000e+00> : vector<16x128xf32>
    %15 = tpu.matmul %13, %14, %cst_8 {dimension_numbers = #tpu.dot_dimension_numbers<[1], [0], [0], [1], [0, 0, 1, 1], [], []>} : vector<16x256xbf16>, vector<256x128xbf16>, vector<16x128xf32> -> vector<16x128xf32>
    %16 = arith.truncf %15 : vector<16x128xf32> to vector<16x128xbf16>
    %c0_9 = arith.constant 0 : index
    %c0_10 = arith.constant 0 : index
    %17 = vector.load %arg5[%c0_9, %c0_10] : memref<16x128xbf16, #tpu.memory_space<vmem>>, vector<16x128xbf16>
    tpu.vector_store %arg5[%c0_9, %c0_10], %16 {strides = array<i32>} : memref<16x128xbf16, #tpu.memory_space<vmem>>, vector<16x128xbf16>,
    %cst_11 = arith.constant dense<0.000000e+00> : vector<128xf32>
    %18 = vector.multi_reduction <add>, %15, %cst_11 [0] : vector<16x128xf32> to vector<128xf32>
    %19 = vector.shape_cast %18 : vector<128xf32> to vector<1x128xf32>
    %20 = arith.mulf %15, %15 : vector<16x128xf32>
    %cst_12 = arith.constant dense<0.000000e+00> : vector<128xf32>
    %21 = vector.multi_reduction <add>, %20, %cst_12 [0] : vector<16x128xf32> to vector<128xf32>
    %22 = vector.shape_cast %21 : vector<128xf32> to vector<1x128xf32>
    %23 = tpu.iota {dimensions = array<i32: 0>} : vector<8x128xi32>
    %c0_i32 = arith.constant 0 : i32
    %24 = vector.broadcast %c0_i32 : i32 to vector<8x128xi32>
    %25 = arith.cmpi eq, %23, %24 : vector<8x128xi32>
    %cst_13 = arith.constant 0.000000e+00 : f32
    %26 = vector.shape_cast %19 : vector<1x128xf32> to vector<1x128xf32>
    %27 = vector.broadcast %26 : vector<1x128xf32> to vector<8x128xf32>
    %28 = vector.broadcast %cst_13 : f32 to vector<8x128xf32>
    %29 = arith.select %25, %27, %28 : vector<8x128xi1>, vector<8x128xf32>
    %c0_14 = arith.constant 0 : index
    %c0_15 = arith.constant 0 : index
    %30 = vector.load %arg6[%c0_14, %c0_15] : memref<8x128xf32, #tpu.memory_space<vmem>>, vector<8x128xf32>
    tpu.vector_store %arg6[%c0_14, %c0_15], %29 {strides = array<i32>} : memref<8x128xf32, #tpu.memory_space<vmem>>, vector<8x128xf32>,
    %c0_i32_16 = arith.constant 0 : i32
    %31 = vector.broadcast %c0_i32_16 : i32 to vector<8x128xi32>
    %32 = arith.cmpi eq, %23, %31 : vector<8x128xi32>
    %cst_17 = arith.constant 0.000000e+00 : f32
    %33 = vector.shape_cast %22 : vector<1x128xf32> to vector<1x128xf32>
    %34 = vector.broadcast %33 : vector<1x128xf32> to vector<8x128xf32>
    %35 = vector.broadcast %cst_17 : f32 to vector<8x128xf32>
    %36 = arith.select %32, %34, %35 : vector<8x128xi1>, vector<8x128xf32>
    %c0_18 = arith.constant 0 : index
    %c0_19 = arith.constant 0 : index
    %37 = vector.load %arg7[%c0_18, %c0_19] : memref<8x128xf32, #tpu.memory_space<vmem>>, vector<8x128xf32>
    tpu.vector_store %arg7[%c0_18, %c0_19], %36 {strides = array<i32>} : memref<8x128xf32, #tpu.memory_space<vmem>>, vector<8x128xf32>,
    return
  }
  func.func @transform_0(%arg0: i32) -> (i32, i32) {
    %c0_i32 = arith.constant 0 : i32
    %c0_i32_0 = arith.constant 0 : i32
    return %arg0, %c0_i32 : i32, i32
  }
  func.func @transform_1(%arg0: i32) -> (i32, i32) {
    %c0_i32 = arith.constant 0 : i32
    %c0_i32_0 = arith.constant 0 : i32
    %c0_i32_1 = arith.constant 0 : i32
    return %c0_i32, %c0_i32_0 : i32, i32
  }
  func.func @transform_2(%arg0: i32) -> (i32, i32) {
    %c0_i32 = arith.constant 0 : i32
    %c0_i32_0 = arith.constant 0 : i32
    %c0_i32_1 = arith.constant 0 : i32
    return %c0_i32, %c0_i32_0 : i32, i32
  }
  func.func @transform_3(%arg0: i32) -> (i32, i32) {
    %c0_i32 = arith.constant 0 : i32
    %c0_i32_0 = arith.constant 0 : i32
    %c0_i32_1 = arith.constant 0 : i32
    return %c0_i32, %c0_i32_0 : i32, i32
  }
  func.func @transform_4(%arg0: i32) -> (i32, i32) {
    %c0_i32 = arith.constant 0 : i32
    %c0_i32_0 = arith.constant 0 : i32
    return %arg0, %c0_i32 : i32, i32
  }
  func.func @transform_5(%arg0: i32) -> (i32, i32) {
    %c0_i32 = arith.constant 0 : i32
    %c0_i32_0 = arith.constant 0 : i32
    return %arg0, %c0_i32 : i32, i32
  }
  func.func @transform_6(%arg0: i32) -> (i32, i32) {
    %c0_i32 = arith.constant 0 : i32
    %c0_i32_0 = arith.constant 0 : i32
    return %arg0, %c0_i32 : i32, i32
  }
}

module attributes {stable_mosaic.version = 11 : i64} {
  func.func @kernel(%arg0: i32, %arg1: memref<16x384xbf16, #tpu.memory_space<vmem>>, %arg2: memref<1x384xf32, #tpu.memory_space<vmem>>, %arg3: memref<1x384xf32, #tpu.memory_space<vmem>>, %arg4: memref<384x128xbf16, #tpu.memory_space<vmem>>, %arg5: memref<16x128xbf16, #tpu.memory_space<vmem>>, %arg6: memref<8x128xf32, #tpu.memory_space<vmem>>, %arg7: memref<8x128xf32, #tpu.memory_space<vmem>>) attributes {dimension_semantics = [#tpu.dimension_semantics<parallel>], iteration_bounds = array<i64: 1>, scalar_prefetch = 0 : i64, scratch_operands = 0 : i64, tpu.core_type = #tpu.core_type<tc>, window_params = [{transform_indices = @transform_0, window_bounds = array<i64: 16, 384>}, {pipeline_mode = #tpu.pipeline_mode<synchronous>, transform_indices = @transform_1, window_bounds = array<i64: 1, 384>}, {pipeline_mode = #tpu.pipeline_mode<synchronous>, transform_indices = @transform_2, window_bounds = array<i64: 1, 384>}, {pipeline_mode = #tpu.pipeline_mode<synchronous>, transform_indices = @transform_3, window_bounds = array<i64: 384, 128>}, {transform_indices = @transform_4, window_bounds = array<i64: 16, 128>}, {transform_indices = @transform_5, window_bounds = array<i64: 8, 128>}, {transform_indices = @transform_6, window_bounds = array<i64: 8, 128>}]} {
    %c0 = arith.constant 0 : index
    %c0_0 = arith.constant 0 : index
    %0 = vector.load %arg1[%c0, %c0_0] : memref<16x384xbf16, #tpu.memory_space<vmem>>, vector<16x384xbf16>
    %1 = arith.extf %0 : vector<16x384xbf16> to vector<16x384xf32>
    %c0_1 = arith.constant 0 : index
    %c0_2 = arith.constant 0 : index
    %2 = vector.load %arg2[%c0_1, %c0_2] : memref<1x384xf32, #tpu.memory_space<vmem>>, vector<1x384xf32>
    %3 = vector.broadcast %2 : vector<1x384xf32> to vector<16x384xf32>
    %4 = arith.mulf %1, %3 : vector<16x384xf32>
    %c0_3 = arith.constant 0 : index
    %c0_4 = arith.constant 0 : index
    %5 = vector.load %arg3[%c0_3, %c0_4] : memref<1x384xf32, #tpu.memory_space<vmem>>, vector<1x384xf32>
    %6 = vector.broadcast %5 : vector<1x384xf32> to vector<16x384xf32>
    %7 = arith.addf %4, %6 : vector<16x384xf32>
    %cst = arith.constant 0.000000e+00 : f32
    %8 = vector.broadcast %cst : f32 to vector<16x384xf32>
    %9 = arith.cmpf oge, %7, %8 : vector<16x384xf32>
    %cst_5 = arith.constant 2.000000e-01 : f32
    %10 = vector.broadcast %cst_5 : f32 to vector<16x384xf32>
    %11 = arith.mulf %10, %7 : vector<16x384xf32>
    %12 = arith.select %9, %7, %11 : vector<16x384xi1>, vector<16x384xf32>
    %c16_i32 = arith.constant 16 : i32
    %13 = arith.muli %arg0, %c16_i32 : i32
    %14 = tpu.iota {dimensions = array<i32: 0>} : vector<16x384xi32>
    %15 = vector.broadcast %13 : i32 to vector<16x384xi32>
    %16 = arith.addi %15, %14 : vector<16x384xi32>
    %c8_i32 = arith.constant 8 : i32
    %17 = vector.broadcast %c8_i32 : i32 to vector<16x384xi32>
    %18 = arith.cmpi slt, %16, %17 : vector<16x384xi32>
    %cst_6 = arith.constant 0.000000e+00 : f32
    %19 = vector.broadcast %cst_6 : f32 to vector<16x384xf32>
    %20 = arith.select %18, %12, %19 : vector<16x384xi1>, vector<16x384xf32>
    %21 = arith.truncf %20 : vector<16x384xf32> to vector<16x384xbf16>
    %c0_7 = arith.constant 0 : index
    %c0_8 = arith.constant 0 : index
    %22 = vector.load %arg4[%c0_7, %c0_8] : memref<384x128xbf16, #tpu.memory_space<vmem>>, vector<384x128xbf16>
    %cst_9 = arith.constant dense<0.000000e+00> : vector<16x128xf32>
    %23 = tpu.matmul %21, %22, %cst_9 {dimension_numbers = #tpu.dot_dimension_numbers<[1], [0], [0], [1], [0, 0, 1, 1], [], []>} : vector<16x384xbf16>, vector<384x128xbf16>, vector<16x128xf32> -> vector<16x128xf32>
    %24 = arith.truncf %23 : vector<16x128xf32> to vector<16x128xbf16>
    %c0_10 = arith.constant 0 : index
    %c0_11 = arith.constant 0 : index
    %25 = vector.load %arg5[%c0_10, %c0_11] : memref<16x128xbf16, #tpu.memory_space<vmem>>, vector<16x128xbf16>
    tpu.vector_store %arg5[%c0_10, %c0_11], %24 {strides = array<i32>} : memref<16x128xbf16, #tpu.memory_space<vmem>>, vector<16x128xbf16>,
    %cst_12 = arith.constant dense<0.000000e+00> : vector<128xf32>
    %26 = vector.multi_reduction <add>, %23, %cst_12 [0] : vector<16x128xf32> to vector<128xf32>
    %27 = vector.shape_cast %26 : vector<128xf32> to vector<1x128xf32>
    %28 = arith.mulf %23, %23 : vector<16x128xf32>
    %cst_13 = arith.constant dense<0.000000e+00> : vector<128xf32>
    %29 = vector.multi_reduction <add>, %28, %cst_13 [0] : vector<16x128xf32> to vector<128xf32>
    %30 = vector.shape_cast %29 : vector<128xf32> to vector<1x128xf32>
    %31 = tpu.iota {dimensions = array<i32: 0>} : vector<8x128xi32>
    %c0_i32 = arith.constant 0 : i32
    %32 = vector.broadcast %c0_i32 : i32 to vector<8x128xi32>
    %33 = arith.cmpi eq, %31, %32 : vector<8x128xi32>
    %cst_14 = arith.constant 0.000000e+00 : f32
    %34 = vector.shape_cast %27 : vector<1x128xf32> to vector<1x128xf32>
    %35 = vector.broadcast %34 : vector<1x128xf32> to vector<8x128xf32>
    %36 = vector.broadcast %cst_14 : f32 to vector<8x128xf32>
    %37 = arith.select %33, %35, %36 : vector<8x128xi1>, vector<8x128xf32>
    %c0_15 = arith.constant 0 : index
    %c0_16 = arith.constant 0 : index
    %38 = vector.load %arg6[%c0_15, %c0_16] : memref<8x128xf32, #tpu.memory_space<vmem>>, vector<8x128xf32>
    tpu.vector_store %arg6[%c0_15, %c0_16], %37 {strides = array<i32>} : memref<8x128xf32, #tpu.memory_space<vmem>>, vector<8x128xf32>,
    %c0_i32_17 = arith.constant 0 : i32
    %39 = vector.broadcast %c0_i32_17 : i32 to vector<8x128xi32>
    %40 = arith.cmpi eq, %31, %39 : vector<8x128xi32>
    %cst_18 = arith.constant 0.000000e+00 : f32
    %41 = vector.shape_cast %30 : vector<1x128xf32> to vector<1x128xf32>
    %42 = vector.broadcast %41 : vector<1x128xf32> to vector<8x128xf32>
    %43 = vector.broadcast %cst_18 : f32 to vector<8x128xf32>
    %44 = arith.select %40, %42, %43 : vector<8x128xi1>, vector<8x128xf32>
    %c0_19 = arith.constant 0 : index
    %c0_20 = arith.constant 0 : index
    %45 = vector.load %arg7[%c0_19, %c0_20] : memref<8x128xf32, #tpu.memory_space<vmem>>, vector<8x128xf32>
    tpu.vector_store %arg7[%c0_19, %c0_20], %44 {strides = array<i32>} : memref<8x128xf32, #tpu.memory_space<vmem>>, vector<8x128xf32>,
    return
  }
  func.func @transform_0(%arg0: i32) -> (i32, i32) {
    %c0_i32 = arith.constant 0 : i32
    %c0_i32_0 = arith.constant 0 : i32
    return %arg0, %c0_i32 : i32, i32
  }
  func.func @transform_1(%arg0: i32) -> (i32, i32) {
    %c0_i32 = arith.constant 0 : i32
    %c0_i32_0 = arith.constant 0 : i32
    %c0_i32_1 = arith.constant 0 : i32
    return %c0_i32, %c0_i32_0 : i32, i32
  }
  func.func @transform_2(%arg0: i32) -> (i32, i32) {
    %c0_i32 = arith.constant 0 : i32
    %c0_i32_0 = arith.constant 0 : i32
    %c0_i32_1 = arith.constant 0 : i32
    return %c0_i32, %c0_i32_0 : i32, i32
  }
  func.func @transform_3(%arg0: i32) -> (i32, i32) {
    %c0_i32 = arith.constant 0 : i32
    %c0_i32_0 = arith.constant 0 : i32
    %c0_i32_1 = arith.constant 0 : i32
    return %c0_i32, %c0_i32_0 : i32, i32
  }
  func.func @transform_4(%arg0: i32) -> (i32, i32) {
    %c0_i32 = arith.constant 0 : i32
    %c0_i32_0 = arith.constant 0 : i32
    return %arg0, %c0_i32 : i32, i32
  }
  func.func @transform_5(%arg0: i32) -> (i32, i32) {
    %c0_i32 = arith.constant 0 : i32
    %c0_i32_0 = arith.constant 0 : i32
    return %arg0, %c0_i32 : i32, i32
  }
  func.func @transform_6(%arg0: i32) -> (i32, i32) {
    %c0_i32 = arith.constant 0 : i32
    %c0_i32_0 = arith.constant 0 : i32
    return %arg0, %c0_i32 : i32, i32
  }
}

module attributes {stable_mosaic.version = 11 : i64} {
  func.func @kernel(%arg0: i32, %arg1: memref<16x384xbf16, #tpu.memory_space<vmem>>, %arg2: memref<1x384xf32, #tpu.memory_space<vmem>>, %arg3: memref<1x384xf32, #tpu.memory_space<vmem>>, %arg4: memref<384x128xbf16, #tpu.memory_space<vmem>>, %arg5: memref<16x128xbf16, #tpu.memory_space<vmem>>, %arg6: memref<8x128xf32, #tpu.memory_space<vmem>>, %arg7: memref<8x128xf32, #tpu.memory_space<vmem>>) attributes {dimension_semantics = [#tpu.dimension_semantics<parallel>], iteration_bounds = array<i64: 1>, scalar_prefetch = 0 : i64, scratch_operands = 0 : i64, tpu.core_type = #tpu.core_type<tc>, window_params = [{transform_indices = @transform_0, window_bounds = array<i64: 16, 384>}, {pipeline_mode = #tpu.pipeline_mode<synchronous>, transform_indices = @transform_1, window_bounds = array<i64: 1, 384>}, {pipeline_mode = #tpu.pipeline_mode<synchronous>, transform_indices = @transform_2, window_bounds = array<i64: 1, 384>}, {pipeline_mode = #tpu.pipeline_mode<synchronous>, transform_indices = @transform_3, window_bounds = array<i64: 384, 128>}, {transform_indices = @transform_4, window_bounds = array<i64: 16, 128>}, {transform_indices = @transform_5, window_bounds = array<i64: 8, 128>}, {transform_indices = @transform_6, window_bounds = array<i64: 8, 128>}]} {
    %c0 = arith.constant 0 : index
    %c0_0 = arith.constant 0 : index
    %0 = vector.load %arg1[%c0, %c0_0] : memref<16x384xbf16, #tpu.memory_space<vmem>>, vector<16x384xbf16>
    %1 = arith.extf %0 : vector<16x384xbf16> to vector<16x384xf32>
    %c0_1 = arith.constant 0 : index
    %c0_2 = arith.constant 0 : index
    %2 = vector.load %arg2[%c0_1, %c0_2] : memref<1x384xf32, #tpu.memory_space<vmem>>, vector<1x384xf32>
    %3 = vector.broadcast %2 : vector<1x384xf32> to vector<16x384xf32>
    %4 = arith.mulf %1, %3 : vector<16x384xf32>
    %c0_3 = arith.constant 0 : index
    %c0_4 = arith.constant 0 : index
    %5 = vector.load %arg3[%c0_3, %c0_4] : memref<1x384xf32, #tpu.memory_space<vmem>>, vector<1x384xf32>
    %6 = vector.broadcast %5 : vector<1x384xf32> to vector<16x384xf32>
    %7 = arith.addf %4, %6 : vector<16x384xf32>
    %cst = arith.constant 0.000000e+00 : f32
    %8 = vector.broadcast %cst : f32 to vector<16x384xf32>
    %9 = arith.cmpf oge, %7, %8 : vector<16x384xf32>
    %cst_5 = arith.constant 2.000000e-01 : f32
    %10 = vector.broadcast %cst_5 : f32 to vector<16x384xf32>
    %11 = arith.mulf %10, %7 : vector<16x384xf32>
    %12 = arith.select %9, %7, %11 : vector<16x384xi1>, vector<16x384xf32>
    %c16_i32 = arith.constant 16 : i32
    %13 = arith.muli %arg0, %c16_i32 : i32
    %14 = tpu.iota {dimensions = array<i32: 0>} : vector<16x384xi32>
    %15 = vector.broadcast %13 : i32 to vector<16x384xi32>
    %16 = arith.addi %15, %14 : vector<16x384xi32>
    %c2_i32 = arith.constant 2 : i32
    %17 = vector.broadcast %c2_i32 : i32 to vector<16x384xi32>
    %18 = arith.cmpi slt, %16, %17 : vector<16x384xi32>
    %cst_6 = arith.constant 0.000000e+00 : f32
    %19 = vector.broadcast %cst_6 : f32 to vector<16x384xf32>
    %20 = arith.select %18, %12, %19 : vector<16x384xi1>, vector<16x384xf32>
    %21 = arith.truncf %20 : vector<16x384xf32> to vector<16x384xbf16>
    %c0_7 = arith.constant 0 : index
    %c0_8 = arith.constant 0 : index
    %22 = vector.load %arg4[%c0_7, %c0_8] : memref<384x128xbf16, #tpu.memory_space<vmem>>, vector<384x128xbf16>
    %cst_9 = arith.constant dense<0.000000e+00> : vector<16x128xf32>
    %23 = tpu.matmul %21, %22, %cst_9 {dimension_numbers = #tpu.dot_dimension_numbers<[1], [0], [0], [1], [0, 0, 1, 1], [], []>} : vector<16x384xbf16>, vector<384x128xbf16>, vector<16x128xf32> -> vector<16x128xf32>
    %24 = arith.truncf %23 : vector<16x128xf32> to vector<16x128xbf16>
    %c0_10 = arith.constant 0 : index
    %c0_11 = arith.constant 0 : index
    %25 = vector.load %arg5[%c0_10, %c0_11] : memref<16x128xbf16, #tpu.memory_space<vmem>>, vector<16x128xbf16>
    tpu.vector_store %arg5[%c0_10, %c0_11], %24 {strides = array<i32>} : memref<16x128xbf16, #tpu.memory_space<vmem>>, vector<16x128xbf16>,
    %cst_12 = arith.constant dense<0.000000e+00> : vector<128xf32>
    %26 = vector.multi_reduction <add>, %23, %cst_12 [0] : vector<16x128xf32> to vector<128xf32>
    %27 = vector.shape_cast %26 : vector<128xf32> to vector<1x128xf32>
    %28 = arith.mulf %23, %23 : vector<16x128xf32>
    %cst_13 = arith.constant dense<0.000000e+00> : vector<128xf32>
    %29 = vector.multi_reduction <add>, %28, %cst_13 [0] : vector<16x128xf32> to vector<128xf32>
    %30 = vector.shape_cast %29 : vector<128xf32> to vector<1x128xf32>
    %31 = tpu.iota {dimensions = array<i32: 0>} : vector<8x128xi32>
    %c0_i32 = arith.constant 0 : i32
    %32 = vector.broadcast %c0_i32 : i32 to vector<8x128xi32>
    %33 = arith.cmpi eq, %31, %32 : vector<8x128xi32>
    %cst_14 = arith.constant 0.000000e+00 : f32
    %34 = vector.shape_cast %27 : vector<1x128xf32> to vector<1x128xf32>
    %35 = vector.broadcast %34 : vector<1x128xf32> to vector<8x128xf32>
    %36 = vector.broadcast %cst_14 : f32 to vector<8x128xf32>
    %37 = arith.select %33, %35, %36 : vector<8x128xi1>, vector<8x128xf32>
    %c0_15 = arith.constant 0 : index
    %c0_16 = arith.constant 0 : index
    %38 = vector.load %arg6[%c0_15, %c0_16] : memref<8x128xf32, #tpu.memory_space<vmem>>, vector<8x128xf32>
    tpu.vector_store %arg6[%c0_15, %c0_16], %37 {strides = array<i32>} : memref<8x128xf32, #tpu.memory_space<vmem>>, vector<8x128xf32>,
    %c0_i32_17 = arith.constant 0 : i32
    %39 = vector.broadcast %c0_i32_17 : i32 to vector<8x128xi32>
    %40 = arith.cmpi eq, %31, %39 : vector<8x128xi32>
    %cst_18 = arith.constant 0.000000e+00 : f32
    %41 = vector.shape_cast %30 : vector<1x128xf32> to vector<1x128xf32>
    %42 = vector.broadcast %41 : vector<1x128xf32> to vector<8x128xf32>
    %43 = vector.broadcast %cst_18 : f32 to vector<8x128xf32>
    %44 = arith.select %40, %42, %43 : vector<8x128xi1>, vector<8x128xf32>
    %c0_19 = arith.constant 0 : index
    %c0_20 = arith.constant 0 : index
    %45 = vector.load %arg7[%c0_19, %c0_20] : memref<8x128xf32, #tpu.memory_space<vmem>>, vector<8x128xf32>
    tpu.vector_store %arg7[%c0_19, %c0_20], %44 {strides = array<i32>} : memref<8x128xf32, #tpu.memory_space<vmem>>, vector<8x128xf32>,
    return
  }
  func.func @transform_0(%arg0: i32) -> (i32, i32) {
    %c0_i32 = arith.constant 0 : i32
    %c0_i32_0 = arith.constant 0 : i32
    return %arg0, %c0_i32 : i32, i32
  }
  func.func @transform_1(%arg0: i32) -> (i32, i32) {
    %c0_i32 = arith.constant 0 : i32
    %c0_i32_0 = arith.constant 0 : i32
    %c0_i32_1 = arith.constant 0 : i32
    return %c0_i32, %c0_i32_0 : i32, i32
  }
  func.func @transform_2(%arg0: i32) -> (i32, i32) {
    %c0_i32 = arith.constant 0 : i32
    %c0_i32_0 = arith.constant 0 : i32
    %c0_i32_1 = arith.constant 0 : i32
    return %c0_i32, %c0_i32_0 : i32, i32
  }
  func.func @transform_3(%arg0: i32) -> (i32, i32) {
    %c0_i32 = arith.constant 0 : i32
    %c0_i32_0 = arith.constant 0 : i32
    %c0_i32_1 = arith.constant 0 : i32
    return %c0_i32, %c0_i32_0 : i32, i32
  }
  func.func @transform_4(%arg0: i32) -> (i32, i32) {
    %c0_i32 = arith.constant 0 : i32
    %c0_i32_0 = arith.constant 0 : i32
    return %arg0, %c0_i32 : i32, i32
  }
  func.func @transform_5(%arg0: i32) -> (i32, i32) {
    %c0_i32 = arith.constant 0 : i32
    %c0_i32_0 = arith.constant 0 : i32
    return %arg0, %c0_i32 : i32, i32
  }
  func.func @transform_6(%arg0: i32) -> (i32, i32) {
    %c0_i32 = arith.constant 0 : i32
    %c0_i32_0 = arith.constant 0 : i32
    return %arg0, %c0_i32 : i32, i32
  }
}

module attributes {stable_mosaic.version = 11 : i64} {
  func.func @_linear_bn_kernel(%arg0: i32, %arg1: memref<16x128xbf16, #tpu.memory_space<vmem>>, %arg2: memref<1x128xf32, #tpu.memory_space<vmem>>, %arg3: memref<1x128xf32, #tpu.memory_space<vmem>>, %arg4: memref<128x128xbf16, #tpu.memory_space<vmem>>, %arg5: memref<1x128xf32, #tpu.memory_space<vmem>>, %arg6: memref<16x128xf32, #tpu.memory_space<vmem>>) attributes {dimension_semantics = [#tpu.dimension_semantics<arbitrary>], iteration_bounds = array<i64: 1>, scalar_prefetch = 0 : i64, scratch_operands = 0 : i64, tpu.core_type = #tpu.core_type<tc>, window_params = [{pipeline_mode = #tpu.pipeline_mode<synchronous>, transform_indices = @transform_0, window_bounds = array<i64: 16, 128>}, {pipeline_mode = #tpu.pipeline_mode<synchronous>, transform_indices = @transform_1, window_bounds = array<i64: 1, 128>}, {pipeline_mode = #tpu.pipeline_mode<synchronous>, transform_indices = @transform_2, window_bounds = array<i64: 1, 128>}, {pipeline_mode = #tpu.pipeline_mode<synchronous>, transform_indices = @transform_3, window_bounds = array<i64: 128, 128>}, {pipeline_mode = #tpu.pipeline_mode<synchronous>, transform_indices = @transform_4, window_bounds = array<i64: 1, 128>}, {pipeline_mode = #tpu.pipeline_mode<synchronous>, transform_indices = @transform_5, window_bounds = array<i64: 16, 128>}]} {
    %c0 = arith.constant 0 : index
    %c0_0 = arith.constant 0 : index
    %0 = vector.load %arg1[%c0, %c0_0] : memref<16x128xbf16, #tpu.memory_space<vmem>>, vector<16x128xbf16>
    %1 = arith.extf %0 : vector<16x128xbf16> to vector<16x128xf32>
    %c0_1 = arith.constant 0 : index
    %c0_2 = arith.constant 0 : index
    %2 = vector.load %arg2[%c0_1, %c0_2] : memref<1x128xf32, #tpu.memory_space<vmem>>, vector<1x128xf32>
    %3 = vector.broadcast %2 : vector<1x128xf32> to vector<16x128xf32>
    %4 = arith.mulf %1, %3 : vector<16x128xf32>
    %c0_3 = arith.constant 0 : index
    %c0_4 = arith.constant 0 : index
    %5 = vector.load %arg3[%c0_3, %c0_4] : memref<1x128xf32, #tpu.memory_space<vmem>>, vector<1x128xf32>
    %6 = vector.broadcast %5 : vector<1x128xf32> to vector<16x128xf32>
    %7 = arith.addf %4, %6 : vector<16x128xf32>
    %cst = arith.constant 0.000000e+00 : f32
    %8 = vector.broadcast %cst : f32 to vector<16x128xf32>
    %9 = arith.cmpf oge, %7, %8 : vector<16x128xf32>
    %cst_5 = arith.constant 2.000000e-01 : f32
    %10 = vector.broadcast %cst_5 : f32 to vector<16x128xf32>
    %11 = arith.mulf %10, %7 : vector<16x128xf32>
    %12 = arith.select %9, %7, %11 : vector<16x128xi1>, vector<16x128xf32>
    %13 = arith.truncf %12 : vector<16x128xf32> to vector<16x128xbf16>
    %c0_6 = arith.constant 0 : index
    %c0_7 = arith.constant 0 : index
    %14 = vector.load %arg4[%c0_6, %c0_7] : memref<128x128xbf16, #tpu.memory_space<vmem>>, vector<128x128xbf16>
    %cst_8 = arith.constant dense<0.000000e+00> : vector<16x128xf32>
    %15 = tpu.matmul %13, %14, %cst_8 {dimension_numbers = #tpu.dot_dimension_numbers<[1], [0], [0], [1], [0, 0, 1, 1], [], []>} : vector<16x128xbf16>, vector<128x128xbf16>, vector<16x128xf32> -> vector<16x128xf32>
    %c0_9 = arith.constant 0 : index
    %c0_10 = arith.constant 0 : index
    %16 = vector.load %arg5[%c0_9, %c0_10] : memref<1x128xf32, #tpu.memory_space<vmem>>, vector<1x128xf32>
    %17 = vector.broadcast %16 : vector<1x128xf32> to vector<16x128xf32>
    %18 = arith.addf %15, %17 : vector<16x128xf32>
    %c0_11 = arith.constant 0 : index
    %c0_12 = arith.constant 0 : index
    %19 = vector.load %arg6[%c0_11, %c0_12] : memref<16x128xf32, #tpu.memory_space<vmem>>, vector<16x128xf32>
    tpu.vector_store %arg6[%c0_11, %c0_12], %18 {strides = array<i32>} : memref<16x128xf32, #tpu.memory_space<vmem>>, vector<16x128xf32>,
    return
  }
  func.func @transform_0(%arg0: i32) -> (i32, i32) {
    %c0_i32 = arith.constant 0 : i32
    %c0_i32_0 = arith.constant 0 : i32
    %c0_i32_1 = arith.constant 0 : i32
    return %c0_i32, %c0_i32_0 : i32, i32
  }
  func.func @transform_1(%arg0: i32) -> (i32, i32) {
    %c0_i32 = arith.constant 0 : i32
    %c0_i32_0 = arith.constant 0 : i32
    %c0_i32_1 = arith.constant 0 : i32
    return %c0_i32, %c0_i32_0 : i32, i32
  }
  func.func @transform_2(%arg0: i32) -> (i32, i32) {
    %c0_i32 = arith.constant 0 : i32
    %c0_i32_0 = arith.constant 0 : i32
    %c0_i32_1 = arith.constant 0 : i32
    return %c0_i32, %c0_i32_0 : i32, i32
  }
  func.func @transform_3(%arg0: i32) -> (i32, i32) {
    %c0_i32 = arith.constant 0 : i32
    %c0_i32_0 = arith.constant 0 : i32
    %c0_i32_1 = arith.constant 0 : i32
    return %c0_i32, %c0_i32_0 : i32, i32
  }
  func.func @transform_4(%arg0: i32) -> (i32, i32) {
    %c0_i32 = arith.constant 0 : i32
    %c0_i32_0 = arith.constant 0 : i32
    %c0_i32_1 = arith.constant 0 : i32
    return %c0_i32, %c0_i32_0 : i32, i32
  }
  func.func @transform_5(%arg0: i32) -> (i32, i32) {
    %c0_i32 = arith.constant 0 : i32
    %c0_i32_0 = arith.constant 0 : i32
    %c0_i32_1 = arith.constant 0 : i32
    return %c0_i32, %c0_i32_0 : i32, i32
  }
}

</mosaic_0001>

<bundles_post_ra>
// kernel: _lambda_.11
= control target key start
LH: loop header
LB: loop body
LE: loop exit
PB: predicated region body
PF: predicated region fallthrough
CT: control target
= control target key end

     0   :  { %s1699_s21 = smov 0   ;;  %s2114_s0 = inlined_call_operand.vmem [shape: bf16[2048,128], index: 0, kind: input, shape index: {}]   ;;  %s2115_s1 = inlined_call_operand.vmem [shape: f32[1,128], index: 1, kind: input, shape index: {}, may-alias: {1,2}]   ;;  %s2116_s2 = inlined_call_operand.vmem [shape: f32[1,128], index: 2, kind: input, shape index: {}, may-alias: {1,2}]   ;;  %s2117_s3 = inlined_call_operand.vmem [shape: bf16[128,128], index: 3, kind: input, shape index: {}]   ;;  %s2118_s4 = inlined_call_operand.vmem [shape: bf16[2048,128], index: 4, kind: output, shape index: {0}]   ;;  %s2119_s5 = inlined_call_operand.vmem [shape: f32[32,128], index: 5, kind: output, shape index: {1}]   ;;  %s2120_s6 = inlined_call_operand.vmem [shape: f32[32,128], index: 6, kind: output, shape index: {2}]  }
   0x1 LB: > { %s1705_s1 = sadd.s32 4294967295, %s1662_s21   ;;  %p1224_p0 = scmp.ge.s32.totalorder %s1662_s21, 1  ;;  %s1662_s21 = sphi %s1699_s21, %s17_s21  }
   0x2   : > { %p218_p1 = scmp.lt.s32.totalorder %s1662_s21, 5 }
   0x4   : > { %p219_p2 = pnand %p1224_p0, %p218_p1 }
   0x5   : > { %s1225_s29 = sshll.u32 (!%p219_p2), %s1705_s1, 6  ;;  %p268_p4 = scmp.lt.s32.totalorder (!%p219_p2), %s1705_s1, 3 }
   0x6   : > { %222 = sbr.rel (%p219_p2) target bundleno = 403 (0x193), region = 36  ;;  %p257_p3 = scmp.lt.s32.totalorder (!%p219_p2), %s1225_s29, 255 }
   0xb   : > { %v1432_v0 = vld [vmem:[%s2117_s3 + $0x38] sm:$0xff]  ;;  %v1431_v1 = vld [vmem:[%s2117_s3 + $0x30] sm:$0xff]  ;;  %v1430_v2 = vld [vmem:[%s2117_s3 + $0x28] sm:$0xff]  ;;  %s2122_s29 = smov (!%p257_p3, %s1225_s29), 255  ;;  %s2124_s1 = smov (!%p268_p4, %s1705_s1), 3 }
   0xc   : > { %596 = vmatpush.bf16.msra.mxu0 %v1432_v0  ;;  %1624 = vmatpush.bf16.msra.mxu1 %v1432_v0  ;;  %v1429_v3 = vld [vmem:[%s2117_s3 + $0x20] sm:$0xff]  ;;  %v1428_v4 = vld [vmem:[%s2117_s3 + $0x18] sm:$0xff]  ;;  %v1427_v5 = vld [vmem:[%s2117_s3 + $0x10] sm:$0xff]  ;;  %s1226_s12 = sshll.u32 %s2122_s29, 2  ;;  %s1229_s2 = sshll.u32 %s2124_s1, 3 }
   0xd   : > { %1625 = vmatpush.bf16.msra.mxu2 %v1432_v0  ;;  %1626 = vmatpush.bf16.msra.mxu3 %v1432_v0  ;;  %v1426_v6 = vld [vmem:[%s2117_s3 + $0x8] sm:$0xff]  ;;  %v1425_v7 = vld [vmem:[%s2117_s3] sm:$0xff]  ;;  %s1742_s17 = scalar_lea.vmem %s2114_s0, %s1226_s12  ;;  %s1781_s20 = scalar_lea.vmem %s2118_s4, %s1226_s12 }
   0xe   : > { %v1393_v8 = vld [vmem:[%s1742_s17] sm:$0xff]  ;;  %v1394_v10 = vld [vmem:[%s1742_s17 + $0x8] sm:$0xff]  ;;  %v1395_v13 = vld [vmem:[%s1742_s17 + $0x10] sm:$0xff]  ;;  %s271_s24 = scalar_lea.vmem %s2119_s5, %s1229_s2  ;;  %s275_s27 = scalar_lea.vmem %s2120_s6, %s1229_s2 }
   0xf   : > { %v1401_v9 = vld [vmem:[%s1742_s17 + $0x40] sm:$0xff]  ;;  %v1402_v11 = vld [vmem:[%s1742_s17 + $0x48] sm:$0xff]  ;;  %v1403_v14 = vld [vmem:[%s1742_s17 + $0x50] sm:$0xff] }
  0x10   : > { %597 = vmatpush.bf16.msra.mxu0 %v1431_v1  ;;  %1627 = vmatpush.bf16.msra.mxu1 %v1431_v1  ;;  %v1409_v12 = vld [vmem:[%s1742_s17 + $0x80] sm:$0xff]  ;;  %v1410_v15 = vld [vmem:[%s1742_s17 + $0x88] sm:$0xff]  ;;  %v1396_v16 = vld [vmem:[%s1742_s17 + $0x18] sm:$0xff] }
  0x11   : > { %1628 = vmatpush.bf16.msra.mxu2 %v1431_v1  ;;  %1629 = vmatpush.bf16.msra.mxu3 %v1431_v1  ;;  %v1404_v17 = vld [vmem:[%s1742_s17 + $0x58] sm:$0xff]  ;;  %v1411_v18 = vld [vmem:[%s1742_s17 + $0x90] sm:$0xff]  ;;  %v1417_v19 = vld [vmem:[%s1742_s17 + $0xc0] sm:$0xff] }
  0x12   : > { %v1397_v20 = vld [vmem:[%s1742_s17 + $0x20] sm:$0xff]  ;;  %v1412_v22 = vld [vmem:[%s1742_s17 + $0x98] sm:$0xff]  ;;  %v1418_v23 = vld [vmem:[%s1742_s17 + $0xc8] sm:$0xff] }
  0x13   : > { %v1405_v21 = vld [vmem:[%s1742_s17 + $0x60] sm:$0xff]  ;;  %v1398_v24 = vld [vmem:[%s1742_s17 + $0x28] sm:$0xff]  ;;  %v1419_v27 = vld [vmem:[%s1742_s17 + $0xd0] sm:$0xff] }
  0x14   : > { %598 = vmatpush.bf16.msra.mxu0 %v1430_v2  ;;  %1630 = vmatpush.bf16.msra.mxu1 %v1430_v2  ;;  %v1406_v25 = vld [vmem:[%s1742_s17 + $0x68] sm:$0xff]  ;;  %v1413_v26 = vld [vmem:[%s1742_s17 + $0xa0] sm:$0xff]  ;;  %v1399_v28 = vld [vmem:[%s1742_s17 + $0x30] sm:$0xff] }
  0x15   : > { %1631 = vmatpush.bf16.msra.mxu2 %v1430_v2  ;;  %1632 = vmatpush.bf16.msra.mxu3 %v1430_v2  ;;  %v1407_v29 = vld [vmem:[%s1742_s17 + $0x70] sm:$0xff]  ;;  %v1414_v30 = vld [vmem:[%s1742_s17 + $0xa8] sm:$0xff]  ;;  %v1420_v31 = vld [vmem:[%s1742_s17 + $0xd8] sm:$0xff] }
  0x16   : > { %v1400_v32 = vld [vmem:[%s1742_s17 + $0x38] sm:$0xff]  ;;  %v1415_v34 = vld [vmem:[%s1742_s17 + $0xb0] sm:$0xff]  ;;  %v1421_v35 = vld [vmem:[%s1742_s17 + $0xe0] sm:$0xff] }
  0x17   : > { %v1408_v33 = vld [vmem:[%s1742_s17 + $0x78] sm:$0xff]  ;;  %v1422_v39 = vld [vmem:[%s1742_s17 + $0xe8] sm:$0xff]  ;;  %v1423_v53 = vld [vmem:[%s1742_s17 + $0xf0] sm:$0xff] }
  0x18   : > { %599 = vmatpush.bf16.msra.mxu0 %v1429_v3  ;;  %1633 = vmatpush.bf16.msra.mxu1 %v1429_v3  ;;  %v1416_v38 = vld [vmem:[%s1742_s17 + $0xb8] sm:$0xff] }
  0x19   : > { %1634 = vmatpush.bf16.msra.mxu2 %v1429_v3  ;;  %1635 = vmatpush.bf16.msra.mxu3 %v1429_v3 }
  0x1c   : > { %600 = vmatpush.bf16.msra.mxu0 %v1428_v4  ;;  %1636 = vmatpush.bf16.msra.mxu1 %v1428_v4 }
  0x1d   : > { %1637 = vmatpush.bf16.msra.mxu2 %v1428_v4  ;;  %1638 = vmatpush.bf16.msra.mxu3 %v1428_v4 }
  0x20   : > { %601 = vmatpush.bf16.msra.mxu0 %v1427_v5  ;;  %1639 = vmatpush.bf16.msra.mxu1 %v1427_v5 }
  0x21   : > { %1640 = vmatpush.bf16.msra.mxu2 %v1427_v5  ;;  %1641 = vmatpush.bf16.msra.mxu3 %v1427_v5  ;;  %v1424_v5 = vld [vmem:[%s1742_s17 + $0xf8] sm:$0xff] }
  0x24   : > { %602 = vmatpush.bf16.msra.mxu0 %v1426_v6  ;;  %1642 = vmatpush.bf16.msra.mxu1 %v1426_v6 }
  0x25   : > { %1643 = vmatpush.bf16.msra.mxu2 %v1426_v6  ;;  %1644 = vmatpush.bf16.msra.mxu3 %v1426_v6 }
  0x28   : > { %603 = vmatpush.bf16.msra.mxu0 %v1425_v7  ;;  %1645 = vmatpush.bf16.msra.mxu1 %v1425_v7 }
  0x29   : > { %1646 = vmatpush.bf16.msra.mxu2 %v1425_v7  ;;  %1647 = vmatpush.bf16.msra.mxu3 %v1425_v7 }
  0x2b   : > { %604 = vmatmul.bf16.vlgmr.msra.gmra.mxu0 %v1393_v8  ;;  %644 = vmatmul.bf16.vlgmr.msra.gmra.mxu1 %v1401_v9 }
  0x2c   : > { %684 = vmatmul.bf16.vlgmr.msra.gmra.mxu2 %v1409_v12  ;;  %724 = vmatmul.bf16.vlgmr.msra.gmra.mxu3 %v1417_v19 }
  0x3b   : > { %609 = vmatmul.bf16.gmra.mxu0 %v1394_v10  ;;  %649 = vmatmul.bf16.gmra.mxu1 %v1402_v11 }
  0x3c   : > { %689 = vmatmul.bf16.gmra.mxu2 %v1410_v15  ;;  %729 = vmatmul.bf16.gmra.mxu3 %v1418_v23 }
  0x4b   : > { %614 = vmatmul.bf16.gmra.mxu0 %v1395_v13  ;;  %654 = vmatmul.bf16.gmra.mxu1 %v1403_v14 }
  0x4c   : > { %694 = vmatmul.bf16.gmra.mxu2 %v1411_v18  ;;  %734 = vmatmul.bf16.gmra.mxu3 %v1419_v27 }
  0x5b   : > { %619 = vmatmul.bf16.gmra.mxu0 %v1396_v16  ;;  %659 = vmatmul.bf16.gmra.mxu1 %v1404_v17 }
  0x5c   : > { %699 = vmatmul.bf16.gmra.mxu2 %v1412_v22  ;;  %739 = vmatmul.bf16.gmra.mxu3 %v1420_v31 }
  0x6b   : > { %624 = vmatmul.bf16.gmra.mxu0 %v1397_v20  ;;  %664 = vmatmul.bf16.gmra.mxu1 %v1405_v21 }
  0x6c   : > { %704 = vmatmul.bf16.gmra.mxu2 %v1413_v26  ;;  %744 = vmatmul.bf16.gmra.mxu3 %v1421_v35 }
  0x7b   : > { %629 = vmatmul.bf16.gmra.mxu0 %v1398_v24  ;;  %669 = vmatmul.bf16.gmra.mxu1 %v1406_v25 }
  0x7c   : > { %709 = vmatmul.bf16.gmra.mxu2 %v1414_v30  ;;  %749 = vmatmul.bf16.gmra.mxu3 %v1422_v39 }
  0x8b   : > { %634 = vmatmul.bf16.gmra.mxu0 %v1399_v28  ;;  %674 = vmatmul.bf16.gmra.mxu1 %v1407_v29 }
  0x8c   : > { %714 = vmatmul.bf16.gmra.mxu2 %v1415_v34  ;;  %754 = vmatmul.bf16.gmra.mxu3 %v1423_v53 }
  0x9b   : > { %639 = vmatmul.bf16.gmra.mxu0 %v1400_v32  ;;  %679 = vmatmul.bf16.gmra.mxu1 %v1408_v33 }
  0x9c   : > { %719 = vmatmul.bf16.gmra.mxu2 %v1416_v38  ;;  %759 = vmatmul.bf16.gmra.mxu3 %v1424_v5 }
  0xa8   : > { %v605_v36 = vpop.f32.mrf.mxu0  ;;  %v1772_v37 = vpop.f32.mrf.mxu1 }
  0xa9   : > { %v962_v40 = vmul.f32 %v605_v36, %v605_v36 }
  0xaf   : > { %v1796_v60 = vpop.f32.mrf.mxu2  ;;  %v1833_v20 = vpop.f32.mrf.mxu3 }
  0xb0   : > { %v607_v41 = vpop.f32.mrf.mxu0  ;;  %v1783_v42 = vpop.f32.mrf.mxu1 }
  0xb1   : > { %v1436_v43 = vpack.c.bf16 %v607_v41, %v605_v36  ;;  %v893_v44 = vadd.f32 %v607_v41, %v605_v36  ;;  %v963_v45 = vmul.f32 %v607_v41, %v607_v41  ;;  %v1476_v46 = vpack.c.bf16 %v1783_v42, %v1772_v37 }
  0xb3   : > { %1437 = vst [vmem:[%s1781_s20] sm:$0xff] %v1436_v43   ;;  %v1026_v47 = vadd.f32 %v963_v45, %v962_v40 }
  0xb4   : > { %1600 = vst [vmem:[%s1781_s20 + $0x40] sm:$0xff] %v1476_v46  }
  0xb7   : > { %v1804_v2 = vpop.f32.mrf.mxu2  ;;  %v1841_v24 = vpop.f32.mrf.mxu3 }
  0xb8   : > { %v610_v48 = vpop.f32.mrf.mxu0  ;;  %v1789_v49 = vpop.f32.mrf.mxu1  ;;  %v1516_v3 = vpack.c.bf16 %v1804_v2, %v1796_v60  ;;  %v1556_v26 = vpack.c.bf16 %v1841_v24, %v1833_v20 }
  0xb9   : > { %v894_v50 = vadd.f32 %v893_v44, %v610_v48  ;;  %v964_v51 = vmul.f32 %v610_v48, %v610_v48 }
  0xba   : > { %1608 = vst [vmem:[%s1781_s20 + $0x80] sm:$0xff] %v1516_v3  }
  0xbb   : > { %v1027_v52 = vadd.f32 %v1026_v47, %v964_v51  ;;  %1616 = vst [vmem:[%s1781_s20 + $0xc0] sm:$0xff] %v1556_v26  }
  0xbf   : > { %v1816_v10 = vpop.f32.mrf.mxu2  ;;  %v1855_v32 = vpop.f32.mrf.mxu3 }
  0xc0   : > { %v612_v54 = vpop.f32.mrf.mxu0  ;;  %v1792_v55 = vpop.f32.mrf.mxu1 }
  0xc1   : > { %v1441_v56 = vpack.c.bf16 %v612_v54, %v610_v48  ;;  %v895_v57 = vadd.f32 %v894_v50, %v612_v54  ;;  %v965_v58 = vmul.f32 %v612_v54, %v612_v54  ;;  %v1481_v59 = vpack.c.bf16 %v1792_v55, %v1789_v49 }
  0xc3   : > { %1593 = vst [vmem:[%s1781_s20 + $0x8] sm:$0xff] %v1441_v56   ;;  %v1028_v61 = vadd.f32 %v1027_v52, %v965_v58 }
  0xc4   : > { %1601 = vst [vmem:[%s1781_s20 + $0x48] sm:$0xff] %v1481_v59  }
  0xc7   : > { %v1822_v13 = vpop.f32.mrf.mxu2  ;;  %v1863_v36 = vpop.f32.mrf.mxu3 }
  0xc8   : > { %v615_v62 = vpop.f32.mrf.mxu0  ;;  %v1800_v63 = vpop.f32.mrf.mxu1  ;;  %v1521_v14 = vpack.c.bf16 %v1822_v13, %v1816_v10  ;;  %v1561_v39 = vpack.c.bf16 %v1863_v36, %v1855_v32 }
  0xc9   : > { %v1802_v0 = vadd.f32 %v895_v57, %v615_v62  ;;  %v966_v1 = vmul.f32 %v615_v62, %v615_v62 }
  0xca   : > { %1609 = vst [vmem:[%s1781_s20 + $0x88] sm:$0xff] %v1521_v14  }
  0xcb   : > { %v1808_v4 = vadd.f32 %v1028_v61, %v966_v1  ;;  %1617 = vst [vmem:[%s1781_s20 + $0xc8] sm:$0xff] %v1561_v39  }
  0xcf   : > { %v1831_v19 = vpop.f32.mrf.mxu2  ;;  %v1877_v46 = vpop.f32.mrf.mxu3 }
  0xd0   : > { %v617_v6 = vpop.f32.mrf.mxu0  ;;  %v1812_v7 = vpop.f32.mrf.mxu1 }
  0xd1   : > { %v1446_v8 = vpack.c.bf16 %v617_v6, %v615_v62  ;;  %v1486_v9 = vpack.c.bf16 %v1812_v7, %v1800_v63  ;;  %v967_v52 = vmul.f32 %v617_v6, %v617_v6  ;;  %v897_v57 = vadd.f32 %v1802_v0, %v617_v6 }
  0xd3   : > { %1594 = vst [vmem:[%s1781_s20 + $0x10] sm:$0xff] %v1446_v8   ;;  %v1030_v58 = vadd.f32 %v1808_v4, %v967_v52 }
  0xd4   : > { %1602 = vst [vmem:[%s1781_s20 + $0x50] sm:$0xff] %v1486_v9  }
  0xd7   : > { %v1839_v23 = vpop.f32.mrf.mxu2  ;;  %v1885_v51 = vpop.f32.mrf.mxu3 }
  0xd8   : > { %v620_v11 = vpop.f32.mrf.mxu0  ;;  %v1820_v12 = vpop.f32.mrf.mxu1  ;;  %v1526_v25 = vpack.c.bf16 %v1839_v23, %v1831_v19  ;;  %v1566_v54 = vpack.c.bf16 %v1885_v51, %v1877_v46 }
  0xd9   : > { %v968_v56 = vmul.f32 %v620_v11, %v620_v11  ;;  %v898_v61 = vadd.f32 %v897_v57, %v620_v11 }
  0xda   : > { %1610 = vst [vmem:[%s1781_s20 + $0x90] sm:$0xff] %v1526_v25  }
  0xdb   : > { %1618 = vst [vmem:[%s1781_s20 + $0xd0] sm:$0xff] %v1566_v54   ;;  %v1031_v62 = vadd.f32 %v1030_v58, %v968_v56 }
  0xdf   : > { %v1853_v31 = vpop.f32.mrf.mxu2  ;;  %v1901_v0 = vpop.f32.mrf.mxu3 }
  0xe0   : > { %v622_v15 = vpop.f32.mrf.mxu0  ;;  %v1827_v16 = vpop.f32.mrf.mxu1 }
  0xe1   : > { %v1451_v17 = vpack.c.bf16 %v622_v15, %v620_v11  ;;  %v1491_v18 = vpack.c.bf16 %v1827_v16, %v1820_v12  ;;  %v969_v59 = vmul.f32 %v622_v15, %v622_v15  ;;  %v899_v8 = vadd.f32 %v898_v61, %v622_v15 }
  0xe3   : > { %1595 = vst [vmem:[%s1781_s20 + $0x18] sm:$0xff] %v1451_v17   ;;  %v1032_v6 = vadd.f32 %v1031_v62, %v969_v59 }
  0xe4   : > { %1603 = vst [vmem:[%s1781_s20 + $0x58] sm:$0xff] %v1491_v18  }
  0xe7   : > { %v1861_v35 = vpop.f32.mrf.mxu2  ;;  %v1909_v54 = vpop.f32.mrf.mxu3 }
  0xe8   : > { %v625_v21 = vpop.f32.mrf.mxu0  ;;  %v1837_v22 = vpop.f32.mrf.mxu1  ;;  %v1531_v38 = vpack.c.bf16 %v1861_v35, %v1853_v31  ;;  %v1571_v57 = vpack.c.bf16 %v1909_v54, %v1901_v0 }
  0xe9   : > { %v970_v1 = vmul.f32 %v625_v21, %v625_v21  ;;  %v900_v4 = vadd.f32 %v899_v8, %v625_v21 }
  0xea   : > { %1611 = vst [vmem:[%s1781_s20 + $0x98] sm:$0xff] %v1531_v38  }
  0xeb   : > { %v1033_v11 = vadd.f32 %v1032_v6, %v970_v1  ;;  %1619 = vst [vmem:[%s1781_s20 + $0xd8] sm:$0xff] %v1571_v57  }
  0xef   : > { %v1875_v45 = vpop.f32.mrf.mxu2 }
  0xf0   : > { %v627_v27 = vpop.f32.mrf.mxu0  ;;  %v1849_v28 = vpop.f32.mrf.mxu1 }
  0xf1   : > { %v1456_v29 = vpack.c.bf16 %v627_v27, %v625_v21  ;;  %v1496_v30 = vpack.c.bf16 %v1849_v28, %v1837_v22  ;;  %v971_v18 = vmul.f32 %v627_v27, %v627_v27  ;;  %v901_v26 = vadd.f32 %v900_v4, %v627_v27 }
  0xf3   : > { %1596 = vst [vmem:[%s1781_s20 + $0x20] sm:$0xff] %v1456_v29   ;;  %v1034_v29 = vadd.f32 %v1033_v11, %v971_v18  ;;  %v1923_v11 = vpop.f32.mrf.mxu3 }
  0xf4   : > { %1604 = vst [vmem:[%s1781_s20 + $0x60] sm:$0xff] %v1496_v30  }
  0xf7   : > { %v1883_v50 = vpop.f32.mrf.mxu2 }
  0xf8   : > { %v630_v33 = vpop.f32.mrf.mxu0  ;;  %v1859_v34 = vpop.f32.mrf.mxu1  ;;  %v1536_v53 = vpack.c.bf16 %v1883_v50, %v1875_v45 }
  0xf9   : > { %v972_v25 = vmul.f32 %v630_v33, %v630_v33  ;;  %v902_v15 = vadd.f32 %v901_v26, %v630_v33 }
  0xfa   : > { %1612 = vst [vmem:[%s1781_s20 + $0xa0] sm:$0xff] %v1536_v53  }
  0xfb   : > { %v1035_v38 = vadd.f32 %v1034_v29, %v972_v25  ;;  %v979_v29 = vmul.f32 %v1783_v42, %v1783_v42 }
  0xff   : > { %v1899_v17 = vpop.f32.mrf.mxu2 }
 0x100   : > { %v632_v40 = vpop.f32.mrf.mxu0  ;;  %v1871_v41 = vpop.f32.mrf.mxu1 }
 0x101   : > { %v1461_v43 = vpack.c.bf16 %v632_v40, %v630_v33  ;;  %v1501_v44 = vpack.c.bf16 %v1871_v41, %v1859_v34  ;;  %v973_v30 = vmul.f32 %v632_v40, %v632_v40  ;;  %v903_v52 = vadd.f32 %v902_v15, %v632_v40 }
 0x103   : > { %1597 = vst [vmem:[%s1781_s20 + $0x28] sm:$0xff] %v1461_v43   ;;  %v1036_v21 = vadd.f32 %v1035_v38, %v973_v30  ;;  %v980_v38 = vmul.f32 %v1789_v49, %v1789_v49 }
 0x104   : > { %1605 = vst [vmem:[%s1781_s20 + $0x68] sm:$0xff] %v1501_v44  }
 0x107   : > { %v1907_v53 = vpop.f32.mrf.mxu2 }
 0x108   : > { %v635_v47 = vpop.f32.mrf.mxu0  ;;  %v1881_v48 = vpop.f32.mrf.mxu1  ;;  %v1541_v27 = vpack.c.bf16 %v1907_v53, %v1899_v17 }
 0x109   : > { %v974_v39 = vmul.f32 %v635_v47, %v635_v47  ;;  %v904_v33 = vadd.f32 %v903_v52, %v635_v47  ;;  %v981_v52 = vmul.f32 %v1792_v55, %v1792_v55 }
 0x10a   : > { %1613 = vst [vmem:[%s1781_s20 + $0xa8] sm:$0xff] %v1541_v27   ;;  %v1941_v27 = vpop.f32.mrf.mxu3 }
 0x10b   : > { %v1037_v58 = vadd.f32 %v1036_v21, %v974_v39  ;;  %v1576_v57 = vpack.c.bf16 %v1941_v27, %v1923_v11 }
 0x10d   : > { %1620 = vst [vmem:[%s1781_s20 + $0xe0] sm:$0xff] %v1576_v57  }
 0x110   : > { %v637_v3 = vpop.f32.mrf.mxu0  ;;  %v1895_v5 = vpop.f32.mrf.mxu1 }
 0x111   : > { %v1466_v9 = vpack.c.bf16 %v637_v3, %v635_v47  ;;  %v1506_v14 = vpack.c.bf16 %v1895_v5, %v1881_v48  ;;  %v975_v56 = vmul.f32 %v637_v3, %v637_v3  ;;  %v905_v61 = vadd.f32 %v904_v33, %v637_v3  ;;  %v1921_v47 = vpop.f32.mrf.mxu2 }
 0x112   : > { %v978_v3 = vmul.f32 %v1772_v37, %v1772_v37  ;;  %v991_v57 = vmul.f32 %v1895_v5, %v1895_v5 }
 0x113   : > { %1598 = vst [vmem:[%s1781_s20 + $0x30] sm:$0xff] %v1466_v9   ;;  %v1038_v40 = vadd.f32 %v1037_v58, %v975_v56 }
 0x114   : > { %1606 = vst [vmem:[%s1781_s20 + $0x70] sm:$0xff] %v1506_v14  }
 0x118   : > { %v640_v43 = vpop.f32.mrf.mxu0  ;;  %v1905_v44 = vpop.f32.mrf.mxu1 }
 0x119   : > { %v976_v59 = vmul.f32 %v640_v43, %v640_v43  ;;  %v906_v62 = vadd.f32 %v905_v61, %v640_v43  ;;  %v1939_v56 = vpop.f32.mrf.mxu2 }
 0x11b   : > { %v1039_v1 = vadd.f32 %v1038_v40, %v976_v59  ;;  %v984_v40 = vmul.f32 %v1820_v12, %v1820_v12 }
 0x120   : > { %v642_v8 = vpop.f32.mrf.mxu0  ;;  %v1917_v9 = vpop.f32.mrf.mxu1 }
 0x121   : > { %v1471_v14 = vpack.c.bf16 %v642_v8, %v640_v43  ;;  %v907_v6 = vadd.f32 %v906_v62, %v642_v8  ;;  %v977_v18 = vmul.f32 %v642_v8, %v642_v8  ;;  %v1511_v4 = vpack.c.bf16 %v1917_v9, %v1905_v44 }
 0x122   : > { %v985_v8 = vmul.f32 %v1827_v16, %v1827_v16 }
 0x123   : > { %1599 = vst [vmem:[%s1781_s20 + $0x38] sm:$0xff] %v1471_v14   ;;  %v908_v25 = vadd.f32 %v907_v6, %v1772_v37  ;;  %v1040_v26 = vadd.f32 %v1039_v1, %v977_v18  ;;  %v1961_v6 = vpop.f32.mrf.mxu2  ;;  %v1963_v18 = vpop.f32.mrf.mxu3 }
 0x124   : > { %1607 = vst [vmem:[%s1781_s20 + $0x78] sm:$0xff] %v1511_v4  }
 0x125   : > { %v909_v30 = vadd.f32 %v908_v25, %v1783_v42  ;;  %v1041_v15 = vadd.f32 %v1040_v26, %v978_v3  ;;  %v1546_v42 = vpack.c.bf16 %v1939_v56, %v1921_v47  ;;  %v987_v25 = vmul.f32 %v1849_v28, %v1849_v28 }
 0x127   : > { %v910_v39 = vadd.f32 %v909_v30, %v1789_v49  ;;  %v1042_v43 = vadd.f32 %v1041_v15, %v979_v29  ;;  %v982_v49 = vmul.f32 %v1800_v63, %v1800_v63  ;;  %1614 = vst [vmem:[%s1781_s20 + $0xb0] sm:$0xff] %v1546_v42   ;;  %v989_v15 = vmul.f32 %v1871_v41, %v1871_v41 }
 0x129   : > { %v911_v37 = vadd.f32 %v910_v39, %v1792_v55  ;;  %v1043_v21 = vadd.f32 %v1042_v43, %v980_v38  ;;  %v983_v55 = vmul.f32 %v1812_v7, %v1812_v7 }
 0x12b   : > { %v912_v33 = vadd.f32 %v911_v37, %v1800_v63  ;;  %v1044_v58 = vadd.f32 %v1043_v21, %v981_v52  ;;  %v1977_v39 = vpop.f32.mrf.mxu2  ;;  %v1979_v43 = vpop.f32.mrf.mxu3  ;;  %v990_v37 = vmul.f32 %v1881_v48, %v1881_v48 }
 0x12c   : > { %v1581_v52 = vpack.c.bf16 %v1979_v43, %v1963_v18 }
 0x12d   : > { %v913_v59 = vadd.f32 %v912_v33, %v1812_v7  ;;  %v1045_v61 = vadd.f32 %v1044_v58, %v982_v49  ;;  %v986_v7 = vmul.f32 %v1837_v22, %v1837_v22  ;;  %v992_v58 = vmul.f32 %v1905_v44, %v1905_v44 }
 0x12e   : > { %1621 = vst [vmem:[%s1781_s20 + $0xe8] sm:$0xff] %v1581_v52   ;;  %v1002_v52 = vmul.f32 %v1875_v45, %v1875_v45 }
 0x12f   : > { %v1046_v62 = vadd.f32 %v1045_v61, %v983_v55  ;;  %v914_v1 = vadd.f32 %v913_v59, %v1820_v12 }
 0x131   : > { %v915_v63 = vadd.f32 %v914_v1, %v1827_v16  ;;  %v1047_v14 = vadd.f32 %v1046_v62, %v984_v40  ;;  %v988_v16 = vmul.f32 %v1859_v34, %v1859_v34  ;;  %v994_v40 = vmul.f32 %v1796_v60, %v1796_v60 }
 0x132   : > { %v995_v1 = vmul.f32 %v1804_v2, %v1804_v2 }
 0x133   : > { %v916_v4 = vadd.f32 %v915_v63, %v1837_v22  ;;  %v1048_v3 = vadd.f32 %v1047_v14, %v985_v8  ;;  %v1999_v61 = vpop.f32.mrf.mxu3  ;;  %v996_v63 = vmul.f32 %v1816_v10, %v1816_v10 }
 0x135   : > { %v917_v12 = vadd.f32 %v916_v4, %v1849_v28  ;;  %v1049_v26 = vadd.f32 %v1048_v3, %v986_v7  ;;  %v1551_v28 = vpack.c.bf16 %v1977_v39, %v1961_v6  ;;  %v997_v7 = vmul.f32 %v1822_v13, %v1822_v13 }
 0x137   : > { %v918_v29 = vadd.f32 %v917_v12, %v1859_v34  ;;  %v1050_v30 = vadd.f32 %v1049_v26, %v987_v25  ;;  %1615 = vst [vmem:[%s1781_s20 + $0xb8] sm:$0xff] %v1551_v28  }
 0x139   : > { %v919_v22 = vadd.f32 %v918_v29, %v1871_v41  ;;  %v1051_v38 = vadd.f32 %v1050_v30, %v988_v16 }
 0x13b   : > { %v920_v34 = vadd.f32 %v919_v22, %v1881_v48  ;;  %v1052_v21 = vadd.f32 %v1051_v38, %v989_v15  ;;  %v993_v48 = vmul.f32 %v1917_v9, %v1917_v9  ;;  %v2013_v3 = vpop.f32.mrf.mxu3  ;;  %v1001_v22 = vmul.f32 %v1861_v35, %v1861_v35 }
 0x13c   : > { %v1586_v25 = vpack.c.bf16 %v2013_v3, %v1999_v61 }
 0x13d   : > { %v1053_v42 = vadd.f32 %v1052_v21, %v990_v37  ;;  %v921_v41 = vadd.f32 %v920_v34, %v1895_v5  ;;  %v1003_v37 = vmul.f32 %v1883_v50, %v1883_v50 }
 0x13e   : > { %1622 = vst [vmem:[%s1781_s20 + $0xf0] sm:$0xff] %v1586_v25  }
 0x13f   : > { %v1054_v49 = vadd.f32 %v1053_v42, %v991_v57  ;;  %v922_v33 = vadd.f32 %v921_v41, %v1905_v44  ;;  %v1004_v42 = vmul.f32 %v1899_v17, %v1899_v17 }
 0x141   : > { %v1055_v55 = vadd.f32 %v1054_v49, %v992_v58  ;;  %v923_v59 = vadd.f32 %v922_v33, %v1917_v9  ;;  %v1005_v49 = vmul.f32 %v1907_v53, %v1907_v53 }
 0x143   : > { %v924_v5 = vadd.f32 %v923_v59, %v1796_v60  ;;  %v1056_v62 = vadd.f32 %v1055_v55, %v993_v48  ;;  %v2030_v28 = vpop.f32.mrf.mxu3 }
 0x145   : > { %v925_v44 = vadd.f32 %v924_v5, %v1804_v2  ;;  %v1057_v8 = vadd.f32 %v1056_v62, %v994_v40  ;;  %v998_v2 = vmul.f32 %v1831_v19, %v1831_v19  ;;  %v1007_v40 = vmul.f32 %v1939_v56, %v1939_v56 }
 0x146   : > { %v1008_v62 = vmul.f32 %v1961_v6, %v1961_v6 }
 0x147   : > { %v926_v9 = vadd.f32 %v925_v44, %v1816_v10  ;;  %v1058_v14 = vadd.f32 %v1057_v8, %v995_v1  ;;  %v999_v10 = vmul.f32 %v1839_v23, %v1839_v23  ;;  %v1009_v8 = vmul.f32 %v1977_v39, %v1977_v39 }
 0x149   : > { %v927_v4 = vadd.f32 %v926_v9, %v1822_v13  ;;  %v1059_v60 = vadd.f32 %v1058_v14, %v996_v63  ;;  %v1000_v13 = vmul.f32 %v1853_v31, %v1853_v31 }
 0x14b   : > { %v928_v12 = vadd.f32 %v927_v4, %v1831_v19  ;;  %v1060_v26 = vadd.f32 %v1059_v60, %v997_v7  ;;  %v762_v33 = vpop.f32.mrf.mxu3 }
 0x14c   : > { %v1591_v58 = vpack.c.bf16 %v762_v33, %v2030_v28 }
 0x14d   : > { %v929_v16 = vadd.f32 %v928_v12, %v1839_v23  ;;  %v1061_v29 = vadd.f32 %v1060_v26, %v998_v2 }
 0x14e   : > { %1623 = vst [vmem:[%s1781_s20 + $0xf8] sm:$0xff] %v1591_v58   ;;  %v1025_v58 = vmul.f32 %v762_v33, %v762_v33 }
 0x14f   : > { %v1062_v30 = vadd.f32 %v1061_v29, %v999_v10  ;;  %v930_v15 = vadd.f32 %v929_v16, %v1853_v31 }
 0x151   : > { %v931_v38 = vadd.f32 %v930_v15, %v1861_v35  ;;  %v1063_v19 = vadd.f32 %v1062_v30, %v1000_v13 }
 0x153   : > { %v932_v23 = vadd.f32 %v931_v38, %v1875_v45  ;;  %v1064_v34 = vadd.f32 %v1063_v19, %v1001_v22 }
 0x155   : > { %v933_v31 = vadd.f32 %v932_v23, %v1883_v50  ;;  %v1065_v21 = vadd.f32 %v1064_v34, %v1002_v52  ;;  %v1006_v50 = vmul.f32 %v1921_v47, %v1921_v47 }
 0x157   : > { %v934_v35 = vadd.f32 %v933_v31, %v1899_v17  ;;  %v1066_v41 = vadd.f32 %v1065_v21, %v1003_v37  ;;  %v1021_v37 = vmul.f32 %v1979_v43, %v1979_v43 }
 0x159   : > { %v935_v57 = vadd.f32 %v934_v35, %v1907_v53  ;;  %v1067_v45 = vadd.f32 %v1066_v41, %v1004_v42 }
 0x15b   : > { %v1068_v55 = vadd.f32 %v1067_v45, %v1005_v49  ;;  %v936_v59 = vadd.f32 %v935_v57, %v1921_v47  ;;  %v1010_v47 = vmul.f32 %v1833_v20, %v1833_v20 }
 0x15d   : > { %v1069_v48 = vadd.f32 %v1068_v55, %v1006_v50  ;;  %v937_v17 = vadd.f32 %v936_v59, %v1939_v56  ;;  %v1011_v56 = vmul.f32 %v1841_v24, %v1841_v24 }
 0x15f   : > { %v1070_v5 = vadd.f32 %v1069_v48, %v1007_v40  ;;  %v938_v53 = vadd.f32 %v937_v17, %v1961_v6  ;;  %v1012_v6 = vmul.f32 %v1855_v32, %v1855_v32 }
 0x161   : > { %v1071_v1 = vadd.f32 %v1070_v5, %v1008_v62  ;;  %v939_v44 = vadd.f32 %v938_v53, %v1977_v39  ;;  %v1013_v39 = vmul.f32 %v1863_v36, %v1863_v36 }
 0x163   : > { %v940_v63 = vadd.f32 %v939_v44, %v1833_v20  ;;  %v1072_v9 = vadd.f32 %v1071_v1, %v1009_v8  ;;  %v1014_v20 = vmul.f32 %v1877_v46, %v1877_v46 }
 0x165   : > { %v941_v14 = vadd.f32 %v940_v63, %v1841_v24  ;;  %v1073_v7 = vadd.f32 %v1072_v9, %v1010_v47  ;;  %v1015_v24 = vmul.f32 %v1885_v51, %v1885_v51 }
 0x167   : > { %v942_v4 = vadd.f32 %v941_v14, %v1855_v32  ;;  %v1074_v60 = vadd.f32 %v1073_v7, %v1011_v56  ;;  %v1016_v32 = vmul.f32 %v1901_v0, %v1901_v0 }
 0x169   : > { %v943_v25 = vadd.f32 %v942_v4, %v1863_v36  ;;  %v1075_v2 = vadd.f32 %v1074_v60, %v1012_v6  ;;  %v1017_v36 = vmul.f32 %v1909_v54, %v1909_v54 }
 0x16b   : > { %v944_v12 = vadd.f32 %v943_v25, %v1877_v46  ;;  %v1076_v26 = vadd.f32 %v1075_v2, %v1013_v39  ;;  %v1018_v46 = vmul.f32 %v1923_v11, %v1923_v11 }
 0x16d   : > { %v945_v10 = vadd.f32 %v944_v12, %v1885_v51  ;;  %v1077_v16 = vadd.f32 %v1076_v26, %v1014_v20  ;;  %v1019_v51 = vmul.f32 %v1941_v27, %v1941_v27 }
 0x16f   : > { %v1078_v29 = vadd.f32 %v1077_v16, %v1015_v24  ;;  %v946_v13 = vadd.f32 %v945_v10, %v1901_v0  ;;  %v1020_v0 = vmul.f32 %v1963_v18, %v1963_v18 }
 0x171   : > { %v947_v30 = vadd.f32 %v946_v13, %v1909_v54  ;;  %v1079_v15 = vadd.f32 %v1078_v29, %v1016_v32 }
 0x173   : > { %v948_v22 = vadd.f32 %v947_v30, %v1923_v11  ;;  %v1080_v38 = vadd.f32 %v1079_v15, %v1017_v36 }
 0x175   : > { %v949_v19 = vadd.f32 %v948_v22, %v1941_v27  ;;  %v1081_v52 = vadd.f32 %v1080_v38, %v1018_v46  ;;  %v1022_v27 = vmul.f32 %v1999_v61, %v1999_v61 }
 0x177   : > { %v950_v23 = vadd.f32 %v949_v19, %v1963_v18  ;;  %v1082_v34 = vadd.f32 %v1081_v52, %v1019_v51  ;;  %v1023_v18 = vmul.f32 %v2013_v3, %v2013_v3 }
 0x179   : > { %v951_v54 = vadd.f32 %v950_v23, %v1979_v43  ;;  %v1083_v11 = vadd.f32 %v1082_v34, %v1020_v0  ;;  %v1024_v43 = vmul.f32 %v2030_v28, %v2030_v28 }
 0x17b   : > { %v1084_v31 = vadd.f32 %v1083_v11, %v1021_v37  ;;  %v952_v21 = vadd.f32 %v951_v54, %v1999_v61  ;;  %v1095_v61 = vlaneseq }
 0x17d   : > { %v1085_v42 = vadd.f32 %v1084_v31, %v1022_v27  ;;  %v953_v35 = vadd.f32 %v952_v21, %v2013_v3  ;;  %v1096_v5 = vshrl.u32 %v1095_v61, 7 }
 0x17f   : > { %v1086_v41 = vadd.f32 %v1085_v42, %v1023_v18  ;;  %v954_v57 = vadd.f32 %v953_v35, %v2030_v28  ;;  %vm1097_vm0 = vcmp.eq.s32.totalorder %v1096_v5, 0 }
 0x181   : > { %v1087_v49 = vadd.f32 %v1086_v41, %v1024_v43  ;;  %v955_v45 = vadd.f32 %v954_v57, %v762_v33 }
 0x183   : > { %v956_v55 = vrot.slane %v955_v45, 4  ;;  %v1088_v59 = vadd.f32 %v1087_v49, %v1025_v58 }
 0x185   : > { %v957_v50 = vadd.f32 %v956_v55, %v955_v45  ;;  %v1089_v48 = vrot.slane %v1088_v59, 4 }
 0x187   : > { %v958_v17 = vrot.slane %v957_v50, 2  ;;  %v1090_v40 = vadd.f32 %v1089_v48, %v1088_v59 }
 0x189   : > { %v959_v3 = vadd.f32 %v958_v17, %v957_v50  ;;  %v1091_v53 = vrot.slane %v1090_v40, 2 }
 0x18b   : > { %v960_v62 = vrot.slane %v959_v3, 1  ;;  %v1092_v1 = vadd.f32 %v1091_v53, %v1090_v40 }
 0x18d   : > { %v961_v28 = vadd.f32 %v960_v62, %v959_v3  ;;  %v1093_v33 = vrot.slane %v1092_v1, 1 }
 0x18f   : > { %v1094_v44 = vadd.f32 %v1093_v33, %v1092_v1  ;;  %v1098_v8 = vsel %vm1097_vm0, %v961_v28, 0.0 }
 0x190   : > { %1099 = vst [vmem:[%s271_s24] sm:$0xff] %v1098_v8 }
 0x191   : > { %v1100_v47 = vsel %vm1097_vm0, %v1094_v44, 0.0 }
 0x192   : > { %1101 = vst [vmem:[%s275_s27] sm:$0xff] %v1100_v47 }
 0x193 PF: > { %s17_s21 = sadd.s32 1, %s1662_s21  }
 0x194   : > { %p14_p5 = scmp.ge.s32.totalorder %s17_s21, 6  }
 0x196   :  { %16 = sbr.rel (!%p14_p5) target bundleno = 1 (0x1), region = 90 }

// kernel: tile.93
= control target key start
LH: loop header
LB: loop body
LE: loop exit
PB: predicated region body
PF: predicated region fallthrough
CT: control target
= control target key end

     0   :  { %s40_s0 = inlined_call_operand.vmem [shape: f32[8], index: 0, kind: input, shape index: {}]   ;;  %s41_s1 = inlined_call_operand.vmem [shape: f32[25,8], index: 1, kind: output, shape index: {}]  }
   0x1   :  { %v4_v0 = vld [vmem:[%s40_s0] ss:$0 sm:$0xff] }
   0x2   :  { %5 = vst [vmem:[%s41_s1] sm:$0xff] %v4_v0 }
   0x3   :  { %12 = vst [vmem:[%s41_s1 + $0x8] sm:$0xff] %v4_v0 }
   0x4   :  { %13 = vst [vmem:[%s41_s1 + $0x10] sm:$0xff] %v4_v0 }
   0x5   :  { %14 = vst [vmem:[%s41_s1 + $0x18] sm:$0xff] %v4_v0 }

// kernel: tile.94
= control target key start
LH: loop header
LB: loop body
LE: loop exit
PB: predicated region body
PF: predicated region fallthrough
CT: control target
= control target key end

     0   :  { %s140_s10 = smov 120   ;;  %s141_s11 = smov 104   ;;  %vm4_vm0 = vcmask 64512   ;;  %vm10_vm1 = vcmask 1048512   ;;  %vm16_vm2 = vcmask 982912   ;;  %vm22_vm3 = vcmask 917312   ;;  %s216_s0 = inlined_call_operand.vmem [shape: f32[25,8], index: 0, kind: input, shape index: {}]   ;;  %s217_s1 = inlined_call_operand.vmem [shape: f32[200], index: 1, kind: output, shape index: {}]  }
   0x1   :  { %v110_v0 = vld [vmem:[%s216_s0 + $0xf] sm:$0x1]   ;;  %v112_v1 = vld [vmem:[%s216_s0 + $0xd] sm:$0x1]   ;;  %v114_v2 = vld [vmem:[%s216_s0 + $0xb] sm:$0x1]  }
   0x2   :  { %8 = vrot.lane.b32.xlu0 %v110_v0, %s140_s10  ;;  %20 = vrot.lane.b32.xlu1 %v112_v1, %s141_s11  ;;  %v111_v3 = vld [vmem:[%s216_s0 + $0xe] sm:$0x1]   ;;  %v113_v4 = vld [vmem:[%s216_s0 + $0xc] sm:$0x1]   ;;  %s142_s18 = smov 88   ;;  %s143_s19 = smov 112  }
   0x3   :  { %32 = vrot.lane.b32.xlu2 %v114_v2, %s142_s18  ;;  %s144_s20 = smov 96   ;;  %s49_s21 = smov 3  ;;  %v115_v5 = vld [vmem:[%s216_s0 + $0xa] sm:$0x1]   ;;  %v116_v6 = vld [vmem:[%s216_s0 + $0x9] sm:$0x1]  }
   0x4   :  { %v117_v7 = vld [vmem:[%s216_s0 + $0x8] ss:$16 sm:%s49_s21]   ;;  %s145_s28 = smov 80   ;;  %s56_s29 = smov 3  ;;  %vm28_vm4 = vcmask 851712   ;;  %vm34_vm5 = vcmask 786112  }
   0x5   :  { %s146_s30 = smov 72   ;;  %s147_s2 = smov 64   ;;  %v118_v8 = vld [vmem:[%s216_s0 + $0x7] ss:$16 sm:%s56_s29]   ;;  %vm40_vm6 = vcmask 720512   ;;  %vm46_vm7 = vcmask 654912  }
   0x6   :  { %s63_s3 = smov 3  ;;  %s70_s4 = smov 3  ;;  %vm53_vm8 = vcmask 589312   ;;  %vm60_vm9 = vcmask 523712   ;;  %vm67_vm10 = vcmask 458112   ;;  %vm74_vm11 = vcmask 392512  }
   0x7   :  { %v119_v9 = vld [vmem:[%s216_s0 + $0x6] ss:$16 sm:%s63_s3]   ;;  %v120_v10 = vld [vmem:[%s216_s0 + $0x5] ss:$16 sm:%s70_s4]   ;;  %s148_s11 = smov 56   ;;  %s77_s12 = smov 3 }
   0x8   :  { %s149_s13 = smov 48   ;;  %s150_s14 = smov 40   ;;  %v121_v11 = vld [vmem:[%s216_s0 + $0x4] ss:$16 sm:%s77_s12]   ;;  %vm81_vm12 = vcmask 326912   ;;  %vm88_vm13 = vcmask 261312  }
   0x9   :  { %s84_s15 = smov 3  ;;  %s91_s16 = smov 3  ;;  %vm95_vm14 = vcmask 195712   ;;  %vm102_vm15 = vcmask 130112  }
   0xa   :  { %14 = vrot.lane.b32.xlu0 %v111_v3, %s143_s19  ;;  %26 = vrot.lane.b32.xlu1 %v113_v4, %s144_s20  ;;  %v122_v12 = vld [vmem:[%s216_s0 + $0x3] ss:$16 sm:%s84_s15]   ;;  %s151_s23 = smov 32   ;;  %s98_s24 = smov 3 }
   0xb   :  { %38 = vrot.lane.b32.xlu2 %v115_v5, %s145_s28  ;;  %v123_v13 = vld [vmem:[%s216_s0 + $0x2] ss:$16 sm:%s91_s16]   ;;  %s152_s25 = smov 24   ;;  %s153_s26 = smov 16  }
   0xc   :  { %v124_v14 = vld [vmem:[%s216_s0 + $0x1] ss:$16 sm:%s98_s24]   ;;  %s154_s29 = smov 8  }
  0x12   :  { %44 = vrot.lane.b32.xlu0 %v116_v6, %s146_s30  ;;  %51 = vrot.lane.b32.xlu1 %v117_v7, %s147_s2  ;;  %s2_s30 = smov 3 }
  0x13   :  { %58 = vrot.lane.b32.xlu2 %v118_v8, %s148_s11  ;;  %v3_v15 = vld [vmem:[%s216_s0] ss:$16 sm:%s2_s30]  }
  0x14   :  { %5 = vst.msk [vmem:[#allocation0] sm:$0x3] %vm4_vm0, %v3_v15  }
  0x1a   :  { %65 = vrot.lane.b32.xlu0 %v119_v9, %s149_s13  ;;  %72 = vrot.lane.b32.xlu1 %v120_v10, %s150_s14 }
  0x1b   :  { %79 = vrot.lane.b32.xlu2 %v121_v11, %s151_s23 }
  0x22   :  { %86 = vrot.lane.b32.xlu0 %v122_v12, %s152_s25  ;;  %93 = vrot.lane.b32.xlu1 %v123_v13, %s153_s26 }
  0x23   :  { %100 = vrot.lane.b32.xlu2 %v124_v14, %s154_s29 }
  0x5d   :  { %v33_v16 = vpop.permute.xlu2 %32  }
  0x65   :  { %v39_v17 = vpop.permute.xlu2 %38  }
  0x6d   :  { %v59_v18 = vpop.permute.xlu2 %58  }
  0x74   :  { %v9_v19 = vpop.permute.xlu0 %8   ;;  %v21_v20 = vpop.permute.xlu1 %20  }
  0x75   :  { %11 = vst.msk [vmem:[#allocation0] sm:$0x1] %vm10_vm1, %v9_v19   ;;  %v80_v21 = vpop.permute.xlu2 %79  }
  0x7c   :  { %v15_v22 = vpop.permute.xlu0 %14   ;;  %v27_v23 = vpop.permute.xlu1 %26  }
  0x7d   :  { %17 = vst.msk [vmem:[#allocation0] sm:$0x1] %vm16_vm2, %v15_v22   ;;  %v101_v24 = vpop.permute.xlu2 %100  }
  0x7e   :  { %23 = vst.msk [vmem:[#allocation0] sm:$0x1] %vm22_vm3, %v21_v20  }
  0x7f   :  { %29 = vst.msk [vmem:[#allocation0] sm:$0x1] %vm28_vm4, %v27_v23  }
  0x80   :  { %35 = vst.msk [vmem:[#allocation0] sm:$0x1] %vm34_vm5, %v33_v16  }
  0x81   :  { %41 = vst.msk [vmem:[#allocation0] sm:$0x1] %vm40_vm6, %v39_v17  }
  0x84   :  { %v45_v25 = vpop.permute.xlu0 %44   ;;  %v52_v26 = vpop.permute.xlu1 %51  }
  0x85   :  { %47 = vst.msk [vmem:[#allocation0] sm:$0x1] %vm46_vm7, %v45_v25  }
  0x86   :  { %54 = vst.msk [vmem:[#allocation0] sm:$0x3] %vm53_vm8, %v52_v26  }
  0x87   :  { %61 = vst.msk [vmem:[#allocation0] sm:$0x3] %vm60_vm9, %v59_v18  }
  0x8c   :  { %v66_v27 = vpop.permute.xlu0 %65   ;;  %v73_v28 = vpop.permute.xlu1 %72  }
  0x8d   :  { %68 = vst.msk [vmem:[#allocation0] sm:$0x3] %vm67_vm10, %v66_v27  }
  0x8e   :  { %75 = vst.msk [vmem:[#allocation0] sm:$0x3] %vm74_vm11, %v73_v28  }
  0x8f   :  { %82 = vst.msk [vmem:[#allocation0] sm:$0x3] %vm81_vm12, %v80_v21  }
  0x94   :  { %v87_v29 = vpop.permute.xlu0 %86   ;;  %v94_v30 = vpop.permute.xlu1 %93  }
  0x95   :  { %89 = vst.msk [vmem:[#allocation0] sm:$0x3] %vm88_vm13, %v87_v29  }
  0x96   :  { %96 = vst.msk [vmem:[#allocation0] sm:$0x3] %vm95_vm14, %v94_v30  }
  0x97   :  { %103 = vst.msk [vmem:[#allocation0] sm:$0x3] %vm102_vm15, %v101_v24  }
  0x9e   :  { %v106_v31 = vld [vmem:[#allocation0] sm:$0x3] }
  0x9f   :  { %109 = vst [vmem:[%s217_s1] sm:$0x3] %v106_v31 }

// kernel: _lambda_.12
= control target key start
LH: loop header
LB: loop body
LE: loop exit
PB: predicated region body
PF: predicated region fallthrough
CT: control target
= control target key end

     0   :  { %s1597_s21 = smov 0   ;;  %s2004_s0 = inlined_call_operand.vmem [shape: bf16[512,256], index: 0, kind: input, shape index: {}]   ;;  %s2005_s1 = inlined_call_operand.vmem [shape: f32[1,256], index: 1, kind: input, shape index: {}]   ;;  %s2006_s2 = inlined_call_operand.vmem [shape: f32[1,256], index: 2, kind: input, shape index: {}]   ;;  %s2007_s3 = inlined_call_operand.vmem [shape: bf16[256,128], index: 3, kind: input, shape index: {}]   ;;  %s2008_s4 = inlined_call_operand.vmem [shape: bf16[512,128], index: 4, kind: output, shape index: {0}]   ;;  %s2009_s5 = inlined_call_operand.vmem [shape: f32[16,128], index: 5, kind: output, shape index: {1}]   ;;  %s2010_s6 = inlined_call_operand.vmem [shape: f32[16,128], index: 6, kind: output, shape index: {2}]  }
   0x1 LB: > { %s1603_s22 = sadd.s32 4294967295, %s1560_s21   ;;  %p1344_p0 = scmp.ge.s32.totalorder %s1560_s21, 1  ;;  %s1560_s21 = sphi %s1597_s21, %s17_s21  }
   0x2   : > { %p219_p1 = scmp.lt.s32.totalorder %s1560_s21, 3 }
   0x4   : > { %p220_p2 = pnand %p1344_p0, %p219_p1 }
   0x5   : > { %s1345_s27 = sshll.u32 (!%p220_p2), %s1603_s22, 5  ;;  %p271_p4 = scmp.lt.s32.totalorder (!%p220_p2), %s1603_s22, 1 }
   0x6   : > { %223 = sbr.rel (%p220_p2) target bundleno = 342 (0x156), region = 36  ;;  %p259_p3 = scmp.lt.s32.totalorder (!%p220_p2), %s1345_s27, 63 }
   0xb   : > { %v1426_v0 = vld [vmem:[%s2007_s3 + $0x38] sm:$0xff]  ;;  %v1425_v2 = vld [vmem:[%s2007_s3 + $0x30] sm:$0xff]  ;;  %s2012_s27 = smov (!%p259_p3, %s1345_s27), 63  ;;  %v375_v4 = vld [vmem:[%s2005_s1] sm:$0x3]  ;;  %s2014_s22 = smov (!%p271_p4, %s1603_s22), 1 }
   0xc   : > { %v1434_v1 = vld [vmem:[%s2007_s3 + $0x78] sm:$0xff]  ;;  %867 = vmatpush.bf16.msra.mxu0 %v1426_v0  ;;  %v1433_v3 = vld [vmem:[%s2007_s3 + $0x70] sm:$0xff]  ;;  %1530 = vmatpush.bf16.msra.mxu2 %v1426_v0  ;;  %s1418_s8 = sshll.u32 %s2012_s27, 3  ;;  %v1424_v5 = vld [vmem:[%s2007_s3 + $0x28] sm:$0xff]  ;;  %v1639_v11 = vperm.slane %v375_v4, 0  ;;  %v1644_v14 = vperm.slane %v375_v4, 1 }
   0xd   : > { %956 = vmatpush.bf16.msra.mxu1 %v1434_v1  ;;  %1538 = vmatpush.bf16.msra.mxu3 %v1434_v1  ;;  %v1432_v6 = vld [vmem:[%s2007_s3 + $0x68] sm:$0xff]  ;;  %s1635_s17 = scalar_lea.vmem %s2004_s0, %s1418_s8  ;;  %v445_v12 = vld [vmem:[%s2006_s2] sm:$0x3]  ;;  %v1422_v25 = vld [vmem:[%s2007_s3 + $0x18] sm:$0xff] }
   0xe   : > { %v279_v7 = vld [vmem:[%s1635_s17] sm:$0xff]  ;;  %v280_v8 = vld [vmem:[%s1635_s17 + $0x8] sm:$0xff]  ;;  %v1654_v20 = vperm.slane %v445_v12, 0  ;;  %v1659_v24 = vperm.slane %v445_v12, 1  ;;  %v1430_v26 = vld [vmem:[%s2007_s3 + $0x58] sm:$0xff] }
   0xf   : > { %v311_v9 = vunpack.c.l.bf16 %v279_v7  ;;  %v313_v10 = vunpack.c.l.bf16 %v280_v8  ;;  %v312_v13 = vunpack.c.h.bf16 %v279_v7  ;;  %v1423_v15 = vld [vmem:[%s2007_s3 + $0x20] sm:$0xff]  ;;  %v314_v17 = vunpack.c.h.bf16 %v280_v8  ;;  %v296_v22 = vld [vmem:[%s1635_s17 + $0x88] sm:$0xff]  ;;  %v281_v28 = vld [vmem:[%s1635_s17 + $0x10] sm:$0xff] }
  0x10   : > { %868 = vmatpush.bf16.msra.mxu0 %v1425_v2  ;;  %1531 = vmatpush.bf16.msra.mxu2 %v1425_v2  ;;  %v1431_v16 = vld [vmem:[%s2007_s3 + $0x60] sm:$0xff]  ;;  %v1670_v29 = vld [vmem:[%s1635_s17 + $0x18] sm:$0xff]  ;;  %v345_v31 = vunpack.c.l.bf16 %v296_v22  ;;  %v1421_v35 = vld [vmem:[%s2007_s3 + $0x10] sm:$0xff]  ;;  %v315_v38 = vunpack.c.l.bf16 %v281_v28  ;;  %v316_v40 = vunpack.c.h.bf16 %v281_v28  ;;  %v346_v53 = vunpack.c.h.bf16 %v296_v22 }
  0x11   : > { %957 = vmatpush.bf16.msra.mxu1 %v1433_v3  ;;  %1539 = vmatpush.bf16.msra.mxu3 %v1433_v3  ;;  %v381_v18 = vmul.f32 %v1639_v11, %v311_v9  ;;  %v383_v19 = vmul.f32 %v1639_v11, %v313_v10  ;;  %v295_v21 = vld [vmem:[%s1635_s17 + $0x80] sm:$0xff]  ;;  %v382_v23 = vmul.f32 %v1644_v14, %v312_v13  ;;  %v1429_v36 = vld [vmem:[%s2007_s3 + $0x50] sm:$0xff]  ;;  %v317_v39 = vunpack.c.l.bf16 %v1670_v29  ;;  %v1420_v50 = vld [vmem:[%s2007_s3 + $0x8] sm:$0xff] }
  0x12   : > { %v384_v27 = vmul.f32 %v1644_v14, %v314_v17  ;;  %v343_v30 = vunpack.c.l.bf16 %v295_v21  ;;  %v415_v42 = vmul.f32 %v1639_v11, %v345_v31  ;;  %v344_v43 = vunpack.c.h.bf16 %v295_v21  ;;  %v1428_v51 = vld [vmem:[%s2007_s3 + $0x48] sm:$0xff]  ;;  %v1419_v0 = vld [vmem:[%s2007_s3] sm:$0xff]  ;;  %v297_v8 = vld [vmem:[%s1635_s17 + $0x90] sm:$0xff] }
  0x13   : > { %v451_v32 = vadd.f32 %v1654_v20, %v381_v18  ;;  %v453_v33 = vadd.f32 %v1654_v20, %v383_v19  ;;  %v452_v34 = vadd.f32 %v1659_v24, %v382_v23  ;;  %v318_v45 = vunpack.c.h.bf16 %v1670_v29  ;;  %v1427_v1 = vld [vmem:[%s2007_s3 + $0x40] sm:$0xff]  ;;  %v298_v9 = vld [vmem:[%s1635_s17 + $0x98] sm:$0xff] }
  0x14   : > { %869 = vmatpush.bf16.msra.mxu0 %v1424_v5  ;;  %1532 = vmatpush.bf16.msra.mxu2 %v1424_v5  ;;  %v454_v37 = vadd.f32 %v1659_v24, %v384_v27  ;;  %v413_v41 = vmul.f32 %v1639_v11, %v343_v30  ;;  %v485_v49 = vadd.f32 %v1654_v20, %v415_v42  ;;  %v347_v21 = vunpack.c.l.bf16 %v297_v8 }
  0x15   : > { %958 = vmatpush.bf16.msra.mxu1 %v1432_v6  ;;  %1540 = vmatpush.bf16.msra.mxu3 %v1432_v6  ;;  %vm515_vm0 = vcmp.ge.f32.partialorder %v451_v32, 0.0  ;;  %vm517_vm1 = vcmp.ge.f32.partialorder %v453_v33, 0.0  ;;  %v579_v44 = vmul.f32 0.2, %v451_v32  ;;  %v581_v46 = vmul.f32 0.2, %v453_v33 }
  0x16   : > { %v580_v47 = vmul.f32 0.2, %v452_v34  ;;  %v483_v48 = vadd.f32 %v1654_v20, %v413_v41  ;;  %vm516_vm2 = vcmp.ge.f32.partialorder %v452_v34, 0.0  ;;  %v582_v52 = vmul.f32 0.2, %v454_v37 }
  0x17   : > { %v414_v54 = vmul.f32 %v1644_v14, %v344_v43  ;;  %vm518_vm3 = vcmp.ge.f32.partialorder %v454_v37, 0.0  ;;  %v385_v55 = vmul.f32 %v1639_v11, %v315_v38  ;;  %vm549_vm5 = vcmp.ge.f32.partialorder %v485_v49, 0.0 }
  0x18   : > { %870 = vmatpush.bf16.msra.mxu0 %v1423_v15  ;;  %1533 = vmatpush.bf16.msra.mxu2 %v1423_v15  ;;  %vm547_vm4 = vcmp.ge.f32.partialorder %v483_v48, 0.0  ;;  %v611_v56 = vmul.f32 0.2, %v483_v48  ;;  %v613_v57 = vmul.f32 0.2, %v485_v49  ;;  %v416_v58 = vmul.f32 %v1644_v14, %v346_v53 }
  0x19   : > { %959 = vmatpush.bf16.msra.mxu1 %v1431_v16  ;;  %1541 = vmatpush.bf16.msra.mxu3 %v1431_v16  ;;  %v484_v59 = vadd.f32 %v1659_v24, %v414_v54  ;;  %v643_v60 = vsel %vm515_vm0, %v451_v32, %v579_v44  ;;  %v645_v61 = vsel %vm517_vm1, %v453_v33, %v581_v46  ;;  %v349_v22 = vunpack.c.l.bf16 %v298_v9  ;;  %v283_v33 = vld [vmem:[%s1635_s17 + $0x20] sm:$0xff] }
  0x1a   : > { %v644_v62 = vsel %vm516_vm2, %v452_v34, %v580_v47  ;;  %v387_v63 = vmul.f32 %v1639_v11, %v317_v39  ;;  %v646_v2 = vsel %vm518_vm3, %v454_v37, %v582_v52  ;;  %v486_v3 = vadd.f32 %v1659_v24, %v416_v58  ;;  %v284_v34 = vld [vmem:[%s1635_s17 + $0x28] sm:$0xff] }
  0x1b   : > { %vm548_vm6 = vcmp.ge.f32.partialorder %v484_v59, 0.0  ;;  %v612_v4 = vmul.f32 0.2, %v484_v59  ;;  %v386_v5 = vmul.f32 %v1644_v14, %v316_v40  ;;  %v675_v6 = vsel %vm547_vm4, %v483_v48, %v611_v56 }
  0x1c   : > { %871 = vmatpush.bf16.msra.mxu0 %v1422_v25  ;;  %1534 = vmatpush.bf16.msra.mxu2 %v1422_v25  ;;  %v677_v7 = vsel %vm549_vm5, %v485_v49, %v613_v57  ;;  %v455_v10 = vadd.f32 %v1654_v20, %v385_v55  ;;  %vm550_vm7 = vcmp.ge.f32.partialorder %v486_v3, 0.0  ;;  %v614_v12 = vmul.f32 0.2, %v486_v3 }
  0x1d   : > { %960 = vmatpush.bf16.msra.mxu1 %v1430_v26  ;;  %1542 = vmatpush.bf16.msra.mxu3 %v1430_v26  ;;  %v676_v13 = vsel %vm548_vm6, %v484_v59, %v612_v4  ;;  %v707_v15 = vpack.c.bf16 %v645_v61, %v643_v60  ;;  %v708_v16 = vpack.c.bf16 %v646_v2, %v644_v62  ;;  %v348_v31 = vunpack.c.h.bf16 %v297_v8  ;;  %v300_v59 = vld [vmem:[%s1635_s17 + $0xa8] sm:$0xff] }
  0x1e   : > { %v388_v17 = vmul.f32 %v1644_v14, %v318_v45  ;;  %v723_v18 = vpack.c.bf16 %v677_v7, %v675_v6  ;;  %v678_v19 = vsel %vm550_vm7, %v486_v3, %v614_v12  ;;  %v457_v23 = vadd.f32 %v1654_v20, %v387_v63 }
  0x1f   : > { %v724_v25 = vpack.c.bf16 %v678_v19, %v676_v13  ;;  %vm519_vm8 = vcmp.ge.f32.partialorder %v455_v10, 0.0  ;;  %v583_v26 = vmul.f32 0.2, %v455_v10  ;;  %v456_v27 = vadd.f32 %v1659_v24, %v386_v5  ;;  %v285_v19 = vld [vmem:[%s1635_s17 + $0x30] sm:$0xff] }
  0x20   : > { %872 = vmatpush.bf16.msra.mxu0 %v1421_v35  ;;  %1535 = vmatpush.bf16.msra.mxu2 %v1421_v35  ;;  %v417_v28 = vmul.f32 %v1639_v11, %v347_v21  ;;  %v458_v29 = vadd.f32 %v1659_v24, %v388_v17  ;;  %v419_v30 = vmul.f32 %v1639_v11, %v349_v22  ;;  %v350_v32 = vunpack.c.h.bf16 %v298_v9  ;;  %v286_v21 = vld [vmem:[%s1635_s17 + $0x38] sm:$0xff] }
  0x21   : > { %961 = vmatpush.bf16.msra.mxu1 %v1429_v36  ;;  %1543 = vmatpush.bf16.msra.mxu3 %v1429_v36  ;;  %v418_v37 = vmul.f32 %v1644_v14, %v348_v31  ;;  %vm521_vm9 = vcmp.ge.f32.partialorder %v457_v23, 0.0  ;;  %v585_v39 = vmul.f32 0.2, %v457_v23  ;;  %v647_v40 = vsel %vm519_vm8, %v455_v10, %v583_v26 }
  0x22   : > { %v487_v35 = vadd.f32 %v1654_v20, %v417_v28  ;;  %v489_v36 = vadd.f32 %v1654_v20, %v419_v30  ;;  %v420_v38 = vmul.f32 %v1644_v14, %v350_v32  ;;  %vm520_vm10 = vcmp.ge.f32.partialorder %v456_v27, 0.0 }
  0x23   : > { %vm522_vm11 = vcmp.ge.f32.partialorder %v458_v29, 0.0  ;;  %v584_v41 = vmul.f32 0.2, %v456_v27  ;;  %v586_v42 = vmul.f32 0.2, %v458_v29  ;;  %v319_v43 = vunpack.c.l.bf16 %v283_v33 }
  0x24   : > { %873 = vmatpush.bf16.msra.mxu0 %v1420_v50  ;;  %1536 = vmatpush.bf16.msra.mxu2 %v1420_v50  ;;  %v321_v44 = vunpack.c.l.bf16 %v284_v34  ;;  %v488_v45 = vadd.f32 %v1659_v24, %v418_v37  ;;  %v490_v46 = vadd.f32 %v1659_v24, %v420_v38  ;;  %v320_v47 = vunpack.c.h.bf16 %v283_v33  ;;  %v299_v50 = vld [vmem:[%s1635_s17 + $0xa0] sm:$0xff] }
  0x25   : > { %962 = vmatpush.bf16.msra.mxu1 %v1428_v51  ;;  %1544 = vmatpush.bf16.msra.mxu3 %v1428_v51  ;;  %vm551_vm12 = vcmp.ge.f32.partialorder %v487_v35, 0.0  ;;  %v615_v48 = vmul.f32 0.2, %v487_v35  ;;  %v617_v49 = vmul.f32 0.2, %v489_v36  ;;  %vm553_vm13 = vcmp.ge.f32.partialorder %v489_v36, 0.0 }
  0x26   : > { %vm552_vm14 = vcmp.ge.f32.partialorder %v488_v45, 0.0  ;;  %vm554_vm15 = vcmp.ge.f32.partialorder %v490_v46, 0.0  ;;  %v616_v51 = vmul.f32 0.2, %v488_v45  ;;  %v649_v52 = vsel %vm521_vm9, %v457_v23, %v585_v39 }
  0x27   : > { %v648_v53 = vsel %vm520_vm10, %v456_v27, %v584_v41  ;;  %v322_v54 = vunpack.c.h.bf16 %v284_v34  ;;  %v618_v55 = vmul.f32 0.2, %v490_v46  ;;  %v650_v56 = vsel %vm522_vm11, %v458_v29, %v586_v42  ;;  %v302_v41 = vld [vmem:[%s1635_s17 + $0xb8] sm:$0xff] }
  0x28   : > { %874 = vmatpush.bf16.msra.mxu0 %v1419_v0  ;;  %1537 = vmatpush.bf16.msra.mxu2 %v1419_v0  ;;  %v389_v57 = vmul.f32 %v1639_v11, %v319_v43  ;;  %v391_v58 = vmul.f32 %v1639_v11, %v321_v44  ;;  %v351_v60 = vunpack.c.l.bf16 %v299_v50  ;;  %v679_v61 = vsel %vm551_vm12, %v487_v35, %v615_v48 }
  0x29   : > { %963 = vmatpush.bf16.msra.mxu1 %v1427_v1  ;;  %1545 = vmatpush.bf16.msra.mxu3 %v1427_v1  ;;  %v681_v62 = vsel %vm553_vm13, %v489_v36, %v617_v49  ;;  %v680_v63 = vsel %vm552_vm14, %v488_v45, %v616_v51  ;;  %v682_v0 = vsel %vm554_vm15, %v490_v46, %v618_v55  ;;  %v353_v5 = vunpack.c.l.bf16 %v300_v59 }
  0x2a   : > { %v709_v1 = vpack.c.bf16 %v649_v52, %v647_v40  ;;  %v390_v2 = vmul.f32 %v1644_v14, %v320_v47  ;;  %v710_v3 = vpack.c.bf16 %v650_v56, %v648_v53  ;;  %v392_v4 = vmul.f32 %v1644_v14, %v322_v54  ;;  %v301_v40 = vld [vmem:[%s1635_s17 + $0xb0] sm:$0xff] }
  0x2b   : > { %875 = vmatmul.bf16.vlgmr.msra.gmra.mxu0 %v707_v15  ;;  %915 = vmatmul.bf16.vlgmr.msra.gmra.mxu2 %v723_v18  ;;  %v352_v6 = vunpack.c.h.bf16 %v299_v50  ;;  %v725_v7 = vpack.c.bf16 %v681_v62, %v679_v61  ;;  %v726_v8 = vpack.c.bf16 %v682_v0, %v680_v63  ;;  %v421_v9 = vmul.f32 %v1639_v11, %v351_v60 }
  0x2c   : > { %964 = vmatmul.bf16.vlgmr.msra.gmra.mxu1 %v708_v16  ;;  %1004 = vmatmul.bf16.vlgmr.msra.gmra.mxu3 %v724_v25  ;;  %v459_v10 = vadd.f32 %v1654_v20, %v389_v57  ;;  %v461_v12 = vadd.f32 %v1654_v20, %v391_v58  ;;  %v423_v13 = vmul.f32 %v1639_v11, %v353_v5  ;;  %v354_v16 = vunpack.c.h.bf16 %v300_v59 }
  0x2d   : > { %v460_v15 = vadd.f32 %v1659_v24, %v390_v2  ;;  %v422_v17 = vmul.f32 %v1644_v14, %v352_v6  ;;  %v462_v18 = vadd.f32 %v1659_v24, %v392_v4  ;;  %v491_v22 = vadd.f32 %v1654_v20, %v421_v9  ;;  %v287_v6 = vld [vmem:[%s1635_s17 + $0x40] sm:$0xff] }
  0x2e   : > { %v493_v23 = vadd.f32 %v1654_v20, %v423_v13  ;;  %v424_v25 = vmul.f32 %v1644_v14, %v354_v16  ;;  %vm523_vm0 = vcmp.ge.f32.partialorder %v459_v10, 0.0  ;;  %v587_v26 = vmul.f32 0.2, %v459_v10 }
  0x2f   : > { %v589_v27 = vmul.f32 0.2, %v461_v12  ;;  %v492_v28 = vadd.f32 %v1659_v24, %v422_v17  ;;  %vm525_vm1 = vcmp.ge.f32.partialorder %v461_v12, 0.0  ;;  %vm524_vm2 = vcmp.ge.f32.partialorder %v460_v15, 0.0 }
  0x30   : > { %v588_v29 = vmul.f32 0.2, %v460_v15  ;;  %v494_v30 = vadd.f32 %v1659_v24, %v424_v25  ;;  %vm526_vm3 = vcmp.ge.f32.partialorder %v462_v18, 0.0  ;;  %v590_v31 = vmul.f32 0.2, %v462_v18 }
  0x31   : > { %v323_v32 = vunpack.c.l.bf16 %v285_v19  ;;  %v325_v33 = vunpack.c.l.bf16 %v286_v21  ;;  %vm555_vm4 = vcmp.ge.f32.partialorder %v491_v22, 0.0  ;;  %vm557_vm5 = vcmp.ge.f32.partialorder %v493_v23, 0.0 }
  0x32   : > { %v619_v34 = vmul.f32 0.2, %v491_v22  ;;  %v621_v35 = vmul.f32 0.2, %v493_v23  ;;  %v651_v36 = vsel %vm523_vm0, %v459_v10, %v587_v26  ;;  %v653_v37 = vsel %vm525_vm1, %v461_v12, %v589_v27 }
  0x33   : > { %v620_v38 = vmul.f32 0.2, %v492_v28  ;;  %v622_v39 = vmul.f32 0.2, %v494_v30  ;;  %v652_v42 = vsel %vm524_vm2, %v460_v15, %v588_v29  ;;  %v324_v43 = vunpack.c.h.bf16 %v285_v19  ;;  %v304_v29 = vld [vmem:[%s1635_s17 + $0xc8] sm:$0xff] }
  0x34   : > { %vm556_vm6 = vcmp.ge.f32.partialorder %v492_v28, 0.0  ;;  %vm558_vm7 = vcmp.ge.f32.partialorder %v494_v30, 0.0  ;;  %v654_v44 = vsel %vm526_vm3, %v462_v18, %v590_v31  ;;  %v393_v45 = vmul.f32 %v1639_v11, %v323_v32 }
  0x35   : > { %v395_v46 = vmul.f32 %v1639_v11, %v325_v33  ;;  %v326_v47 = vunpack.c.h.bf16 %v286_v21  ;;  %v683_v48 = vsel %vm555_vm4, %v491_v22, %v619_v34  ;;  %v685_v49 = vsel %vm557_vm5, %v493_v23, %v621_v35 }
  0x36   : > { %v355_v50 = vunpack.c.l.bf16 %v301_v40  ;;  %v357_v51 = vunpack.c.l.bf16 %v302_v41  ;;  %v684_v52 = vsel %vm556_vm6, %v492_v28, %v620_v38  ;;  %v686_v53 = vsel %vm558_vm7, %v494_v30, %v622_v39  ;;  %v303_v28 = vld [vmem:[%s1635_s17 + $0xc0] sm:$0xff] }
  0x37   : > { %v356_v54 = vunpack.c.h.bf16 %v301_v40  ;;  %v358_v55 = vunpack.c.h.bf16 %v302_v41  ;;  %v394_v56 = vmul.f32 %v1644_v14, %v324_v43  ;;  %v711_v57 = vpack.c.bf16 %v653_v37, %v651_v36 }
  0x38   : > { %v712_v58 = vpack.c.bf16 %v654_v44, %v652_v42  ;;  %v396_v59 = vmul.f32 %v1644_v14, %v326_v47  ;;  %v727_v60 = vpack.c.bf16 %v685_v49, %v683_v48  ;;  %v728_v61 = vpack.c.bf16 %v686_v53, %v684_v52 }
  0x39   : > { %v425_v62 = vmul.f32 %v1639_v11, %v355_v50  ;;  %v427_v63 = vmul.f32 %v1639_v11, %v357_v51  ;;  %v463_v0 = vadd.f32 %v1654_v20, %v393_v45  ;;  %v426_v2 = vmul.f32 %v1644_v14, %v356_v54 }
  0x3a   : > { %v464_v4 = vadd.f32 %v1659_v24, %v394_v56  ;;  %v466_v5 = vadd.f32 %v1659_v24, %v396_v59  ;;  %v327_v18 = vunpack.c.l.bf16 %v287_v6  ;;  %v328_v31 = vunpack.c.h.bf16 %v287_v6  ;;  %v290_v59 = vld [vmem:[%s1635_s17 + $0x58] sm:$0xff] }
  0x3b   : > { %880 = vmatmul.bf16.gmra.mxu0 %v709_v1  ;;  %920 = vmatmul.bf16.gmra.mxu2 %v725_v7  ;;  %v465_v1 = vadd.f32 %v1654_v20, %v395_v46  ;;  %v288_v7 = vld [vmem:[%s1635_s17 + $0x48] sm:$0xff]  ;;  %v497_v9 = vadd.f32 %v1654_v20, %v427_v63  ;;  %v591_v10 = vmul.f32 0.2, %v463_v0  ;;  %v496_v13 = vadd.f32 %v1659_v24, %v426_v2 }
  0x3c   : > { %969 = vmatmul.bf16.gmra.mxu1 %v710_v3  ;;  %1009 = vmatmul.bf16.gmra.mxu3 %v726_v8  ;;  %v428_v3 = vmul.f32 %v1644_v14, %v358_v55  ;;  %v495_v8 = vadd.f32 %v1654_v20, %v425_v62  ;;  %vm527_vm8 = vcmp.ge.f32.partialorder %v463_v0, 0.0  ;;  %vm528_vm10 = vcmp.ge.f32.partialorder %v464_v4, 0.0 }
  0x3d   : > { %v593_v12 = vmul.f32 0.2, %v465_v1  ;;  %vm529_vm9 = vcmp.ge.f32.partialorder %v465_v1, 0.0  ;;  %v592_v16 = vmul.f32 0.2, %v464_v4  ;;  %vm530_vm11 = vcmp.ge.f32.partialorder %v466_v5, 0.0 }
  0x3e   : > { %v498_v15 = vadd.f32 %v1659_v24, %v428_v3  ;;  %v594_v17 = vmul.f32 0.2, %v466_v5  ;;  %v329_v19 = vunpack.c.l.bf16 %v288_v7  ;;  %vm559_vm12 = vcmp.ge.f32.partialorder %v495_v8, 0.0 }
  0x3f   : > { %vm561_vm13 = vcmp.ge.f32.partialorder %v497_v9, 0.0  ;;  %v623_v21 = vmul.f32 0.2, %v495_v8  ;;  %v625_v22 = vmul.f32 0.2, %v497_v9  ;;  %v655_v23 = vsel %vm527_vm8, %v463_v0, %v591_v10 }
  0x40   : > { %v657_v25 = vsel %vm529_vm9, %v465_v1, %v593_v12  ;;  %v624_v26 = vmul.f32 0.2, %v496_v13  ;;  %v626_v27 = vmul.f32 0.2, %v498_v15  ;;  %v656_v30 = vsel %vm528_vm10, %v464_v4, %v592_v16 }
  0x41   : > { %vm560_vm14 = vcmp.ge.f32.partialorder %v496_v13, 0.0  ;;  %vm562_vm15 = vcmp.ge.f32.partialorder %v498_v15, 0.0  ;;  %v658_v32 = vsel %vm530_vm11, %v466_v5, %v594_v17  ;;  %v397_v33 = vmul.f32 %v1639_v11, %v327_v18 }
  0x42   : > { %v399_v34 = vmul.f32 %v1639_v11, %v329_v19  ;;  %v330_v35 = vunpack.c.h.bf16 %v288_v7  ;;  %v687_v36 = vsel %vm559_vm12, %v495_v8, %v623_v21  ;;  %v689_v37 = vsel %vm561_vm13, %v497_v9, %v625_v22 }
  0x43   : > { %v359_v38 = vunpack.c.l.bf16 %v303_v28  ;;  %v361_v39 = vunpack.c.l.bf16 %v304_v29  ;;  %v688_v40 = vsel %vm560_vm14, %v496_v13, %v624_v26  ;;  %v690_v41 = vsel %vm562_vm15, %v498_v15, %v626_v27  ;;  %v305_v13 = vld [vmem:[%s1635_s17 + $0xd0] sm:$0xff]  ;;  %v306_v15 = vld [vmem:[%s1635_s17 + $0xd8] sm:$0xff] }
  0x44   : > { %v360_v42 = vunpack.c.h.bf16 %v303_v28  ;;  %v362_v43 = vunpack.c.h.bf16 %v304_v29  ;;  %v398_v44 = vmul.f32 %v1644_v14, %v328_v31  ;;  %v713_v45 = vpack.c.bf16 %v657_v25, %v655_v23 }
  0x45   : > { %v714_v46 = vpack.c.bf16 %v658_v32, %v656_v30  ;;  %v400_v47 = vmul.f32 %v1644_v14, %v330_v35  ;;  %v729_v48 = vpack.c.bf16 %v689_v37, %v687_v36  ;;  %v730_v49 = vpack.c.bf16 %v690_v41, %v688_v40 }
  0x46   : > { %v429_v50 = vmul.f32 %v1639_v11, %v359_v38  ;;  %v431_v51 = vmul.f32 %v1639_v11, %v361_v39  ;;  %v467_v52 = vadd.f32 %v1654_v20, %v397_v33  ;;  %v469_v53 = vadd.f32 %v1654_v20, %v399_v34 }
  0x47   : > { %v430_v54 = vmul.f32 %v1644_v14, %v360_v42  ;;  %v432_v55 = vmul.f32 %v1644_v14, %v362_v43  ;;  %v468_v56 = vadd.f32 %v1659_v24, %v398_v44  ;;  %v333_v5 = vunpack.c.l.bf16 %v290_v59 }
  0x48   : > { %v595_v62 = vmul.f32 0.2, %v467_v52  ;;  %v597_v63 = vmul.f32 0.2, %v469_v53  ;;  %vm531_vm0 = vcmp.ge.f32.partialorder %v467_v52, 0.0  ;;  %vm533_vm1 = vcmp.ge.f32.partialorder %v469_v53, 0.0 }
  0x49   : > { %v500_v0 = vadd.f32 %v1659_v24, %v430_v54  ;;  %v502_v1 = vadd.f32 %v1659_v24, %v432_v55  ;;  %vm532_vm2 = vcmp.ge.f32.partialorder %v468_v56, 0.0  ;;  %v596_v2 = vmul.f32 0.2, %v468_v56  ;;  %v292_v55 = vld [vmem:[%s1635_s17 + $0x68] sm:$0xff] }
  0x4a   : > { %v659_v8 = vsel %vm531_vm0, %v467_v52, %v595_v62  ;;  %v661_v9 = vsel %vm533_vm1, %v469_v53, %v597_v63  ;;  %v403_v21 = vmul.f32 %v1639_v11, %v333_v5  ;;  %v334_v22 = vunpack.c.h.bf16 %v290_v59  ;;  %v307_v63 = vld [vmem:[%s1635_s17 + $0xe0] sm:$0xff] }
  0x4b   : > { %885 = vmatmul.bf16.gmra.mxu0 %v711_v57  ;;  %925 = vmatmul.bf16.gmra.mxu2 %v727_v60  ;;  %v470_v57 = vadd.f32 %v1659_v24, %v400_v47  ;;  %v499_v60 = vadd.f32 %v1654_v20, %v429_v50  ;;  %v628_v10 = vmul.f32 0.2, %v500_v0  ;;  %v630_v12 = vmul.f32 0.2, %v502_v1 }
  0x4c   : > { %974 = vmatmul.bf16.gmra.mxu1 %v712_v58  ;;  %1014 = vmatmul.bf16.gmra.mxu3 %v728_v61  ;;  %v289_v58 = vld [vmem:[%s1635_s17 + $0x50] sm:$0xff]  ;;  %v501_v61 = vadd.f32 %v1654_v20, %v431_v51  ;;  %v660_v16 = vsel %vm532_vm2, %v468_v56, %v596_v2  ;;  %vm564_vm6 = vcmp.ge.f32.partialorder %v500_v0, 0.0  ;;  %vm566_vm7 = vcmp.ge.f32.partialorder %v502_v1, 0.0 }
  0x4d   : > { %vm534_vm3 = vcmp.ge.f32.partialorder %v470_v57, 0.0  ;;  %v598_v3 = vmul.f32 0.2, %v470_v57  ;;  %v331_v4 = vunpack.c.l.bf16 %v289_v58  ;;  %vm563_vm4 = vcmp.ge.f32.partialorder %v499_v60, 0.0 }
  0x4e   : > { %vm565_vm5 = vcmp.ge.f32.partialorder %v501_v61, 0.0  ;;  %v627_v6 = vmul.f32 0.2, %v499_v60  ;;  %v629_v7 = vmul.f32 0.2, %v501_v61  ;;  %v332_v17 = vunpack.c.h.bf16 %v289_v58 }
  0x4f   : > { %v662_v18 = vsel %vm534_vm3, %v470_v57, %v598_v3  ;;  %v401_v19 = vmul.f32 %v1639_v11, %v331_v4  ;;  %v363_v26 = vunpack.c.l.bf16 %v305_v13  ;;  %v365_v27 = vunpack.c.l.bf16 %v306_v15 }
  0x50   : > { %v691_v23 = vsel %vm563_vm4, %v499_v60, %v627_v6  ;;  %v693_v25 = vsel %vm565_vm5, %v501_v61, %v629_v7  ;;  %v692_v28 = vsel %vm564_vm6, %v500_v0, %v628_v10  ;;  %v694_v29 = vsel %vm566_vm7, %v502_v1, %v630_v12  ;;  %v308_v0 = vld [vmem:[%s1635_s17 + $0xe8] sm:$0xff] }
  0x51   : > { %v364_v30 = vunpack.c.h.bf16 %v305_v13  ;;  %v366_v31 = vunpack.c.h.bf16 %v306_v15  ;;  %v402_v32 = vmul.f32 %v1644_v14, %v332_v17  ;;  %v715_v33 = vpack.c.bf16 %v661_v9, %v659_v8 }
  0x52   : > { %v716_v34 = vpack.c.bf16 %v662_v18, %v660_v16  ;;  %v404_v35 = vmul.f32 %v1644_v14, %v334_v22  ;;  %v731_v36 = vpack.c.bf16 %v693_v25, %v691_v23  ;;  %v732_v37 = vpack.c.bf16 %v694_v29, %v692_v28 }
  0x53   : > { %v433_v38 = vmul.f32 %v1639_v11, %v363_v26  ;;  %v435_v39 = vmul.f32 %v1639_v11, %v365_v27  ;;  %v471_v40 = vadd.f32 %v1654_v20, %v401_v19  ;;  %v473_v41 = vadd.f32 %v1654_v20, %v403_v21 }
  0x54   : > { %v434_v42 = vmul.f32 %v1644_v14, %v364_v30  ;;  %v436_v43 = vmul.f32 %v1644_v14, %v366_v31  ;;  %v472_v44 = vadd.f32 %v1659_v24, %v402_v32  ;;  %v337_v1 = vunpack.c.l.bf16 %v292_v55 }
  0x55   : > { %v503_v47 = vadd.f32 %v1654_v20, %v433_v38  ;;  %v601_v50 = vmul.f32 0.2, %v473_v41  ;;  %vm535_vm8 = vcmp.ge.f32.partialorder %v471_v40, 0.0  ;;  %vm537_vm9 = vcmp.ge.f32.partialorder %v473_v41, 0.0 }
  0x56   : > { %v504_v51 = vadd.f32 %v1659_v24, %v434_v42  ;;  %v506_v52 = vadd.f32 %v1659_v24, %v436_v43  ;;  %v600_v53 = vmul.f32 0.2, %v472_v44  ;;  %vm536_vm10 = vcmp.ge.f32.partialorder %v472_v44, 0.0  ;;  %v293_v42 = vld [vmem:[%s1635_s17 + $0x70] sm:$0xff]  ;;  %v294_v43 = vld [vmem:[%s1635_s17 + $0x78] sm:$0xff] }
  0x57   : > { %vm567_vm12 = vcmp.ge.f32.partialorder %v503_v47, 0.0  ;;  %v631_v57 = vmul.f32 0.2, %v503_v47  ;;  %v665_v60 = vsel %vm537_vm9, %v473_v41, %v601_v50  ;;  %v338_v6 = vunpack.c.h.bf16 %v292_v55 }
  0x58   : > { %v632_v61 = vmul.f32 0.2, %v504_v51  ;;  %v634_v62 = vmul.f32 0.2, %v506_v52  ;;  %vm568_vm14 = vcmp.ge.f32.partialorder %v504_v51, 0.0  ;;  %vm570_vm15 = vcmp.ge.f32.partialorder %v506_v52, 0.0 }
  0x59   : > { %v664_v3 = vsel %vm536_vm10, %v472_v44, %v600_v53  ;;  %v695_v7 = vsel %vm567_vm12, %v503_v47, %v631_v57  ;;  %v367_v9 = vunpack.c.l.bf16 %v307_v63  ;;  %v369_v10 = vunpack.c.l.bf16 %v308_v0  ;;  %v310_v53 = vld [vmem:[%s1635_s17 + $0xf8] sm:$0xff] }
  0x5a   : > { %v696_v12 = vsel %vm568_vm14, %v504_v51, %v632_v61  ;;  %v698_v13 = vsel %vm570_vm15, %v506_v52, %v634_v62  ;;  %v368_v15 = vunpack.c.h.bf16 %v307_v63  ;;  %v370_v16 = vunpack.c.h.bf16 %v308_v0 }
  0x5b   : > { %890 = vmatmul.bf16.gmra.mxu0 %v713_v45  ;;  %930 = vmatmul.bf16.gmra.mxu2 %v729_v48  ;;  %v474_v45 = vadd.f32 %v1659_v24, %v404_v35  ;;  %v505_v48 = vadd.f32 %v1654_v20, %v435_v39  ;;  %v407_v18 = vmul.f32 %v1639_v11, %v337_v1  ;;  %v339_v51 = vunpack.c.l.bf16 %v293_v42 }
  0x5c   : > { %979 = vmatmul.bf16.gmra.mxu1 %v714_v46  ;;  %1019 = vmatmul.bf16.gmra.mxu3 %v730_v49  ;;  %v291_v46 = vld [vmem:[%s1635_s17 + $0x60] sm:$0xff]  ;;  %v599_v49 = vmul.f32 0.2, %v471_v40  ;;  %v408_v23 = vmul.f32 %v1644_v14, %v338_v6  ;;  %v734_v26 = vpack.c.bf16 %v698_v13, %v696_v12  ;;  %v437_v27 = vmul.f32 %v1639_v11, %v367_v9 }
  0x5d   : > { %vm538_vm11 = vcmp.ge.f32.partialorder %v474_v45, 0.0  ;;  %v602_v54 = vmul.f32 0.2, %v474_v45  ;;  %v335_v56 = vunpack.c.l.bf16 %v291_v46  ;;  %vm569_vm13 = vcmp.ge.f32.partialorder %v505_v48, 0.0 }
  0x5e   : > { %v633_v58 = vmul.f32 0.2, %v505_v48  ;;  %v663_v59 = vsel %vm535_vm8, %v471_v40, %v599_v49  ;;  %v336_v2 = vunpack.c.h.bf16 %v291_v46  ;;  %v439_v28 = vmul.f32 %v1639_v11, %v369_v10  ;;  %v309_v49 = vld [vmem:[%s1635_s17 + $0xf0] sm:$0xff]  ;;  %s1349_s17 = sshll.u32 %s2012_s27, 2  ;;  %s1350_s27 = sshll.u32 %s2014_s22, 3 }
  0x5f   : > { %v666_v4 = vsel %vm538_vm11, %v474_v45, %v602_v54  ;;  %v405_v5 = vmul.f32 %v1639_v11, %v335_v56  ;;  %v717_v17 = vpack.c.bf16 %v665_v60, %v663_v59  ;;  %v438_v29 = vmul.f32 %v1644_v14, %v368_v15  ;;  %s1879_s24 = scalar_lea.vmem %s2008_s4, %s1349_s17  ;;  %s274_s28 = scalar_lea.vmem %s2009_s5, %s1350_s27 }
  0x60   : > { %v697_v8 = vsel %vm569_vm13, %v505_v48, %v633_v58  ;;  %v406_v19 = vmul.f32 %v1644_v14, %v336_v2  ;;  %v718_v21 = vpack.c.bf16 %v666_v4, %v664_v3  ;;  %v440_v30 = vmul.f32 %v1644_v14, %v370_v16  ;;  %s278_s7 = scalar_lea.vmem %s2010_s6, %s1350_s27 }
  0x61   : > { %v475_v22 = vadd.f32 %v1654_v20, %v405_v5  ;;  %v733_v25 = vpack.c.bf16 %v697_v8, %v695_v7  ;;  %v477_v31 = vadd.f32 %v1654_v20, %v407_v18  ;;  %v507_v35 = vadd.f32 %v1654_v20, %v437_v27 }
  0x62   : > { %v476_v32 = vadd.f32 %v1659_v24, %v406_v19  ;;  %v510_v38 = vadd.f32 %v1659_v24, %v440_v30  ;;  %v341_v52 = vunpack.c.l.bf16 %v294_v43  ;;  %v340_v56 = vunpack.c.h.bf16 %v293_v42 }
  0x63   : > { %vm539_vm0 = vcmp.ge.f32.partialorder %v475_v22, 0.0  ;;  %vm541_vm1 = vcmp.ge.f32.partialorder %v477_v31, 0.0  ;;  %v605_v39 = vmul.f32 0.2, %v477_v31  ;;  %v635_v45 = vmul.f32 0.2, %v507_v35 }
  0x64   : > { %v604_v40 = vmul.f32 0.2, %v476_v32  ;;  %vm540_vm2 = vcmp.ge.f32.partialorder %v476_v32, 0.0  ;;  %vm571_vm4 = vcmp.ge.f32.partialorder %v507_v35, 0.0  ;;  %v638_v48 = vmul.f32 0.2, %v510_v38 }
  0x65   : > { %v669_v50 = vsel %vm541_vm1, %v477_v31, %v605_v39  ;;  %vm574_vm7 = vcmp.ge.f32.partialorder %v510_v38, 0.0  ;;  %v342_v57 = vunpack.c.h.bf16 %v294_v43  ;;  %v699_v58 = vsel %vm571_vm4, %v507_v35, %v635_v45 }
  0x66   : > { %v668_v54 = vsel %vm540_vm2, %v476_v32, %v604_v40  ;;  %v371_v61 = vunpack.c.l.bf16 %v309_v49  ;;  %v702_v62 = vsel %vm574_vm7, %v510_v38, %v638_v48  ;;  %v373_v63 = vunpack.c.l.bf16 %v310_v53 }
  0x67   : > { %v372_v0 = vunpack.c.h.bf16 %v309_v49  ;;  %v374_v1 = vunpack.c.h.bf16 %v310_v53  ;;  %v409_v2 = vmul.f32 %v1639_v11, %v339_v51  ;;  %v411_v3 = vmul.f32 %v1639_v11, %v341_v52 }
  0x68   : > { %v410_v6 = vmul.f32 %v1644_v14, %v340_v56  ;;  %v412_v7 = vmul.f32 %v1644_v14, %v342_v57  ;;  %v441_v10 = vmul.f32 %v1639_v11, %v371_v61  ;;  %v443_v12 = vmul.f32 %v1639_v11, %v373_v63 }
  0x69   : > { %v442_v13 = vmul.f32 %v1644_v14, %v372_v0  ;;  %v444_v15 = vmul.f32 %v1644_v14, %v374_v1  ;;  %v479_v16 = vadd.f32 %v1654_v20, %v409_v2 }
  0x6a   : > { %v480_v18 = vadd.f32 %v1659_v24, %v410_v6  ;;  %v482_v19 = vadd.f32 %v1659_v24, %v412_v7  ;;  %v513_v11 = vadd.f32 %v1654_v20, %v443_v12 }
  0x6b   : > { %895 = vmatmul.bf16.gmra.mxu0 %v715_v33  ;;  %935 = vmatmul.bf16.gmra.mxu2 %v731_v36  ;;  %v478_v33 = vadd.f32 %v1659_v24, %v408_v23  ;;  %v509_v36 = vadd.f32 %v1654_v20, %v439_v28  ;;  %v514_v14 = vadd.f32 %v1659_v24, %v444_v15  ;;  %vm543_vm8 = vcmp.ge.f32.partialorder %v479_v16, 0.0 }
  0x6c   : > { %984 = vmatmul.bf16.gmra.mxu1 %v716_v34  ;;  %1024 = vmatmul.bf16.gmra.mxu3 %v732_v37  ;;  %v603_v34 = vmul.f32 0.2, %v475_v22  ;;  %v508_v37 = vadd.f32 %v1659_v24, %v438_v29  ;;  %v607_v23 = vmul.f32 0.2, %v479_v16  ;;  %vm544_vm10 = vcmp.ge.f32.partialorder %v480_v18, 0.0 }
  0x6d   : > { %vm542_vm3 = vcmp.ge.f32.partialorder %v478_v33, 0.0  ;;  %v606_v41 = vmul.f32 0.2, %v478_v33  ;;  %v637_v46 = vmul.f32 0.2, %v509_v36  ;;  %vm573_vm5 = vcmp.ge.f32.partialorder %v509_v36, 0.0 }
  0x6e   : > { %v667_v44 = vsel %vm539_vm0, %v475_v22, %v603_v34  ;;  %v636_v47 = vmul.f32 0.2, %v508_v37  ;;  %vm572_vm6 = vcmp.ge.f32.partialorder %v508_v37, 0.0  ;;  %v512_v22 = vadd.f32 %v1659_v24, %v442_v13 }
  0x6f   : > { %v670_v55 = vsel %vm542_vm3, %v478_v33, %v606_v41  ;;  %v701_v59 = vsel %vm573_vm5, %v509_v36, %v637_v46  ;;  %v719_v4 = vpack.c.bf16 %v669_v50, %v667_v44  ;;  %vm546_vm11 = vcmp.ge.f32.partialorder %v482_v19, 0.0 }
  0x70   : > { %v700_v60 = vsel %vm572_vm6, %v508_v37, %v636_v47  ;;  %v720_v5 = vpack.c.bf16 %v670_v55, %v668_v54  ;;  %v735_v8 = vpack.c.bf16 %v701_v59, %v699_v58  ;;  %v610_v27 = vmul.f32 0.2, %v482_v19 }
  0x71   : > { %v736_v9 = vpack.c.bf16 %v702_v62, %v700_v60  ;;  %v641_v29 = vmul.f32 0.2, %v513_v11  ;;  %v640_v30 = vmul.f32 0.2, %v512_v22  ;;  %v642_v31 = vmul.f32 0.2, %v514_v14 }
  0x72   : > { %vm577_vm13 = vcmp.ge.f32.partialorder %v513_v11, 0.0  ;;  %vm576_vm14 = vcmp.ge.f32.partialorder %v512_v22, 0.0  ;;  %vm578_vm15 = vcmp.ge.f32.partialorder %v514_v14, 0.0  ;;  %v674_v33 = vsel %vm546_vm11, %v482_v19, %v610_v27 }
  0x73   : > { %v705_v35 = vsel %vm577_vm13, %v513_v11, %v641_v29  ;;  %v704_v36 = vsel %vm576_vm14, %v512_v22, %v640_v30  ;;  %v706_v37 = vsel %vm578_vm15, %v514_v14, %v642_v31 }
  0x74   : > { %v738_v41 = vpack.c.bf16 %v706_v37, %v704_v36 }
  0x7b   : > { %900 = vmatmul.bf16.gmra.mxu0 %v717_v17  ;;  %940 = vmatmul.bf16.gmra.mxu2 %v733_v25  ;;  %v481_v17 = vadd.f32 %v1654_v20, %v411_v3 }
  0x7c   : > { %989 = vmatmul.bf16.gmra.mxu1 %v718_v21  ;;  %1029 = vmatmul.bf16.gmra.mxu3 %v734_v26  ;;  %v511_v21 = vadd.f32 %v1654_v20, %v441_v10  ;;  %v608_v26 = vmul.f32 0.2, %v480_v18  ;;  %v671_v20 = vsel %vm543_vm8, %v479_v16, %v607_v23 }
  0x7d   : > { %vm545_vm9 = vcmp.ge.f32.partialorder %v481_v17, 0.0  ;;  %v609_v25 = vmul.f32 0.2, %v481_v17 }
  0x7e   : > { %v639_v28 = vmul.f32 0.2, %v511_v21  ;;  %vm575_vm12 = vcmp.ge.f32.partialorder %v511_v21, 0.0  ;;  %v672_v32 = vsel %vm544_vm10, %v480_v18, %v608_v26 }
  0x7f   : > { %v673_v24 = vsel %vm545_vm9, %v481_v17, %v609_v25  ;;  %v722_v39 = vpack.c.bf16 %v674_v33, %v672_v32 }
  0x80   : > { %v703_v34 = vsel %vm575_vm12, %v511_v21, %v639_v28  ;;  %v721_v38 = vpack.c.bf16 %v673_v24, %v671_v20 }
  0x81   : > { %v737_v40 = vpack.c.bf16 %v705_v35, %v703_v34 }
  0x8b   : > { %905 = vmatmul.bf16.gmra.mxu0 %v719_v4  ;;  %945 = vmatmul.bf16.gmra.mxu2 %v735_v8 }
  0x8c   : > { %994 = vmatmul.bf16.gmra.mxu1 %v720_v5  ;;  %1034 = vmatmul.bf16.gmra.mxu3 %v736_v9 }
  0x9b   : > { %910 = vmatmul.bf16.gmra.mxu0 %v721_v38  ;;  %950 = vmatmul.bf16.gmra.mxu2 %v737_v40 }
  0x9c   : > { %999 = vmatmul.bf16.gmra.mxu1 %v722_v39  ;;  %1039 = vmatmul.bf16.gmra.mxu3 %v738_v41 }
  0xa8   : > { %v876_v42 = vpop.f32.mrf.mxu0 }
  0xa9   : > { %v965_v43 = vpop.f32.mrf.mxu1 }
  0xaa   : > { %v966_v44 = vadd.f32 %v965_v43, %v876_v42 }
  0xac   : > { %v1146_v50 = vmul.f32 %v966_v44, %v966_v44 }
  0xae   : > { %v916_v45 = vpop.f32.mrf.mxu2 }
  0xaf   : > { %v1005_v46 = vpop.f32.mrf.mxu3 }
  0xb0   : > { %v878_v47 = vpop.f32.mrf.mxu0  ;;  %v1882_v55 = vadd.f32 %v1005_v46, %v916_v45 }
  0xb1   : > { %v967_v48 = vpop.f32.mrf.mxu1 }
  0xb2   : > { %v968_v49 = vadd.f32 %v967_v48, %v878_v47 }
  0xb4   : > { %v1438_v51 = vpack.c.bf16 %v968_v49, %v966_v44  ;;  %v1109_v52 = vadd.f32 %v968_v49, %v966_v44  ;;  %v1147_v53 = vmul.f32 %v968_v49, %v968_v49 }
  0xb6   : > { %1439 = vst [vmem:[%s1879_s24] sm:$0xff] %v1438_v51   ;;  %v1178_v54 = vadd.f32 %v1147_v53, %v1146_v50  ;;  %v918_v56 = vpop.f32.mrf.mxu2 }
  0xb7   : > { %v1007_v57 = vpop.f32.mrf.mxu3 }
  0xb8   : > { %v881_v58 = vpop.f32.mrf.mxu0  ;;  %v1884_v60 = vadd.f32 %v1007_v57, %v918_v56 }
  0xb9   : > { %v970_v59 = vpop.f32.mrf.mxu1 }
  0xba   : > { %v971_v61 = vadd.f32 %v970_v59, %v881_v58  ;;  %v1478_v62 = vpack.c.bf16 %v1884_v60, %v1882_v55 }
  0xbc   : > { %v1110_v63 = vadd.f32 %v1109_v52, %v971_v61  ;;  %v1148_v0 = vmul.f32 %v971_v61, %v971_v61  ;;  %1522 = vst [vmem:[%s1879_s24 + $0x40] sm:$0xff] %v1478_v62  }
  0xbe   : > { %v1179_v1 = vadd.f32 %v1178_v54, %v1148_v0  ;;  %v921_v2 = vpop.f32.mrf.mxu2 }
  0xbf   : > { %v1010_v3 = vpop.f32.mrf.mxu3 }
  0xc0   : > { %v883_v4 = vpop.f32.mrf.mxu0  ;;  %v1894_v12 = vadd.f32 %v1010_v3, %v921_v2 }
  0xc1   : > { %v972_v5 = vpop.f32.mrf.mxu1 }
  0xc2   : > { %v973_v6 = vadd.f32 %v972_v5, %v883_v4 }
  0xc4   : > { %v1443_v7 = vpack.c.bf16 %v973_v6, %v971_v61  ;;  %v1889_v8 = vadd.f32 %v1110_v63, %v973_v6  ;;  %v1149_v9 = vmul.f32 %v973_v6, %v973_v6 }
  0xc6   : > { %1515 = vst [vmem:[%s1879_s24 + $0x8] sm:$0xff] %v1443_v7   ;;  %v1892_v10 = vadd.f32 %v1179_v1, %v1149_v9  ;;  %v923_v13 = vpop.f32.mrf.mxu2 }
  0xc7   : > { %v1012_v15 = vpop.f32.mrf.mxu3 }
  0xc8   : > { %v886_v16 = vpop.f32.mrf.mxu0  ;;  %v1896_v18 = vadd.f32 %v1012_v15, %v923_v13 }
  0xc9   : > { %v975_v17 = vpop.f32.mrf.mxu1 }
  0xca   : > { %v1483_v19 = vpack.c.bf16 %v1896_v18, %v1894_v12  ;;  %v976_v23 = vadd.f32 %v975_v17, %v886_v16 }
  0xcc   : > { %1523 = vst [vmem:[%s1879_s24 + $0x48] sm:$0xff] %v1483_v19   ;;  %v1150_v16 = vmul.f32 %v976_v23, %v976_v23 }
  0xce   : > { %v926_v21 = vpop.f32.mrf.mxu2 }
  0xcf   : > { %v1015_v11 = vpop.f32.mrf.mxu3 }
  0xd0   : > { %v888_v22 = vpop.f32.mrf.mxu0  ;;  %v1905_v27 = vadd.f32 %v1015_v11, %v926_v21  ;;  %v1112_v21 = vadd.f32 %v1889_v8, %v976_v23  ;;  %v1181_v11 = vadd.f32 %v1892_v10, %v1150_v16 }
  0xd1   : > { %v977_v14 = vpop.f32.mrf.mxu1 }
  0xd2   : > { %v1901_v25 = vadd.f32 %v977_v14, %v888_v22 }
  0xd4   : > { %v1448_v26 = vpack.c.bf16 %v1901_v25, %v976_v23  ;;  %v1151_v19 = vmul.f32 %v1901_v25, %v1901_v25  ;;  %v1113_v22 = vadd.f32 %v1112_v21, %v1901_v25 }
  0xd6   : > { %1516 = vst [vmem:[%s1879_s24 + $0x10] sm:$0xff] %v1448_v26   ;;  %v928_v28 = vpop.f32.mrf.mxu2 }
  0xd7   : > { %v1017_v29 = vpop.f32.mrf.mxu3 }
  0xd8   : > { %v891_v30 = vpop.f32.mrf.mxu0  ;;  %v1907_v20 = vadd.f32 %v1017_v29, %v928_v28  ;;  %v1182_v29 = vadd.f32 %v1181_v11, %v1151_v19 }
  0xd9   : > { %v980_v31 = vpop.f32.mrf.mxu1 }
  0xda   : > { %v1488_v24 = vpack.c.bf16 %v1907_v20, %v1905_v27  ;;  %v981_v36 = vadd.f32 %v980_v31, %v891_v30 }
  0xdc   : > { %1524 = vst [vmem:[%s1879_s24 + $0x50] sm:$0xff] %v1488_v24   ;;  %v1152_v14 = vmul.f32 %v981_v36, %v981_v36  ;;  %v1114_v24 = vadd.f32 %v1113_v22, %v981_v36  ;;  %v1162_v22 = vmul.f32 %v1882_v55, %v1882_v55 }
  0xde   : > { %v931_v32 = vpop.f32.mrf.mxu2 }
  0xdf   : > { %v1020_v33 = vpop.f32.mrf.mxu3 }
  0xe0   : > { %v893_v34 = vpop.f32.mrf.mxu0  ;;  %v1913_v39 = vadd.f32 %v1020_v33, %v931_v32 }
  0xe1   : > { %v982_v35 = vpop.f32.mrf.mxu1 }
  0xe2   : > { %v983_v37 = vadd.f32 %v982_v35, %v893_v34  ;;  %v1183_v35 = vadd.f32 %v1182_v29, %v1152_v14  ;;  %v1163_v29 = vmul.f32 %v1884_v60, %v1884_v60 }
  0xe4   : > { %v1453_v38 = vpack.c.bf16 %v983_v37, %v981_v36  ;;  %v1153_v32 = vmul.f32 %v983_v37, %v983_v37 }
  0xe6   : > { %1517 = vst [vmem:[%s1879_s24 + $0x18] sm:$0xff] %v1453_v38   ;;  %v933_v40 = vpop.f32.mrf.mxu2  ;;  %v1115_v38 = vadd.f32 %v1114_v24, %v983_v37  ;;  %v1184_v8 = vadd.f32 %v1183_v35, %v1153_v32 }
  0xe7   : > { %v1022_v41 = vpop.f32.mrf.mxu3 }
  0xe8   : > { %v896_v42 = vpop.f32.mrf.mxu0  ;;  %v1915_v44 = vadd.f32 %v1022_v41, %v933_v40 }
  0xe9   : > { %v985_v43 = vpop.f32.mrf.mxu1 }
  0xea   : > { %v1493_v45 = vpack.c.bf16 %v1915_v44, %v1913_v39  ;;  %v986_v50 = vadd.f32 %v985_v43, %v896_v42 }
  0xec   : > { %1525 = vst [vmem:[%s1879_s24 + $0x58] sm:$0xff] %v1493_v45   ;;  %v1154_v40 = vmul.f32 %v986_v50, %v986_v50  ;;  %v1116_v23 = vadd.f32 %v1115_v38, %v986_v50 }
  0xee   : > { %v936_v46 = vpop.f32.mrf.mxu2  ;;  %v1185_v42 = vadd.f32 %v1184_v8, %v1154_v40 }
  0xef   : > { %v1025_v47 = vpop.f32.mrf.mxu3 }
  0xf0   : > { %v898_v48 = vpop.f32.mrf.mxu0  ;;  %v1921_v53 = vadd.f32 %v1025_v47, %v936_v46 }
  0xf1   : > { %v987_v49 = vpop.f32.mrf.mxu1 }
  0xf2   : > { %v988_v51 = vadd.f32 %v987_v49, %v898_v48 }
  0xf4   : > { %v1458_v52 = vpack.c.bf16 %v988_v51, %v986_v50  ;;  %v1155_v10 = vmul.f32 %v988_v51, %v988_v51  ;;  %v1117_v43 = vadd.f32 %v1116_v23, %v988_v51 }
  0xf6   : > { %1518 = vst [vmem:[%s1879_s24 + $0x20] sm:$0xff] %v1458_v52   ;;  %v938_v54 = vpop.f32.mrf.mxu2  ;;  %v1186_v52 = vadd.f32 %v1185_v42, %v1155_v10  ;;  %v1167_v42 = vmul.f32 %v1907_v20, %v1907_v20 }
  0xf7   : > { %v1027_v56 = vpop.f32.mrf.mxu3 }
  0xf8   : > { %v901_v57 = vpop.f32.mrf.mxu0  ;;  %v1923_v59 = vadd.f32 %v1027_v56, %v938_v54 }
  0xf9   : > { %v990_v58 = vpop.f32.mrf.mxu1 }
  0xfa   : > { %v1498_v61 = vpack.c.bf16 %v1923_v59, %v1921_v53  ;;  %v991_v2 = vadd.f32 %v990_v58, %v901_v57 }
  0xfc   : > { %1526 = vst [vmem:[%s1879_s24 + $0x60] sm:$0xff] %v1498_v61   ;;  %v1156_v45 = vmul.f32 %v991_v2, %v991_v2  ;;  %v1118_v37 = vadd.f32 %v1117_v43, %v991_v2 }
  0xfe   : > { %v941_v62 = vpop.f32.mrf.mxu2  ;;  %v1187_v56 = vadd.f32 %v1186_v52, %v1156_v45  ;;  %v1168_v45 = vmul.f32 %v1913_v39, %v1913_v39 }
  0xff   : > { %v1030_v63 = vpop.f32.mrf.mxu3 }
 0x100   : > { %v903_v0 = vpop.f32.mrf.mxu0  ;;  %v1929_v5 = vadd.f32 %v1030_v63, %v941_v62 }
 0x101   : > { %v992_v1 = vpop.f32.mrf.mxu1 }
 0x102   : > { %v993_v3 = vadd.f32 %v992_v1, %v903_v0 }
 0x104   : > { %v1463_v4 = vpack.c.bf16 %v993_v3, %v991_v2  ;;  %v1157_v54 = vmul.f32 %v993_v3, %v993_v3  ;;  %v1119_v57 = vadd.f32 %v1118_v37, %v993_v3 }
 0x106   : > { %1519 = vst [vmem:[%s1879_s24 + $0x28] sm:$0xff] %v1463_v4   ;;  %v943_v6 = vpop.f32.mrf.mxu2  ;;  %v1188_v62 = vadd.f32 %v1187_v56, %v1157_v54 }
 0x107   : > { %v1032_v7 = vpop.f32.mrf.mxu3 }
 0x108   : > { %v906_v9 = vpop.f32.mrf.mxu0  ;;  %v1931_v15 = vadd.f32 %v1032_v7, %v943_v6 }
 0x109   : > { %v995_v13 = vpop.f32.mrf.mxu1 }
 0x10a   : > { %v1503_v17 = vpack.c.bf16 %v1931_v15, %v1929_v5  ;;  %v996_v33 = vadd.f32 %v995_v13, %v906_v9 }
 0x10c   : > { %1527 = vst [vmem:[%s1879_s24 + $0x68] sm:$0xff] %v1503_v17   ;;  %v1158_v58 = vmul.f32 %v996_v33, %v996_v33  ;;  %v1120_v51 = vadd.f32 %v1119_v57, %v996_v33 }
 0x10e   : > { %v946_v26 = vpop.f32.mrf.mxu2  ;;  %v1189_v0 = vadd.f32 %v1188_v62, %v1158_v58 }
 0x10f   : > { %v1035_v28 = vpop.f32.mrf.mxu3 }
 0x110   : > { %v908_v30 = vpop.f32.mrf.mxu0  ;;  %v1942_v25 = vadd.f32 %v1035_v28, %v946_v26 }
 0x111   : > { %v997_v31 = vpop.f32.mrf.mxu1 }
 0x112   : > { %v998_v34 = vadd.f32 %v997_v31, %v908_v30  ;;  %v1174_v62 = vmul.f32 %v1942_v25, %v1942_v25 }
 0x114   : > { %v1468_v41 = vpack.c.bf16 %v998_v34, %v996_v33  ;;  %v1159_v63 = vmul.f32 %v998_v34, %v998_v34  ;;  %v1121_v1 = vadd.f32 %v1120_v51, %v998_v34  ;;  %v1164_v34 = vmul.f32 %v1894_v12, %v1894_v12 }
 0x116   : > { %1520 = vst [vmem:[%s1879_s24 + $0x30] sm:$0xff] %v1468_v41   ;;  %v948_v46 = vpop.f32.mrf.mxu2  ;;  %v1190_v13 = vadd.f32 %v1189_v0, %v1159_v63 }
 0x117   : > { %v1037_v47 = vpop.f32.mrf.mxu3 }
 0x118   : > { %v911_v36 = vpop.f32.mrf.mxu0  ;;  %v1944_v49 = vadd.f32 %v1037_v47, %v948_v46  ;;  %v1169_v47 = vmul.f32 %v1915_v44, %v1915_v44 }
 0x119   : > { %v1000_v48 = vpop.f32.mrf.mxu1 }
 0x11a   : > { %v1508_v50 = vpack.c.bf16 %v1944_v49, %v1942_v25  ;;  %v1001_v61 = vadd.f32 %v1000_v48, %v911_v36 }
 0x11c   : > { %1528 = vst [vmem:[%s1879_s24 + $0x70] sm:$0xff] %v1508_v50   ;;  %v1160_v4 = vmul.f32 %v1001_v61, %v1001_v61  ;;  %v1122_v16 = vadd.f32 %v1121_v1, %v1001_v61 }
 0x11e   : > { %v951_v6 = vpop.f32.mrf.mxu2  ;;  %v1191_v19 = vadd.f32 %v1190_v13, %v1160_v4  ;;  %v1215_v13 = vlaneseq }
 0x11f   : > { %v1040_v7 = vpop.f32.mrf.mxu3 }
 0x120   : > { %v913_v9 = vpop.f32.mrf.mxu0  ;;  %v1041_v28 = vadd.f32 %v1040_v7, %v951_v6 }
 0x121   : > { %v1002_v2 = vpop.f32.mrf.mxu1 }
 0x122   : > { %v1003_v17 = vadd.f32 %v1002_v2, %v913_v9  ;;  %v1176_v4 = vmul.f32 %v1041_v28, %v1041_v28 }
 0x124   : > { %v1473_v21 = vpack.c.bf16 %v1003_v17, %v1001_v61  ;;  %v1123_v3 = vadd.f32 %v1122_v16, %v1003_v17  ;;  %v1161_v11 = vmul.f32 %v1003_v17, %v1003_v17 }
 0x126   : > { %1521 = vst [vmem:[%s1879_s24 + $0x38] sm:$0xff] %v1473_v21   ;;  %v1124_v14 = vadd.f32 %v1123_v3, %v1882_v55  ;;  %v1192_v26 = vadd.f32 %v1191_v19, %v1161_v11  ;;  %v953_v24 = vpop.f32.mrf.mxu2  ;;  %v1165_v55 = vmul.f32 %v1896_v18, %v1896_v18  ;;  %v1216_v21 = vshrl.u32 %v1215_v13, 7 }
 0x127   : > { %v1042_v32 = vpop.f32.mrf.mxu3 }
 0x128   : > { %v1125_v30 = vadd.f32 %v1124_v14, %v1884_v60  ;;  %v1193_v31 = vadd.f32 %v1192_v26, %v1162_v22  ;;  %v1043_v33 = vadd.f32 %v1042_v32, %v953_v24  ;;  %v1166_v60 = vmul.f32 %v1905_v27, %v1905_v27 }
 0x129   : > { %vm1217_vm0 = vcmp.eq.s32.totalorder %v1216_v21, 0 }
 0x12a   : > { %v1126_v35 = vadd.f32 %v1125_v30, %v1894_v12  ;;  %v1194_v38 = vadd.f32 %v1193_v31, %v1163_v29  ;;  %v1513_v40 = vpack.c.bf16 %v1043_v33, %v1041_v28 }
 0x12c   : > { %v1127_v41 = vadd.f32 %v1126_v35, %v1896_v18  ;;  %v1195_v8 = vadd.f32 %v1194_v38, %v1164_v34  ;;  %1529 = vst [vmem:[%s1879_s24 + $0x78] sm:$0xff] %v1513_v40  }
 0x12e   : > { %v1128_v23 = vadd.f32 %v1127_v41, %v1905_v27  ;;  %v1196_v10 = vadd.f32 %v1195_v8, %v1165_v55  ;;  %v1170_v27 = vmul.f32 %v1921_v53, %v1921_v53 }
 0x130   : > { %v1129_v12 = vadd.f32 %v1128_v23, %v1907_v20  ;;  %v1197_v43 = vadd.f32 %v1196_v10, %v1166_v60  ;;  %v1171_v20 = vmul.f32 %v1923_v59, %v1923_v59 }
 0x132   : > { %v1198_v46 = vadd.f32 %v1197_v43, %v1167_v42  ;;  %v1130_v18 = vadd.f32 %v1129_v12, %v1913_v39  ;;  %v1172_v39 = vmul.f32 %v1929_v5, %v1929_v5 }
 0x134   : > { %v1131_v36 = vadd.f32 %v1130_v18, %v1915_v44  ;;  %v1199_v48 = vadd.f32 %v1198_v46, %v1168_v45  ;;  %v1173_v44 = vmul.f32 %v1931_v15, %v1931_v15 }
 0x136   : > { %v1132_v52 = vadd.f32 %v1131_v36, %v1921_v53  ;;  %v1200_v37 = vadd.f32 %v1199_v48, %v1169_v47 }
 0x138   : > { %v1133_v54 = vadd.f32 %v1132_v52, %v1923_v59  ;;  %v1201_v50 = vadd.f32 %v1200_v37, %v1170_v27 }
 0x13a   : > { %v1134_v56 = vadd.f32 %v1133_v54, %v1929_v5  ;;  %v1202_v57 = vadd.f32 %v1201_v50, %v1171_v20  ;;  %v1175_v5 = vmul.f32 %v1944_v49, %v1944_v49 }
 0x13c   : > { %v1135_v58 = vadd.f32 %v1134_v56, %v1931_v15  ;;  %v1203_v53 = vadd.f32 %v1202_v57, %v1172_v39  ;;  %v1177_v15 = vmul.f32 %v1043_v33, %v1043_v33 }
 0x13e   : > { %v1136_v61 = vadd.f32 %v1135_v58, %v1942_v25  ;;  %v1204_v59 = vadd.f32 %v1203_v53, %v1173_v44 }
 0x140   : > { %v1205_v51 = vadd.f32 %v1204_v59, %v1174_v62  ;;  %v1137_v63 = vadd.f32 %v1136_v61, %v1944_v49 }
 0x142   : > { %v1206_v0 = vadd.f32 %v1205_v51, %v1175_v5  ;;  %v1138_v1 = vadd.f32 %v1137_v63, %v1041_v28 }
 0x144   : > { %v1207_v6 = vadd.f32 %v1206_v0, %v1176_v4  ;;  %v1139_v7 = vadd.f32 %v1138_v1, %v1043_v33 }
 0x146   : > { %v1140_v9 = vrot.slane %v1139_v7, 4  ;;  %v1208_v2 = vadd.f32 %v1207_v6, %v1177_v15 }
 0x148   : > { %v1141_v16 = vadd.f32 %v1140_v9, %v1139_v7  ;;  %v1209_v25 = vrot.slane %v1208_v2, 4 }
 0x14a   : > { %v1142_v17 = vrot.slane %v1141_v16, 2  ;;  %v1210_v19 = vadd.f32 %v1209_v25, %v1208_v2 }
 0x14c   : > { %v1143_v3 = vadd.f32 %v1142_v17, %v1141_v16  ;;  %v1211_v11 = vrot.slane %v1210_v19, 2 }
 0x14e   : > { %v1144_v49 = vrot.slane %v1143_v3, 1  ;;  %v1212_v22 = vadd.f32 %v1211_v11, %v1210_v19 }
 0x150   : > { %v1145_v14 = vadd.f32 %v1144_v49, %v1143_v3  ;;  %v1213_v26 = vrot.slane %v1212_v22, 1 }
 0x152   : > { %v1214_v28 = vadd.f32 %v1213_v26, %v1212_v22  ;;  %v1218_v29 = vsel %vm1217_vm0, %v1145_v14, 0.0 }
 0x153   : > { %1219 = vst [vmem:[%s274_s28] sm:$0xff] %v1218_v29 }
 0x154   : > { %v1220_v30 = vsel %vm1217_vm0, %v1214_v28, 0.0 }
 0x155   : > { %1221 = vst [vmem:[%s278_s7] sm:$0xff] %v1220_v30 }
 0x156 PF: > { %s17_s21 = sadd.s32 1, %s1560_s21  }
 0x157   : > { %p14_p5 = scmp.ge.s32.totalorder %s17_s21, 4  }
 0x159   :  { %16 = sbr.rel (!%p14_p5) target bundleno = 1 (0x1), region = 90 }

// kernel: tile.108
= control target key start
LH: loop header
LB: loop body
LE: loop exit
PB: predicated region body
PF: predicated region fallthrough
CT: control target
= control target key end

     0   :  { %s28_s0 = inlined_call_operand.vmem [shape: f32[8], index: 0, kind: input, shape index: {}]   ;;  %s29_s1 = inlined_call_operand.vmem [shape: f32[9,8], index: 1, kind: output, shape index: {}]  }
   0x1   :  { %v4_v0 = vld [vmem:[%s28_s0] ss:$0 sm:$0xff] }
   0x2   :  { %5 = vst [vmem:[%s29_s1] sm:$0xff] %v4_v0 }
   0x3   :  { %8 = vst [vmem:[%s29_s1 + $0x8] sm:$0xff] %v4_v0 }

// kernel: tile.109
= control target key start
LH: loop header
LB: loop body
LE: loop exit
PB: predicated region body
PF: predicated region fallthrough
CT: control target
= control target key end

     0   :  { %s75_s10 = smov 64   ;;  %s76_s11 = smov 48   ;;  %vm3_vm0 = vcmask 64512   ;;  %vm9_vm1 = vcmask 589312   ;;  %vm15_vm2 = vcmask 523712   ;;  %vm21_vm3 = vcmask 458112   ;;  %s123_s0 = inlined_call_operand.vmem [shape: f32[9,8], index: 0, kind: input, shape index: {}]   ;;  %s124_s1 = inlined_call_operand.vmem [shape: f32[72], index: 1, kind: output, shape index: {}]  }
   0x1   :  { %v59_v0 = vld [vmem:[%s123_s0 + $0x8] sm:$0x1]   ;;  %v61_v1 = vld [vmem:[%s123_s0 + $0x6] sm:$0x1]   ;;  %v63_v2 = vld [vmem:[%s123_s0 + $0x4] sm:$0x1]  }
   0x2   :  { %7 = vrot.lane.b32.xlu0 %v59_v0, %s75_s10  ;;  %19 = vrot.lane.b32.xlu1 %v61_v1, %s76_s11  ;;  %s77_s14 = smov 32   ;;  %v60_v3 = vld [vmem:[%s123_s0 + $0x7] sm:$0x1]   ;;  %v62_v4 = vld [vmem:[%s123_s0 + $0x5] sm:$0x1]   ;;  %s78_s19 = smov 56  }
   0x3   :  { %31 = vrot.lane.b32.xlu2 %v63_v2, %s77_s14  ;;  %s79_s20 = smov 40   ;;  %v64_v5 = vld [vmem:[%s123_s0 + $0x3] sm:$0x1]   ;;  %s80_s23 = smov 24   ;;  %v65_v6 = vld [vmem:[%s123_s0 + $0x2] sm:$0x1]  }
   0x4   :  { %v66_v7 = vld [vmem:[%s123_s0 + $0x1] sm:$0x1]   ;;  %s81_s28 = smov 16   ;;  %s82_s29 = smov 8   ;;  %v2_v8 = vld [vmem:[%s123_s0] sm:$0x1]  }
   0x5   :  { %4 = vst.msk [vmem:[#allocation0] sm:$0x1] %vm3_vm0, %v2_v8   ;;  %vm27_vm4 = vcmask 392512   ;;  %vm33_vm5 = vcmask 326912   ;;  %vm39_vm6 = vcmask 261312   ;;  %vm45_vm7 = vcmask 195712  }
   0x6   :  { %vm51_vm8 = vcmask 130112  }
   0xa   :  { %13 = vrot.lane.b32.xlu0 %v60_v3, %s78_s19  ;;  %25 = vrot.lane.b32.xlu1 %v62_v4, %s79_s20 }
   0xb   :  { %37 = vrot.lane.b32.xlu2 %v64_v5, %s80_s23 }
  0x12   :  { %43 = vrot.lane.b32.xlu0 %v65_v6, %s81_s28  ;;  %49 = vrot.lane.b32.xlu1 %v66_v7, %s82_s29 }
  0x5d   :  { %v32_v9 = vpop.permute.xlu2 %31  }
  0x65   :  { %v38_v10 = vpop.permute.xlu2 %37  }
  0x74   :  { %v8_v11 = vpop.permute.xlu0 %7   ;;  %v20_v12 = vpop.permute.xlu1 %19  }
  0x75   :  { %10 = vst.msk [vmem:[#allocation0] sm:$0x1] %vm9_vm1, %v8_v11  }
  0x7c   :  { %v14_v13 = vpop.permute.xlu0 %13   ;;  %v26_v14 = vpop.permute.xlu1 %25  }
  0x7d   :  { %16 = vst.msk [vmem:[#allocation0] sm:$0x1] %vm15_vm2, %v14_v13  }
  0x7e   :  { %22 = vst.msk [vmem:[#allocation0] sm:$0x1] %vm21_vm3, %v20_v12  }
  0x7f   :  { %28 = vst.msk [vmem:[#allocation0] sm:$0x1] %vm27_vm4, %v26_v14  }
  0x80   :  { %34 = vst.msk [vmem:[#allocation0] sm:$0x1] %vm33_vm5, %v32_v9  }
  0x81   :  { %40 = vst.msk [vmem:[#allocation0] sm:$0x1] %vm39_vm6, %v38_v10  }
  0x84   :  { %v44_v15 = vpop.permute.xlu0 %43   ;;  %v50_v16 = vpop.permute.xlu1 %49  }
  0x85   :  { %46 = vst.msk [vmem:[#allocation0] sm:$0x1] %vm45_vm7, %v44_v15  }
  0x86   :  { %52 = vst.msk [vmem:[#allocation0] sm:$0x1] %vm51_vm8, %v50_v16  }
  0x8d   :  { %v55_v17 = vld [vmem:[#allocation0] sm:$0x1] }
  0x8e   :  { %58 = vst [vmem:[%s124_s1] sm:$0x1] %v55_v17 }

// kernel: _lambda_.13
= control target key start
LH: loop header
LB: loop body
LE: loop exit
PB: predicated region body
PF: predicated region fallthrough
CT: control target
= control target key end

     0   :  { %s1276_s21 = smov 0   ;;  %s1563_s0 = inlined_call_operand.vmem [shape: bf16[512,128], index: 0, kind: input, shape index: {}]   ;;  %s1564_s1 = inlined_call_operand.vmem [shape: f32[1,128], index: 1, kind: input, shape index: {}]   ;;  %s1565_s2 = inlined_call_operand.vmem [shape: f32[1,128], index: 2, kind: input, shape index: {}]   ;;  %s1566_s3 = inlined_call_operand.vmem [shape: bf16[128,128], index: 3, kind: input, shape index: {}]   ;;  %s1567_s4 = inlined_call_operand.vmem [shape: bf16[512,128], index: 4, kind: output, shape index: {0}]   ;;  %s1568_s5 = inlined_call_operand.vmem [shape: f32[16,128], index: 5, kind: output, shape index: {1}]   ;;  %s1569_s6 = inlined_call_operand.vmem [shape: f32[16,128], index: 6, kind: output, shape index: {2}]  }
   0x1 LB: > { %s1282_s22 = sadd.s32 4294967295, %s1239_s21   ;;  %p976_p0 = scmp.ge.s32.totalorder %s1239_s21, 1  ;;  %s1239_s21 = sphi %s1276_s21, %s17_s21  }
   0x2   : > { %p218_p1 = scmp.lt.s32.totalorder %s1239_s21, 3 }
   0x4   : > { %p219_p2 = pnand %p976_p0, %p218_p1 }
   0x5   : > { %s977_s25 = sshll.u32 (!%p219_p2), %s1282_s22, 5  ;;  %p268_p4 = scmp.lt.s32.totalorder (!%p219_p2), %s1282_s22, 1 }
   0x6   : > { %222 = sbr.rel (%p219_p2) target bundleno = 291 (0x123), region = 36  ;;  %p257_p3 = scmp.lt.s32.totalorder (!%p219_p2), %s977_s25, 63 }
   0xb   : > { %v1024_v0 = vld [vmem:[%s1566_s3 + $0x38] sm:$0xff]  ;;  %v1023_v1 = vld [vmem:[%s1566_s3 + $0x30] sm:$0xff]  ;;  %s1571_s25 = smov (!%p257_p3, %s977_s25), 63  ;;  %v1022_v2 = vld [vmem:[%s1566_s3 + $0x28] sm:$0xff]  ;;  %s1573_s22 = smov (!%p268_p4, %s1282_s22), 1 }
   0xc   : > { %588 = vmatpush.bf16.msra.mxu0 %v1024_v0  ;;  %1199 = vmatpush.bf16.msra.mxu1 %v1024_v0  ;;  %s978_s28 = sshll.u32 %s1571_s25, 2  ;;  %v1310_v4 = vld [vmem:[%s1564_s1] ss:$0 sm:$0xff]  ;;  %v1020_v19 = vld [vmem:[%s1566_s3 + $0x18] sm:$0xff]  ;;  %v1019_v26 = vld [vmem:[%s1566_s3 + $0x10] sm:$0xff]  ;;  %s981_s25 = sshll.u32 %s1573_s22, 3 }
   0xd   : > { %1200 = vmatpush.bf16.msra.mxu2 %v1024_v0  ;;  %1201 = vmatpush.bf16.msra.mxu3 %v1024_v0  ;;  %s1304_s9 = scalar_lea.vmem %s1563_s0, %s978_s28  ;;  %v1021_v11 = vld [vmem:[%s1566_s3 + $0x20] sm:$0xff]  ;;  %v1018_v35 = vld [vmem:[%s1566_s3 + $0x8] sm:$0xff]  ;;  %s1424_s30 = scalar_lea.vmem %s1567_s4, %s978_s28 }
   0xe   : > { %v1026_v3 = vld [vmem:[%s1304_s9] sm:$0xff]   ;;  %v1169_v28 = vld [vmem:[%s1304_s9 + $0x8] sm:$0xff]   ;;  %s271_s8 = scalar_lea.vmem %s1568_s5, %s981_s25  ;;  %s275_s11 = scalar_lea.vmem %s1569_s6, %s981_s25 }
   0xf   : > { %v1172_v5 = vld [vmem:[%s1304_s9 + $0x20] sm:$0xff]   ;;  %v1027_v6 = vunpack.c.l.bf16 %v1026_v3  ;;  %v1028_v7 = vunpack.c.h.bf16 %v1026_v3  ;;  %v1173_v34 = vld [vmem:[%s1304_s9 + $0x28] sm:$0xff]   ;;  %v1031_v36 = vunpack.c.l.bf16 %v1169_v28  ;;  %v1032_v38 = vunpack.c.h.bf16 %v1169_v28 }
  0x10   : > { %589 = vmatpush.bf16.msra.mxu0 %v1023_v1  ;;  %1202 = vmatpush.bf16.msra.mxu1 %v1023_v1  ;;  %v1176_v8 = vld [vmem:[%s1304_s9 + $0x40] sm:$0xff]   ;;  %v1043_v9 = vunpack.c.l.bf16 %v1172_v5  ;;  %v1044_v10 = vunpack.c.h.bf16 %v1172_v5  ;;  %v1177_v41 = vld [vmem:[%s1304_s9 + $0x48] sm:$0xff]   ;;  %v1047_v43 = vunpack.c.l.bf16 %v1173_v34  ;;  %v1048_v47 = vunpack.c.h.bf16 %v1173_v34 }
  0x11   : > { %1203 = vmatpush.bf16.msra.mxu2 %v1023_v1  ;;  %1204 = vmatpush.bf16.msra.mxu3 %v1023_v1  ;;  %v344_v12 = vmul.f32 %v1310_v4, %v1027_v6  ;;  %v1321_v13 = vld [vmem:[%s1565_s2] ss:$0 sm:$0xff]  ;;  %v1059_v14 = vunpack.c.l.bf16 %v1176_v8  ;;  %v1060_v15 = vunpack.c.h.bf16 %v1176_v8  ;;  %v345_v16 = vmul.f32 %v1310_v4, %v1028_v7  ;;  %v1170_v8 = vld [vmem:[%s1304_s9 + $0x10] sm:$0xff]  }
  0x12   : > { %v352_v17 = vmul.f32 %v1310_v4, %v1043_v9  ;;  %v353_v18 = vmul.f32 %v1310_v4, %v1044_v10  ;;  %v1180_v44 = vld [vmem:[%s1304_s9 + $0x60] sm:$0xff]   ;;  %v1063_v48 = vunpack.c.l.bf16 %v1177_v41  ;;  %v346_v50 = vmul.f32 %v1310_v4, %v1031_v36 }
  0x13   : > { %v380_v20 = vadd.f32 %v1321_v13, %v344_v12  ;;  %v360_v21 = vmul.f32 %v1310_v4, %v1059_v14  ;;  %v361_v22 = vmul.f32 %v1310_v4, %v1060_v15  ;;  %v381_v23 = vadd.f32 %v1321_v13, %v345_v16  ;;  %v1017_v49 = vld [vmem:[%s1566_s3] sm:$0xff] }
  0x14   : > { %590 = vmatpush.bf16.msra.mxu0 %v1022_v2  ;;  %1205 = vmatpush.bf16.msra.mxu1 %v1022_v2  ;;  %v388_v24 = vadd.f32 %v1321_v13, %v352_v17  ;;  %v389_v25 = vadd.f32 %v1321_v13, %v353_v18  ;;  %v1064_v51 = vunpack.c.h.bf16 %v1177_v41  ;;  %v347_v52 = vmul.f32 %v1310_v4, %v1032_v38 }
  0x15   : > { %1206 = vmatpush.bf16.msra.mxu2 %v1022_v2  ;;  %1207 = vmatpush.bf16.msra.mxu3 %v1022_v2  ;;  %v444_v27 = vmul.f32 0.2, %v380_v20  ;;  %v396_v29 = vadd.f32 %v1321_v13, %v360_v21  ;;  %v397_v30 = vadd.f32 %v1321_v13, %v361_v22  ;;  %vm412_vm0 = vcmp.ge.f32.partialorder %v380_v20, 0.0 }
  0x16   : > { %v445_v31 = vmul.f32 0.2, %v381_v23  ;;  %vm413_vm1 = vcmp.ge.f32.partialorder %v381_v23, 0.0  ;;  %v452_v32 = vmul.f32 0.2, %v388_v24  ;;  %vm420_vm2 = vcmp.ge.f32.partialorder %v388_v24, 0.0 }
  0x17   : > { %v453_v33 = vmul.f32 0.2, %v389_v25  ;;  %vm421_vm3 = vcmp.ge.f32.partialorder %v389_v25, 0.0  ;;  %v476_v37 = vsel %vm412_vm0, %v380_v20, %v444_v27  ;;  %v460_v39 = vmul.f32 0.2, %v396_v29 }
  0x18   : > { %591 = vmatpush.bf16.msra.mxu0 %v1021_v11  ;;  %1208 = vmatpush.bf16.msra.mxu1 %v1021_v11  ;;  %v461_v40 = vmul.f32 0.2, %v397_v30  ;;  %v477_v42 = vsel %vm413_vm1, %v381_v23, %v445_v31  ;;  %vm428_vm4 = vcmp.ge.f32.partialorder %v396_v29, 0.0  ;;  %vm429_vm5 = vcmp.ge.f32.partialorder %v397_v30, 0.0  ;;  %v1178_v31 = vld [vmem:[%s1304_s9 + $0x50] sm:$0xff]  }
  0x19   : > { %1209 = vmatpush.bf16.msra.mxu2 %v1021_v11  ;;  %1210 = vmatpush.bf16.msra.mxu3 %v1021_v11  ;;  %v484_v45 = vsel %vm420_vm2, %v388_v24, %v452_v32  ;;  %v485_v46 = vsel %vm421_vm3, %v389_v25, %v453_v33  ;;  %v492_v53 = vsel %vm428_vm4, %v396_v29, %v460_v39  ;;  %v1075_v55 = vunpack.c.l.bf16 %v1180_v44  ;;  %v1174_v25 = vld [vmem:[%s1304_s9 + $0x30] sm:$0xff]  }
  0x1a   : > { %v493_v54 = vsel %vm429_vm5, %v397_v30, %v461_v40  ;;  %v508_v56 = vpack.c.bf16 %v477_v42, %v476_v37  ;;  %v512_v57 = vpack.c.bf16 %v485_v46, %v484_v45  ;;  %v354_v58 = vmul.f32 %v1310_v4, %v1047_v43 }
  0x1b   : > { %v355_v59 = vmul.f32 %v1310_v4, %v1048_v47  ;;  %v362_v60 = vmul.f32 %v1310_v4, %v1063_v48  ;;  %v1076_v61 = vunpack.c.h.bf16 %v1180_v44  ;;  %v368_v62 = vmul.f32 %v1310_v4, %v1075_v55 }
  0x1c   : > { %592 = vmatpush.bf16.msra.mxu0 %v1020_v19  ;;  %1211 = vmatpush.bf16.msra.mxu1 %v1020_v19  ;;  %v516_v63 = vpack.c.bf16 %v493_v54, %v492_v53  ;;  %v363_v0 = vmul.f32 %v1310_v4, %v1064_v51  ;;  %v382_v1 = vadd.f32 %v1321_v13, %v346_v50  ;;  %v1035_v16 = vunpack.c.l.bf16 %v1170_v8 }
  0x1d   : > { %1212 = vmatpush.bf16.msra.mxu2 %v1020_v19  ;;  %1213 = vmatpush.bf16.msra.mxu3 %v1020_v19  ;;  %v383_v2 = vadd.f32 %v1321_v13, %v347_v52  ;;  %v369_v3 = vmul.f32 %v1310_v4, %v1076_v61  ;;  %v404_v5 = vadd.f32 %v1321_v13, %v368_v62  ;;  %v1036_v29 = vunpack.c.h.bf16 %v1170_v8  ;;  %v1182_v62 = vld [vmem:[%s1304_s9 + $0x70] sm:$0xff]  }
  0x1e   : > { %v390_v6 = vadd.f32 %v1321_v13, %v354_v58  ;;  %v391_v7 = vadd.f32 %v1321_v13, %v355_v59  ;;  %v398_v9 = vadd.f32 %v1321_v13, %v362_v60  ;;  %v399_v10 = vadd.f32 %v1321_v13, %v363_v0 }
  0x1f   : > { %v405_v11 = vadd.f32 %v1321_v13, %v369_v3  ;;  %vm436_vm6 = vcmp.ge.f32.partialorder %v404_v5, 0.0  ;;  %v468_v12 = vmul.f32 0.2, %v404_v5  ;;  %vm414_vm7 = vcmp.ge.f32.partialorder %v382_v1, 0.0 }
  0x20   : > { %593 = vmatpush.bf16.msra.mxu0 %v1019_v26  ;;  %1214 = vmatpush.bf16.msra.mxu1 %v1019_v26  ;;  %v446_v14 = vmul.f32 0.2, %v382_v1  ;;  %v447_v15 = vmul.f32 0.2, %v383_v2  ;;  %vm415_vm9 = vcmp.ge.f32.partialorder %v383_v2, 0.0  ;;  %vm422_vm10 = vcmp.ge.f32.partialorder %v390_v6, 0.0 }
  0x21   : > { %1215 = vmatpush.bf16.msra.mxu2 %v1019_v26  ;;  %1216 = vmatpush.bf16.msra.mxu3 %v1019_v26  ;;  %vm437_vm8 = vcmp.ge.f32.partialorder %v405_v11, 0.0  ;;  %v469_v17 = vmul.f32 0.2, %v405_v11  ;;  %v500_v18 = vsel %vm436_vm6, %v404_v5, %v468_v12  ;;  %v454_v19 = vmul.f32 0.2, %v390_v6  ;;  %v1181_v26 = vld [vmem:[%s1304_s9 + $0x68] sm:$0xff]  }
  0x22   : > { %v455_v20 = vmul.f32 0.2, %v391_v7  ;;  %vm423_vm11 = vcmp.ge.f32.partialorder %v391_v7, 0.0  ;;  %v462_v21 = vmul.f32 0.2, %v398_v9  ;;  %vm430_vm12 = vcmp.ge.f32.partialorder %v398_v9, 0.0 }
  0x23   : > { %v463_v22 = vmul.f32 0.2, %v399_v10  ;;  %v501_v23 = vsel %vm437_vm8, %v405_v11, %v469_v17  ;;  %vm431_vm13 = vcmp.ge.f32.partialorder %v399_v10, 0.0  ;;  %v478_v27 = vsel %vm414_vm7, %v382_v1, %v446_v14 }
  0x24   : > { %594 = vmatpush.bf16.msra.mxu0 %v1018_v35  ;;  %1217 = vmatpush.bf16.msra.mxu1 %v1018_v35  ;;  %v520_v24 = vpack.c.bf16 %v501_v23, %v500_v18  ;;  %v479_v28 = vsel %vm415_vm9, %v383_v2, %v447_v15  ;;  %v348_v30 = vmul.f32 %v1310_v4, %v1035_v16  ;;  %v1079_v34 = vunpack.c.l.bf16 %v1181_v26  ;;  %v1179_v18 = vld [vmem:[%s1304_s9 + $0x58] sm:$0xff]  }
  0x25   : > { %1218 = vmatpush.bf16.msra.mxu2 %v1018_v35  ;;  %1219 = vmatpush.bf16.msra.mxu3 %v1018_v35  ;;  %v486_v32 = vsel %vm422_vm10, %v390_v6, %v454_v19  ;;  %v487_v33 = vsel %vm423_vm11, %v391_v7, %v455_v20  ;;  %v1080_v35 = vunpack.c.h.bf16 %v1181_v26  ;;  %v494_v36 = vsel %vm430_vm12, %v398_v9, %v462_v21  ;;  %v1171_v6 = vld [vmem:[%s1304_s9 + $0x18] sm:$0xff]  }
  0x26   : > { %v495_v37 = vsel %vm431_vm13, %v399_v10, %v463_v22  ;;  %v1051_v38 = vunpack.c.l.bf16 %v1174_v25  ;;  %v1052_v39 = vunpack.c.h.bf16 %v1174_v25  ;;  %v1067_v40 = vunpack.c.l.bf16 %v1178_v31  ;;  %v1175_v10 = vld [vmem:[%s1304_s9 + $0x38] sm:$0xff]  }
  0x27   : > { %v1068_v41 = vunpack.c.h.bf16 %v1178_v31  ;;  %v370_v42 = vmul.f32 %v1310_v4, %v1079_v34  ;;  %v371_v43 = vmul.f32 %v1310_v4, %v1080_v35  ;;  %v509_v44 = vpack.c.bf16 %v479_v28, %v478_v27 }
  0x28   : > { %595 = vmatpush.bf16.msra.mxu0 %v1017_v49  ;;  %1220 = vmatpush.bf16.msra.mxu1 %v1017_v49  ;;  %v513_v45 = vpack.c.bf16 %v487_v33, %v486_v32  ;;  %v349_v46 = vmul.f32 %v1310_v4, %v1036_v29  ;;  %v517_v48 = vpack.c.bf16 %v495_v37, %v494_v36  ;;  %v1083_v2 = vunpack.c.l.bf16 %v1182_v62 }
  0x29   : > { %1221 = vmatpush.bf16.msra.mxu2 %v1017_v49  ;;  %1222 = vmatpush.bf16.msra.mxu3 %v1017_v49  ;;  %v406_v47 = vadd.f32 %v1321_v13, %v370_v42  ;;  %v356_v49 = vmul.f32 %v1310_v4, %v1051_v38  ;;  %v357_v50 = vmul.f32 %v1310_v4, %v1052_v39  ;;  %v1084_v3 = vunpack.c.h.bf16 %v1182_v62  ;;  %v1183_v42 = vld [vmem:[%s1304_s9 + $0x78] sm:$0xff]  }
  0x2a   : > { %v407_v51 = vadd.f32 %v1321_v13, %v371_v43  ;;  %v384_v52 = vadd.f32 %v1321_v13, %v348_v30  ;;  %v364_v53 = vmul.f32 %v1310_v4, %v1067_v40  ;;  %v365_v54 = vmul.f32 %v1310_v4, %v1068_v41 }
  0x2b   : > { %596 = vmatmul.bf16.vlgmr.msra.gmra.mxu0 %v508_v56  ;;  %616 = vmatmul.bf16.vlgmr.msra.gmra.mxu1 %v512_v57  ;;  %vm438_vm14 = vcmp.ge.f32.partialorder %v406_v47, 0.0  ;;  %v470_v55 = vmul.f32 0.2, %v406_v47  ;;  %v385_v57 = vadd.f32 %v1321_v13, %v349_v46  ;;  %v392_v58 = vadd.f32 %v1321_v13, %v356_v49 }
  0x2c   : > { %636 = vmatmul.bf16.vlgmr.msra.gmra.mxu2 %v516_v63  ;;  %656 = vmatmul.bf16.vlgmr.msra.gmra.mxu3 %v520_v24  ;;  %vm439_vm15 = vcmp.ge.f32.partialorder %v407_v51, 0.0  ;;  %v471_v56 = vmul.f32 0.2, %v407_v51  ;;  %v393_v59 = vadd.f32 %v1321_v13, %v357_v50  ;;  %v400_v63 = vadd.f32 %v1321_v13, %v364_v53 }
  0x2d   : > { %v502_v60 = vsel %vm438_vm14, %v406_v47, %v470_v55  ;;  %v401_v0 = vadd.f32 %v1321_v13, %v365_v54  ;;  %v448_v1 = vmul.f32 0.2, %v384_v52  ;;  %vm416_vm0 = vcmp.ge.f32.partialorder %v384_v52, 0.0 }
  0x2e   : > { %v503_v61 = vsel %vm439_vm15, %v407_v51, %v471_v56  ;;  %vm417_vm1 = vcmp.ge.f32.partialorder %v385_v57, 0.0  ;;  %v449_v5 = vmul.f32 0.2, %v385_v57  ;;  %v456_v8 = vmul.f32 0.2, %v392_v58 }
  0x2f   : > { %v521_v7 = vpack.c.bf16 %v503_v61, %v502_v60  ;;  %v457_v9 = vmul.f32 0.2, %v393_v59  ;;  %v372_v11 = vmul.f32 %v1310_v4, %v1083_v2  ;;  %v373_v12 = vmul.f32 %v1310_v4, %v1084_v3 }
  0x30   : > { %vm424_vm2 = vcmp.ge.f32.partialorder %v392_v58, 0.0  ;;  %vm425_vm3 = vcmp.ge.f32.partialorder %v393_v59, 0.0  ;;  %v464_v14 = vmul.f32 0.2, %v400_v63  ;;  %v465_v15 = vmul.f32 0.2, %v401_v0 }
  0x31   : > { %v480_v16 = vsel %vm416_vm0, %v384_v52, %v448_v1  ;;  %v1039_v17 = vunpack.c.l.bf16 %v1171_v6  ;;  %vm432_vm4 = vcmp.ge.f32.partialorder %v400_v63, 0.0  ;;  %vm433_vm5 = vcmp.ge.f32.partialorder %v401_v0, 0.0 }
  0x32   : > { %v481_v19 = vsel %vm417_vm1, %v385_v57, %v449_v5  ;;  %v1040_v20 = vunpack.c.h.bf16 %v1171_v6  ;;  %v1055_v21 = vunpack.c.l.bf16 %v1175_v10  ;;  %v1056_v22 = vunpack.c.h.bf16 %v1175_v10 }
  0x33   : > { %v488_v23 = vsel %vm424_vm2, %v392_v58, %v456_v8  ;;  %v489_v24 = vsel %vm425_vm3, %v393_v59, %v457_v9  ;;  %v408_v25 = vadd.f32 %v1321_v13, %v372_v11  ;;  %v409_v26 = vadd.f32 %v1321_v13, %v373_v12 }
  0x34   : > { %v496_v27 = vsel %vm432_vm4, %v400_v63, %v464_v14  ;;  %v497_v28 = vsel %vm433_vm5, %v401_v0, %v465_v15  ;;  %v1071_v29 = vunpack.c.l.bf16 %v1179_v18  ;;  %v1072_v30 = vunpack.c.h.bf16 %v1179_v18 }
  0x35   : > { %v510_v31 = vpack.c.bf16 %v481_v19, %v480_v16  ;;  %v350_v32 = vmul.f32 %v1310_v4, %v1039_v17  ;;  %v514_v33 = vpack.c.bf16 %v489_v24, %v488_v23  ;;  %v351_v34 = vmul.f32 %v1310_v4, %v1040_v20 }
  0x36   : > { %v358_v35 = vmul.f32 %v1310_v4, %v1055_v21  ;;  %v359_v36 = vmul.f32 %v1310_v4, %v1056_v22  ;;  %v518_v37 = vpack.c.bf16 %v497_v28, %v496_v27  ;;  %v472_v38 = vmul.f32 0.2, %v408_v25 }
  0x37   : > { %v473_v39 = vmul.f32 0.2, %v409_v26  ;;  %v366_v40 = vmul.f32 %v1310_v4, %v1071_v29  ;;  %v367_v41 = vmul.f32 %v1310_v4, %v1072_v30  ;;  %vm440_vm6 = vcmp.ge.f32.partialorder %v408_v25, 0.0 }
  0x38   : > { %vm441_vm7 = vcmp.ge.f32.partialorder %v409_v26, 0.0  ;;  %v386_v43 = vadd.f32 %v1321_v13, %v350_v32  ;;  %v395_v46 = vadd.f32 %v1321_v13, %v359_v36  ;;  %v504_v47 = vsel %vm440_vm6, %v408_v25, %v472_v38 }
  0x39   : > { %v1087_v49 = vunpack.c.l.bf16 %v1183_v42  ;;  %v1088_v50 = vunpack.c.h.bf16 %v1183_v42  ;;  %v402_v51 = vadd.f32 %v1321_v13, %v366_v40  ;;  %v403_v52 = vadd.f32 %v1321_v13, %v367_v41 }
  0x3a   : > { %vm418_vm8 = vcmp.ge.f32.partialorder %v386_v43, 0.0  ;;  %v450_v53 = vmul.f32 0.2, %v386_v43  ;;  %v459_v57 = vmul.f32 0.2, %v395_v46  ;;  %vm427_vm11 = vcmp.ge.f32.partialorder %v395_v46, 0.0 }
  0x3b   : > { %601 = vmatmul.bf16.gmra.mxu0 %v509_v44  ;;  %621 = vmatmul.bf16.gmra.mxu1 %v513_v45  ;;  %v387_v44 = vadd.f32 %v1321_v13, %v351_v34  ;;  %v394_v45 = vadd.f32 %v1321_v13, %v358_v35  ;;  %v374_v58 = vmul.f32 %v1310_v4, %v1087_v49  ;;  %v466_v60 = vmul.f32 0.2, %v402_v51 }
  0x3c   : > { %641 = vmatmul.bf16.gmra.mxu2 %v517_v48  ;;  %661 = vmatmul.bf16.gmra.mxu3 %v521_v7  ;;  %v505_v48 = vsel %vm441_vm7, %v409_v26, %v473_v39  ;;  %v375_v59 = vmul.f32 %v1310_v4, %v1088_v50  ;;  %v467_v61 = vmul.f32 0.2, %v403_v52  ;;  %vm434_vm12 = vcmp.ge.f32.partialorder %v402_v51, 0.0 }
  0x3d   : > { %vm419_vm9 = vcmp.ge.f32.partialorder %v387_v44, 0.0  ;;  %v451_v54 = vmul.f32 0.2, %v387_v44  ;;  %v522_v55 = vpack.c.bf16 %v505_v48, %v504_v47  ;;  %v458_v56 = vmul.f32 0.2, %v394_v45 }
  0x3e   : > { %vm426_vm10 = vcmp.ge.f32.partialorder %v394_v45, 0.0  ;;  %vm435_vm13 = vcmp.ge.f32.partialorder %v403_v52, 0.0  ;;  %v482_v62 = vsel %vm418_vm8, %v386_v43, %v450_v53  ;;  %v491_v1 = vsel %vm427_vm11, %v395_v46, %v459_v57 }
  0x3f   : > { %v483_v63 = vsel %vm419_vm9, %v387_v44, %v451_v54  ;;  %v490_v0 = vsel %vm426_vm10, %v394_v45, %v458_v56  ;;  %v410_v2 = vadd.f32 %v1321_v13, %v374_v58  ;;  %v411_v3 = vadd.f32 %v1321_v13, %v375_v59 }
  0x40   : > { %v498_v5 = vsel %vm434_vm12, %v402_v51, %v466_v60  ;;  %v499_v6 = vsel %vm435_vm13, %v403_v52, %v467_v61  ;;  %v511_v7 = vpack.c.bf16 %v483_v63, %v482_v62  ;;  %v515_v8 = vpack.c.bf16 %v491_v1, %v490_v0 }
  0x41   : > { %v519_v4 = vpack.c.bf16 %v499_v6, %v498_v5  ;;  %v474_v9 = vmul.f32 0.2, %v410_v2  ;;  %v475_v10 = vmul.f32 0.2, %v411_v3  ;;  %vm442_vm14 = vcmp.ge.f32.partialorder %v410_v2, 0.0 }
  0x42   : > { %vm443_vm15 = vcmp.ge.f32.partialorder %v411_v3, 0.0 }
  0x43   : > { %v506_v11 = vsel %vm442_vm14, %v410_v2, %v474_v9  ;;  %v507_v12 = vsel %vm443_vm15, %v411_v3, %v475_v10 }
  0x44   : > { %v523_v14 = vpack.c.bf16 %v507_v12, %v506_v11 }
  0x4b   : > { %606 = vmatmul.bf16.gmra.mxu0 %v510_v31  ;;  %626 = vmatmul.bf16.gmra.mxu1 %v514_v33 }
  0x4c   : > { %646 = vmatmul.bf16.gmra.mxu2 %v518_v37  ;;  %666 = vmatmul.bf16.gmra.mxu3 %v522_v55 }
  0x5b   : > { %611 = vmatmul.bf16.gmra.mxu0 %v511_v7  ;;  %631 = vmatmul.bf16.gmra.mxu1 %v515_v8 }
  0x5c   : > { %651 = vmatmul.bf16.gmra.mxu2 %v519_v4  ;;  %671 = vmatmul.bf16.gmra.mxu3 %v523_v14 }
  0xa8   : > { %v597_v15 = vpop.f32.mrf.mxu0  ;;  %v1415_v16 = vpop.f32.mrf.mxu1 }
  0xa9   : > { %v778_v46 = vmul.f32 %v597_v15, %v597_v15 }
  0xaf   : > { %v1417_v13 = vpop.f32.mrf.mxu2  ;;  %v1432_v21 = vpop.f32.mrf.mxu3 }
  0xb0   : > { %v599_v17 = vpop.f32.mrf.mxu0  ;;  %v1426_v18 = vpop.f32.mrf.mxu1 }
  0xb1   : > { %v1092_v19 = vpack.c.bf16 %v599_v17, %v597_v15  ;;  %v1112_v20 = vpack.c.bf16 %v1426_v18, %v1415_v16  ;;  %v779_v45 = vmul.f32 %v599_v17, %v599_v17  ;;  %v741_v48 = vadd.f32 %v599_v17, %v597_v15 }
  0xb2   : > { %v786_v15 = vmul.f32 %v1415_v16, %v1415_v16 }
  0xb3   : > { %1093 = vst [vmem:[%s1424_s30] sm:$0xff] %v1092_v19   ;;  %v810_v49 = vadd.f32 %v779_v45, %v778_v46 }
  0xb4   : > { %1187 = vst [vmem:[%s1424_s30 + $0x20] sm:$0xff] %v1112_v20   ;;  %v787_v20 = vmul.f32 %v1426_v18, %v1426_v18 }
  0xb7   : > { %v1434_v22 = vpop.f32.mrf.mxu2  ;;  %v1441_v26 = vpop.f32.mrf.mxu3 }
  0xb8   : > { %v602_v23 = vpop.f32.mrf.mxu0  ;;  %v1436_v24 = vpop.f32.mrf.mxu1  ;;  %v1132_v25 = vpack.c.bf16 %v1434_v22, %v1417_v13  ;;  %v1152_v28 = vpack.c.bf16 %v1441_v26, %v1432_v21 }
  0xb9   : > { %v780_v47 = vmul.f32 %v602_v23, %v602_v23  ;;  %v742_v52 = vadd.f32 %v741_v48, %v602_v23 }
  0xba   : > { %1191 = vst [vmem:[%s1424_s30 + $0x40] sm:$0xff] %v1132_v25  }
  0xbb   : > { %1195 = vst [vmem:[%s1424_s30 + $0x60] sm:$0xff] %v1152_v28   ;;  %v811_v54 = vadd.f32 %v810_v49, %v780_v47 }
  0xbf   : > { %v1443_v27 = vpop.f32.mrf.mxu2  ;;  %v1454_v33 = vpop.f32.mrf.mxu3 }
  0xc0   : > { %v604_v29 = vpop.f32.mrf.mxu0  ;;  %v1447_v30 = vpop.f32.mrf.mxu1 }
  0xc1   : > { %v1097_v31 = vpack.c.bf16 %v604_v29, %v602_v23  ;;  %v1117_v32 = vpack.c.bf16 %v1447_v30, %v1436_v24  ;;  %v781_v50 = vmul.f32 %v604_v29, %v604_v29  ;;  %v743_v59 = vadd.f32 %v742_v52, %v604_v29 }
  0xc2   : > { %v788_v29 = vmul.f32 %v1436_v24, %v1436_v24 }
  0xc3   : > { %1184 = vst [vmem:[%s1424_s30 + $0x8] sm:$0xff] %v1097_v31   ;;  %v812_v60 = vadd.f32 %v811_v54, %v781_v50 }
  0xc4   : > { %1188 = vst [vmem:[%s1424_s30 + $0x28] sm:$0xff] %v1117_v32  }
  0xc7   : > { %v1456_v34 = vpop.f32.mrf.mxu2  ;;  %v1463_v38 = vpop.f32.mrf.mxu3 }
  0xc8   : > { %v607_v35 = vpop.f32.mrf.mxu0  ;;  %v1458_v36 = vpop.f32.mrf.mxu1  ;;  %v1137_v37 = vpack.c.bf16 %v1456_v34, %v1443_v27  ;;  %v1157_v40 = vpack.c.bf16 %v1463_v38, %v1454_v33 }
  0xc9   : > { %v782_v55 = vmul.f32 %v607_v35, %v607_v35  ;;  %v744_v62 = vadd.f32 %v743_v59, %v607_v35 }
  0xca   : > { %1192 = vst [vmem:[%s1424_s30 + $0x48] sm:$0xff] %v1137_v37  }
  0xcb   : > { %1196 = vst [vmem:[%s1424_s30 + $0x68] sm:$0xff] %v1157_v40   ;;  %v813_v63 = vadd.f32 %v812_v60, %v782_v55 }
  0xcf   : > { %v1465_v39 = vpop.f32.mrf.mxu2  ;;  %v1476_v51 = vpop.f32.mrf.mxu3 }
  0xd0   : > { %v609_v41 = vpop.f32.mrf.mxu0  ;;  %v1469_v42 = vpop.f32.mrf.mxu1 }
  0xd1   : > { %v1102_v43 = vpack.c.bf16 %v609_v41, %v607_v35  ;;  %v1122_v44 = vpack.c.bf16 %v1469_v42, %v1458_v36  ;;  %v783_v61 = vmul.f32 %v609_v41, %v609_v41  ;;  %v745_v1 = vadd.f32 %v744_v62, %v609_v41 }
  0xd3   : > { %1185 = vst [vmem:[%s1424_s30 + $0x10] sm:$0xff] %v1102_v43   ;;  %v814_v2 = vadd.f32 %v813_v63, %v783_v61  ;;  %v797_v63 = vmul.f32 %v1456_v34, %v1456_v34 }
  0xd4   : > { %1189 = vst [vmem:[%s1424_s30 + $0x30] sm:$0xff] %v1122_v44  }
  0xd7   : > { %v1478_v53 = vpop.f32.mrf.mxu2  ;;  %v1483_v3 = vpop.f32.mrf.mxu3 }
  0xd8   : > { %v612_v56 = vpop.f32.mrf.mxu0  ;;  %v632_v57 = vpop.f32.mrf.mxu1  ;;  %v1142_v58 = vpack.c.bf16 %v1478_v53, %v1465_v39  ;;  %v1162_v7 = vpack.c.bf16 %v1483_v3, %v1476_v51 }
  0xd9   : > { %v784_v0 = vmul.f32 %v612_v56, %v612_v56  ;;  %v746_v5 = vadd.f32 %v745_v1, %v612_v56  ;;  %v792_v49 = vmul.f32 %v632_v57, %v632_v57 }
  0xda   : > { %1193 = vst [vmem:[%s1424_s30 + $0x50] sm:$0xff] %v1142_v58  }
  0xdb   : > { %v815_v8 = vadd.f32 %v814_v2, %v784_v0  ;;  %1197 = vst [vmem:[%s1424_s30 + $0x70] sm:$0xff] %v1162_v7   ;;  %v799_v7 = vmul.f32 %v1478_v53, %v1478_v53 }
  0xdf   : > { %v652_v6 = vpop.f32.mrf.mxu2  ;;  %v1496_v28 = vpop.f32.mrf.mxu3 }
  0xe0   : > { %v614_v4 = vpop.f32.mrf.mxu0  ;;  %v634_v9 = vpop.f32.mrf.mxu1 }
  0xe1   : > { %v1107_v10 = vpack.c.bf16 %v614_v4, %v612_v56  ;;  %v747_v11 = vadd.f32 %v746_v5, %v614_v4  ;;  %v785_v12 = vmul.f32 %v614_v4, %v614_v4  ;;  %v1127_v14 = vpack.c.bf16 %v634_v9, %v632_v57 }
  0xe2   : > { %v793_v55 = vmul.f32 %v634_v9, %v634_v9 }
  0xe3   : > { %1186 = vst [vmem:[%s1424_s30 + $0x18] sm:$0xff] %v1107_v10   ;;  %v748_v17 = vadd.f32 %v747_v11, %v1415_v16  ;;  %v816_v19 = vadd.f32 %v815_v8, %v785_v12  ;;  %v789_v16 = vmul.f32 %v1447_v30, %v1447_v30 }
  0xe4   : > { %1190 = vst [vmem:[%s1424_s30 + $0x38] sm:$0xff] %v1127_v14  }
  0xe5   : > { %v749_v23 = vadd.f32 %v748_v17, %v1426_v18  ;;  %v817_v25 = vadd.f32 %v816_v19, %v786_v15  ;;  %v790_v18 = vmul.f32 %v1458_v36, %v1458_v36 }
  0xe7   : > { %v750_v31 = vadd.f32 %v749_v23, %v1436_v24  ;;  %v818_v32 = vadd.f32 %v817_v25, %v787_v20  ;;  %v654_v35 = vpop.f32.mrf.mxu2  ;;  %v791_v24 = vmul.f32 %v1469_v42, %v1469_v42  ;;  %v674_v47 = vpop.f32.mrf.mxu3  ;;  %v805_v23 = vmul.f32 %v1463_v38, %v1463_v38 }
  0xe8   : > { %v1147_v37 = vpack.c.bf16 %v654_v35, %v652_v6  ;;  %v801_v12 = vmul.f32 %v654_v35, %v654_v35 }
  0xe9   : > { %v819_v40 = vadd.f32 %v818_v32, %v788_v29  ;;  %v751_v41 = vadd.f32 %v750_v31, %v1447_v30  ;;  %v1167_v30 = vpack.c.bf16 %v674_v47, %v1496_v28  ;;  %v806_v29 = vmul.f32 %v1476_v51, %v1476_v51 }
  0xea   : > { %1194 = vst [vmem:[%s1424_s30 + $0x58] sm:$0xff] %v1147_v37  }
  0xeb   : > { %v752_v43 = vadd.f32 %v751_v41, %v1458_v36  ;;  %v820_v44 = vadd.f32 %v819_v40, %v789_v16  ;;  %1198 = vst [vmem:[%s1424_s30 + $0x78] sm:$0xff] %v1167_v30   ;;  %v794_v36 = vmul.f32 %v1417_v13, %v1417_v13  ;;  %v808_v40 = vmul.f32 %v1496_v28, %v1496_v28 }
  0xed   : > { %v753_v45 = vadd.f32 %v752_v43, %v1469_v42  ;;  %v821_v46 = vadd.f32 %v820_v44, %v790_v18  ;;  %v795_v42 = vmul.f32 %v1434_v22, %v1434_v22  ;;  %v809_v18 = vmul.f32 %v674_v47, %v674_v47 }
  0xee   : > { %v847_v44 = vlaneseq }
  0xef   : > { %v754_v48 = vadd.f32 %v753_v45, %v632_v57  ;;  %v822_v50 = vadd.f32 %v821_v46, %v791_v24  ;;  %v796_v57 = vmul.f32 %v1443_v27, %v1443_v27 }
  0xf1   : > { %v823_v52 = vadd.f32 %v822_v50, %v792_v49  ;;  %v755_v54 = vadd.f32 %v754_v48, %v634_v9  ;;  %v800_v9 = vmul.f32 %v652_v6, %v652_v6 }
  0xf3   : > { %v756_v56 = vadd.f32 %v755_v54, %v1417_v13  ;;  %v824_v58 = vadd.f32 %v823_v52, %v793_v55  ;;  %v798_v13 = vmul.f32 %v1465_v39, %v1465_v39 }
  0xf5   : > { %v757_v59 = vadd.f32 %v756_v56, %v1434_v22  ;;  %v825_v60 = vadd.f32 %v824_v58, %v794_v36 }
  0xf7   : > { %v758_v61 = vadd.f32 %v757_v59, %v1443_v27  ;;  %v826_v62 = vadd.f32 %v825_v60, %v795_v42 }
  0xf9   : > { %v827_v0 = vadd.f32 %v826_v62, %v796_v57  ;;  %v759_v1 = vadd.f32 %v758_v61, %v1456_v34  ;;  %v802_v34 = vmul.f32 %v1432_v21, %v1432_v21 }
  0xfb   : > { %v760_v2 = vadd.f32 %v759_v1, %v1465_v39  ;;  %v828_v5 = vadd.f32 %v827_v0, %v797_v63  ;;  %v803_v39 = vmul.f32 %v1441_v26, %v1441_v26 }
  0xfd   : > { %v761_v22 = vadd.f32 %v760_v2, %v1478_v53  ;;  %v829_v8 = vadd.f32 %v828_v5, %v798_v13  ;;  %v804_v53 = vmul.f32 %v1454_v33, %v1454_v33 }
  0xff   : > { %v830_v27 = vadd.f32 %v829_v8, %v799_v7  ;;  %v762_v4 = vadd.f32 %v761_v22, %v652_v6 }
 0x101   : > { %v831_v10 = vadd.f32 %v830_v27, %v800_v9  ;;  %v763_v11 = vadd.f32 %v762_v4, %v654_v35 }
 0x103   : > { %v764_v14 = vadd.f32 %v763_v11, %v1432_v21  ;;  %v832_v15 = vadd.f32 %v831_v10, %v801_v12 }
 0x105   : > { %v765_v17 = vadd.f32 %v764_v14, %v1441_v26  ;;  %v833_v19 = vadd.f32 %v832_v15, %v802_v34 }
 0x107   : > { %v766_v6 = vadd.f32 %v765_v17, %v1454_v33  ;;  %v834_v20 = vadd.f32 %v833_v19, %v803_v39  ;;  %v807_v33 = vmul.f32 %v1483_v3, %v1483_v3 }
 0x109   : > { %v835_v25 = vadd.f32 %v834_v20, %v804_v53  ;;  %v767_v21 = vadd.f32 %v766_v6, %v1463_v38 }
 0x10b   : > { %v768_v31 = vadd.f32 %v767_v21, %v1476_v51  ;;  %v836_v26 = vadd.f32 %v835_v25, %v805_v23 }
 0x10d   : > { %v769_v32 = vadd.f32 %v768_v31, %v1483_v3  ;;  %v837_v35 = vadd.f32 %v836_v26, %v806_v29  ;;  %v848_v3 = vshrl.u32 %v847_v44, 7 }
 0x10f   : > { %v838_v37 = vadd.f32 %v837_v35, %v807_v33  ;;  %v770_v16 = vadd.f32 %v769_v32, %v1496_v28  ;;  %vm849_vm0 = vcmp.eq.s32.totalorder %v848_v3, 0 }
 0x111   : > { %v839_v38 = vadd.f32 %v838_v37, %v808_v40  ;;  %v771_v41 = vadd.f32 %v770_v16, %v674_v47 }
 0x113   : > { %v772_v43 = vrot.slane %v771_v41, 4  ;;  %v840_v51 = vadd.f32 %v839_v38, %v809_v18 }
 0x115   : > { %v773_v24 = vadd.f32 %v772_v43, %v771_v41  ;;  %v841_v45 = vrot.slane %v840_v51, 4 }
 0x117   : > { %v774_v46 = vrot.slane %v773_v24, 2  ;;  %v842_v48 = vadd.f32 %v841_v45, %v840_v51 }
 0x119   : > { %v775_v49 = vadd.f32 %v774_v46, %v773_v24  ;;  %v843_v50 = vrot.slane %v842_v48, 2 }
 0x11b   : > { %v776_v30 = vrot.slane %v775_v49, 1  ;;  %v844_v52 = vadd.f32 %v843_v50, %v842_v48 }
 0x11d   : > { %v777_v28 = vadd.f32 %v776_v30, %v775_v49  ;;  %v845_v47 = vrot.slane %v844_v52, 1 }
 0x11f   : > { %v846_v54 = vadd.f32 %v845_v47, %v844_v52  ;;  %v850_v55 = vsel %vm849_vm0, %v777_v28, 0.0 }
 0x120   : > { %851 = vst [vmem:[%s271_s8] sm:$0xff] %v850_v55 }
 0x121   : > { %v852_v36 = vsel %vm849_vm0, %v846_v54, 0.0 }
 0x122   : > { %853 = vst [vmem:[%s275_s11] sm:$0xff] %v852_v36 }
 0x123 PF: > { %s17_s21 = sadd.s32 1, %s1239_s21  }
 0x124   : > { %p14_p5 = scmp.ge.s32.totalorder %s17_s21, 4  }
 0x126   :  { %16 = sbr.rel (!%p14_p5) target bundleno = 1 (0x1), region = 90 }

// kernel: tile.113
= control target key start
LH: loop header
LB: loop body
LE: loop exit
PB: predicated region body
PF: predicated region fallthrough
CT: control target
= control target key end

     0   :  { %s28_s0 = inlined_call_operand.vmem [shape: f32[16], index: 0, kind: input, shape index: {}]   ;;  %s29_s1 = inlined_call_operand.vmem [shape: f32[9,16], index: 1, kind: output, shape index: {}]  }
   0x1   :  { %v4_v0 = vld [vmem:[%s28_s0] ss:$0 sm:$0xff] }
   0x2   :  { %5 = vst [vmem:[%s29_s1] sm:$0xff] %v4_v0 }
   0x3   :  { %8 = vst [vmem:[%s29_s1 + $0x8] sm:$0xff] %v4_v0 }

// kernel: tile.114
= control target key start
LH: loop header
LB: loop body
LE: loop exit
PB: predicated region body
PF: predicated region fallthrough
CT: control target
= control target key end

     0   :  { %s68_s10 = smov 112   ;;  %s69_s11 = smov 80   ;;  %vm4_vm0 = vcmask 130048   ;;  %vm10_vm1 = vcmask 1048448   ;;  %vm16_vm2 = vcmask 917248   ;;  %vm22_vm3 = vcmask 786048   ;;  %s112_s0 = inlined_call_operand.vmem [shape: f32[9,16], index: 0, kind: input, shape index: {}]   ;;  %s113_s1 = inlined_call_operand.vmem [shape: f32[144], index: 1, kind: output, shape index: {}]  }
   0x1   :  { %v54_v0 = vld [vmem:[%s112_s0 + $0x7] sm:$0x1]   ;;  %v56_v1 = vld [vmem:[%s112_s0 + $0x5] sm:$0x1]   ;;  %v58_v2 = vld [vmem:[%s112_s0 + $0x3] sm:$0x1]  }
   0x2   :  { %8 = vrot.lane.b32.xlu0 %v54_v0, %s68_s10  ;;  %20 = vrot.lane.b32.xlu1 %v56_v1, %s69_s11  ;;  %s70_s14 = smov 48   ;;  %v55_v3 = vld [vmem:[%s112_s0 + $0x6] sm:$0x1]   ;;  %v57_v4 = vld [vmem:[%s112_s0 + $0x4] sm:$0x1]   ;;  %s71_s21 = smov 96  }
   0x3   :  { %32 = vrot.lane.b32.xlu2 %v58_v2, %s70_s14  ;;  %v59_v5 = vld [vmem:[%s112_s0 + $0x2] sm:$0x1]   ;;  %s72_s22 = smov 64   ;;  %s73_s23 = smov 32   ;;  %v60_v6 = vld [vmem:[%s112_s0 + $0x1] sm:$0x1]  }
   0x4   :  { %s74_s26 = smov 16   ;;  %s2_s27 = smov 3  ;;  %vm28_vm4 = vcmask 654848   ;;  %vm34_vm5 = vcmask 523648   ;;  %vm40_vm6 = vcmask 392448   ;;  %vm46_vm7 = vcmask 261248  }
   0x5   :  { %v3_v7 = vld [vmem:[%s112_s0] ss:$8 sm:%s2_s27]  }
   0x6   :  { %5 = vst.msk [vmem:[#allocation0] sm:$0x3] %vm4_vm0, %v3_v7  }
   0xa   :  { %14 = vrot.lane.b32.xlu0 %v55_v3, %s71_s21  ;;  %26 = vrot.lane.b32.xlu1 %v57_v4, %s72_s22 }
   0xb   :  { %38 = vrot.lane.b32.xlu2 %v59_v5, %s73_s23 }
  0x12   :  { %44 = vrot.lane.b32.xlu0 %v60_v6, %s74_s26 }
  0x5d   :  { %v33_v8 = vpop.permute.xlu2 %32  }
  0x65   :  { %v39_v9 = vpop.permute.xlu2 %38  }
  0x74   :  { %v9_v10 = vpop.permute.xlu0 %8   ;;  %v21_v11 = vpop.permute.xlu1 %20  }
  0x75   :  { %11 = vst.msk [vmem:[#allocation0] sm:$0x1] %vm10_vm1, %v9_v10  }
  0x7c   :  { %v15_v12 = vpop.permute.xlu0 %14   ;;  %v27_v13 = vpop.permute.xlu1 %26  }
  0x7d   :  { %17 = vst.msk [vmem:[#allocation0] sm:$0x1] %vm16_vm2, %v15_v12  }
  0x7e   :  { %23 = vst.msk [vmem:[#allocation0] sm:$0x1] %vm22_vm3, %v21_v11  }
  0x7f   :  { %29 = vst.msk [vmem:[#allocation0] sm:$0x1] %vm28_vm4, %v27_v13  }
  0x80   :  { %35 = vst.msk [vmem:[#allocation0] sm:$0x1] %vm34_vm5, %v33_v8  }
  0x81   :  { %41 = vst.msk [vmem:[#allocation0] sm:$0x1] %vm40_vm6, %v39_v9  }
  0x84   :  { %v45_v14 = vpop.permute.xlu0 %44  }
  0x85   :  { %47 = vst.msk [vmem:[#allocation0] sm:$0x1] %vm46_vm7, %v45_v14  }
  0x8c   :  { %v50_v15 = vld [vmem:[#allocation0] sm:$0x3] }
  0x8d   :  { %53 = vst [vmem:[%s113_s1] sm:$0x3] %v50_v15 }

// kernel: _lambda_.14
= control target key start
LH: loop header
LB: loop body
LE: loop exit
PB: predicated region body
PF: predicated region fallthrough
CT: control target
= control target key end

     0   :  { %s949_s21 = smov 0   ;;  %s1101_s0 = inlined_call_operand.vmem [shape: bf16[128,256], index: 0, kind: input, shape index: {}]   ;;  %s1102_s1 = inlined_call_operand.vmem [shape: f32[1,256], index: 1, kind: input, shape index: {}]   ;;  %s1103_s2 = inlined_call_operand.vmem [shape: f32[1,256], index: 2, kind: input, shape index: {}]   ;;  %s1104_s3 = inlined_call_operand.vmem [shape: bf16[256,128], index: 3, kind: input, shape index: {}]   ;;  %s1105_s4 = inlined_call_operand.vmem [shape: bf16[128,128], index: 4, kind: output, shape index: {0}]   ;;  %s1106_s5 = inlined_call_operand.vmem [shape: f32[16,128], index: 5, kind: output, shape index: {1}]   ;;  %s1107_s6 = inlined_call_operand.vmem [shape: f32[16,128], index: 6, kind: output, shape index: {2}]  }
   0x1 LB: > { %s955_s22 = sadd.s32 4294967295, %s912_s21   ;;  %p768_p0 = scmp.ge.s32.totalorder %s912_s21, 1  ;;  %s912_s21 = sphi %s949_s21, %s17_s21  }
   0x2   : > { %p219_p1 = scmp.lt.s32.totalorder %s912_s21, 3 }
   0x4   : > { %p220_p2 = pnand %p768_p0, %p219_p1 }
   0x5   : > { %s769_s27 = sshll.u32 (!%p220_p2), %s955_s22, 3  ;;  %p271_p4 = scmp.lt.s32.totalorder (!%p220_p2), %s955_s22, 1 }
   0x6   : > { %223 = sbr.rel (%p220_p2) target bundleno = 222 (0xde), region = 36  ;;  %p259_p3 = scmp.lt.s32.totalorder (!%p220_p2), %s769_s27, 15 }
   0xb   : > { %v850_v0 = vld [vmem:[%s1104_s3 + $0x38] sm:$0xff]  ;;  %v849_v2 = vld [vmem:[%s1104_s3 + $0x30] sm:$0xff]  ;;  %s1109_s27 = smov (!%p259_p3, %s769_s27), 15  ;;  %v303_v4 = vld [vmem:[%s1102_s1] sm:$0x3]  ;;  %s1111_s22 = smov (!%p271_p4, %s955_s22), 1 }
   0xc   : > { %v858_v1 = vld [vmem:[%s1104_s3 + $0x78] sm:$0xff]  ;;  %531 = vmatpush.bf16.msra.mxu0 %v850_v0  ;;  %882 = vmatpush.bf16.msra.mxu2 %v850_v0  ;;  %v857_v3 = vld [vmem:[%s1104_s3 + $0x70] sm:$0xff]  ;;  %s842_s8 = sshll.u32 %s1109_s27, 3  ;;  %v848_v5 = vld [vmem:[%s1104_s3 + $0x28] sm:$0xff]  ;;  %v991_v9 = vperm.slane %v303_v4, 0  ;;  %v998_v18 = vperm.slane %v303_v4, 1 }
   0xd   : > { %560 = vmatpush.bf16.msra.mxu1 %v858_v1  ;;  %890 = vmatpush.bf16.msra.mxu3 %v858_v1  ;;  %v856_v6 = vld [vmem:[%s1104_s3 + $0x68] sm:$0xff]  ;;  %s987_s17 = scalar_lea.vmem %s1101_s0, %s842_s8  ;;  %v325_v13 = vld [vmem:[%s1103_s2] sm:$0x3]  ;;  %v846_v31 = vld [vmem:[%s1104_s3 + $0x18] sm:$0xff]  ;;  %s773_s19 = sshll.u32 %s1109_s27, 2 }
   0xe   : > { %v279_v7 = vld [vmem:[%s987_s17] sm:$0xff]  ;;  %v280_v8 = vld [vmem:[%s987_s17 + $0x8] sm:$0xff]  ;;  %v1007_v24 = vperm.slane %v325_v13, 0  ;;  %v1013_v30 = vperm.slane %v325_v13, 1  ;;  %v854_v34 = vld [vmem:[%s1104_s3 + $0x58] sm:$0xff]  ;;  %s1084_s24 = scalar_lea.vmem %s1105_s4, %s773_s19  ;;  %s774_s27 = sshll.u32 %s1111_s22, 3 }
   0xf   : > { %v283_v10 = vld [vmem:[%s987_s17 + $0x20] sm:$0xff]  ;;  %v287_v11 = vunpack.c.l.bf16 %v279_v7  ;;  %v289_v12 = vunpack.c.l.bf16 %v280_v8  ;;  %v284_v14 = vld [vmem:[%s987_s17 + $0x28] sm:$0xff]  ;;  %v288_v17 = vunpack.c.h.bf16 %v279_v7  ;;  %v290_v20 = vunpack.c.h.bf16 %v280_v8  ;;  %v845_v41 = vld [vmem:[%s1104_s3 + $0x10] sm:$0xff]  ;;  %s274_s28 = scalar_lea.vmem %s1106_s5, %s774_s27  ;;  %s278_s7 = scalar_lea.vmem %s1107_s6, %s774_s27 }
  0x10   : > { %532 = vmatpush.bf16.msra.mxu0 %v849_v2  ;;  %883 = vmatpush.bf16.msra.mxu2 %v849_v2  ;;  %v295_v15 = vunpack.c.l.bf16 %v283_v10  ;;  %v297_v16 = vunpack.c.l.bf16 %v284_v14  ;;  %v847_v19 = vld [vmem:[%s1104_s3 + $0x20] sm:$0xff]  ;;  %v296_v21 = vunpack.c.h.bf16 %v283_v10  ;;  %v298_v25 = vunpack.c.h.bf16 %v284_v14  ;;  %v853_v44 = vld [vmem:[%s1104_s3 + $0x50] sm:$0xff]  ;;  %v282_v47 = vld [vmem:[%s987_s17 + $0x18] sm:$0xff] }
  0x11   : > { %561 = vmatpush.bf16.msra.mxu1 %v857_v3  ;;  %891 = vmatpush.bf16.msra.mxu3 %v857_v3  ;;  %v855_v22 = vld [vmem:[%s1104_s3 + $0x60] sm:$0xff]  ;;  %v309_v23 = vmul.f32 %v991_v9, %v287_v11  ;;  %v311_v26 = vmul.f32 %v991_v9, %v289_v12  ;;  %v310_v29 = vmul.f32 %v998_v18, %v288_v17  ;;  %v281_v46 = vld [vmem:[%s987_s17 + $0x10] sm:$0xff]  ;;  %v844_v48 = vld [vmem:[%s1104_s3 + $0x8] sm:$0xff]  ;;  %v293_v63 = vunpack.c.l.bf16 %v282_v47 }
  0x12   : > { %v317_v27 = vmul.f32 %v991_v9, %v295_v15  ;;  %v319_v28 = vmul.f32 %v991_v9, %v297_v16  ;;  %v312_v32 = vmul.f32 %v998_v18, %v290_v20  ;;  %v318_v33 = vmul.f32 %v998_v18, %v296_v21  ;;  %v285_v51 = vld [vmem:[%s987_s17 + $0x30] sm:$0xff]  ;;  %v852_v57 = vld [vmem:[%s1104_s3 + $0x48] sm:$0xff]  ;;  %v286_v60 = vld [vmem:[%s987_s17 + $0x38] sm:$0xff] }
  0x13   : > { %v331_v35 = vadd.f32 %v1007_v24, %v309_v23  ;;  %v320_v36 = vmul.f32 %v998_v18, %v298_v25  ;;  %v333_v37 = vadd.f32 %v1007_v24, %v311_v26  ;;  %v332_v40 = vadd.f32 %v1013_v30, %v310_v29  ;;  %v843_v4 = vld [vmem:[%s1104_s3] sm:$0xff] }
  0x14   : > { %533 = vmatpush.bf16.msra.mxu0 %v848_v5  ;;  %884 = vmatpush.bf16.msra.mxu2 %v848_v5  ;;  %v339_v38 = vadd.f32 %v1007_v24, %v317_v27  ;;  %v341_v39 = vadd.f32 %v1007_v24, %v319_v28  ;;  %v334_v42 = vadd.f32 %v1013_v30, %v312_v32  ;;  %v291_v59 = vunpack.c.l.bf16 %v281_v46  ;;  %v851_v10 = vld [vmem:[%s1104_s3 + $0x40] sm:$0xff] }
  0x15   : > { %562 = vmatpush.bf16.msra.mxu1 %v856_v6  ;;  %892 = vmatpush.bf16.msra.mxu3 %v856_v6  ;;  %v340_v43 = vadd.f32 %v1013_v30, %v318_v33  ;;  %vm347_vm0 = vcmp.ge.f32.partialorder %v331_v35, 0.0  ;;  %v342_v45 = vadd.f32 %v1013_v30, %v320_v36  ;;  %vm349_vm1 = vcmp.ge.f32.partialorder %v333_v37, 0.0 }
  0x16   : > { %v363_v49 = vmul.f32 0.2, %v331_v35  ;;  %v365_v50 = vmul.f32 0.2, %v333_v37  ;;  %vm355_vm2 = vcmp.ge.f32.partialorder %v339_v38, 0.0  ;;  %vm357_vm3 = vcmp.ge.f32.partialorder %v341_v39, 0.0 }
  0x17   : > { %v371_v52 = vmul.f32 0.2, %v339_v38  ;;  %v373_v53 = vmul.f32 0.2, %v341_v39  ;;  %v364_v54 = vmul.f32 0.2, %v332_v40  ;;  %v299_v3 = vunpack.c.l.bf16 %v285_v51 }
  0x18   : > { %534 = vmatpush.bf16.msra.mxu0 %v847_v19  ;;  %885 = vmatpush.bf16.msra.mxu2 %v847_v19  ;;  %vm348_vm4 = vcmp.ge.f32.partialorder %v332_v40, 0.0  ;;  %v366_v55 = vmul.f32 0.2, %v334_v42  ;;  %v372_v56 = vmul.f32 0.2, %v340_v43  ;;  %vm350_vm5 = vcmp.ge.f32.partialorder %v334_v42, 0.0 }
  0x19   : > { %563 = vmatpush.bf16.msra.mxu1 %v855_v22  ;;  %893 = vmatpush.bf16.msra.mxu3 %v855_v22  ;;  %vm356_vm6 = vcmp.ge.f32.partialorder %v340_v43, 0.0  ;;  %v374_v58 = vmul.f32 0.2, %v342_v45  ;;  %v379_v61 = vsel %vm347_vm0, %v331_v35, %v363_v49  ;;  %v381_v62 = vsel %vm349_vm1, %v333_v37, %v365_v50 }
  0x1a   : > { %vm358_vm7 = vcmp.ge.f32.partialorder %v342_v45, 0.0  ;;  %v387_v0 = vsel %vm355_vm2, %v339_v38, %v371_v52  ;;  %v389_v1 = vsel %vm357_vm3, %v341_v39, %v373_v53  ;;  %v380_v2 = vsel %vm348_vm4, %v332_v40, %v364_v54 }
  0x1b   : > { %v382_v5 = vsel %vm350_vm5, %v334_v42, %v366_v55  ;;  %v388_v6 = vsel %vm356_vm6, %v340_v43, %v372_v56  ;;  %v301_v7 = vunpack.c.l.bf16 %v286_v60  ;;  %v292_v8 = vunpack.c.h.bf16 %v281_v46 }
  0x1c   : > { %535 = vmatpush.bf16.msra.mxu0 %v846_v31  ;;  %886 = vmatpush.bf16.msra.mxu2 %v846_v31  ;;  %v390_v11 = vsel %vm358_vm7, %v342_v45, %v374_v58  ;;  %v294_v12 = vunpack.c.h.bf16 %v282_v47  ;;  %v300_v13 = vunpack.c.h.bf16 %v285_v51  ;;  %v302_v14 = vunpack.c.h.bf16 %v286_v60 }
  0x1d   : > { %564 = vmatpush.bf16.msra.mxu1 %v854_v34  ;;  %894 = vmatpush.bf16.msra.mxu3 %v854_v34  ;;  %v313_v15 = vmul.f32 %v991_v9, %v291_v59  ;;  %v315_v16 = vmul.f32 %v991_v9, %v293_v63  ;;  %v395_v17 = vpack.c.bf16 %v381_v62, %v379_v61 }
  0x1e   : > { %v399_v19 = vpack.c.bf16 %v389_v1, %v387_v0  ;;  %v396_v20 = vpack.c.bf16 %v382_v5, %v380_v2  ;;  %v321_v21 = vmul.f32 %v991_v9, %v299_v3  ;;  %v400_v22 = vpack.c.bf16 %v390_v11, %v388_v6 }
  0x1f   : > { %v323_v23 = vmul.f32 %v991_v9, %v301_v7  ;;  %v314_v25 = vmul.f32 %v998_v18, %v292_v8  ;;  %v316_v26 = vmul.f32 %v998_v18, %v294_v12  ;;  %v322_v27 = vmul.f32 %v998_v18, %v300_v13 }
  0x20   : > { %536 = vmatpush.bf16.msra.mxu0 %v845_v41  ;;  %887 = vmatpush.bf16.msra.mxu2 %v845_v41  ;;  %v324_v28 = vmul.f32 %v998_v18, %v302_v14  ;;  %v335_v29 = vadd.f32 %v1007_v24, %v313_v15  ;;  %v337_v31 = vadd.f32 %v1007_v24, %v315_v16 }
  0x21   : > { %565 = vmatpush.bf16.msra.mxu1 %v853_v44  ;;  %895 = vmatpush.bf16.msra.mxu3 %v853_v44  ;;  %v343_v32 = vadd.f32 %v1007_v24, %v321_v21  ;;  %v345_v9 = vadd.f32 %v1007_v24, %v323_v23  ;;  %v336_v33 = vadd.f32 %v1013_v30, %v314_v25 }
  0x22   : > { %v338_v34 = vadd.f32 %v1013_v30, %v316_v26  ;;  %v344_v35 = vadd.f32 %v1013_v30, %v322_v27  ;;  %v346_v18 = vadd.f32 %v1013_v30, %v324_v28  ;;  %vm351_vm8 = vcmp.ge.f32.partialorder %v335_v29, 0.0 }
  0x23   : > { %vm353_vm9 = vcmp.ge.f32.partialorder %v337_v31, 0.0  ;;  %v367_v36 = vmul.f32 0.2, %v335_v29  ;;  %v369_v37 = vmul.f32 0.2, %v337_v31  ;;  %vm359_vm10 = vcmp.ge.f32.partialorder %v343_v32, 0.0 }
  0x24   : > { %537 = vmatpush.bf16.msra.mxu0 %v844_v48  ;;  %888 = vmatpush.bf16.msra.mxu2 %v844_v48  ;;  %v375_v38 = vmul.f32 0.2, %v343_v32  ;;  %vm361_vm11 = vcmp.ge.f32.partialorder %v345_v9, 0.0  ;;  %v377_v39 = vmul.f32 0.2, %v345_v9  ;;  %vm352_vm12 = vcmp.ge.f32.partialorder %v336_v33, 0.0 }
  0x25   : > { %566 = vmatpush.bf16.msra.mxu1 %v852_v57  ;;  %896 = vmatpush.bf16.msra.mxu3 %v852_v57  ;;  %v368_v40 = vmul.f32 0.2, %v336_v33  ;;  %v370_v41 = vmul.f32 0.2, %v338_v34  ;;  %v376_v42 = vmul.f32 0.2, %v344_v35  ;;  %v383_v43 = vsel %vm351_vm8, %v335_v29, %v367_v36 }
  0x26   : > { %v378_v24 = vmul.f32 0.2, %v346_v18  ;;  %vm354_vm13 = vcmp.ge.f32.partialorder %v338_v34, 0.0  ;;  %vm360_vm14 = vcmp.ge.f32.partialorder %v344_v35, 0.0  ;;  %vm362_vm15 = vcmp.ge.f32.partialorder %v346_v18, 0.0 }
  0x27   : > { %v385_v30 = vsel %vm353_vm9, %v337_v31, %v369_v37  ;;  %v391_v44 = vsel %vm359_vm10, %v343_v32, %v375_v38  ;;  %v393_v45 = vsel %vm361_vm11, %v345_v9, %v377_v39  ;;  %v384_v46 = vsel %vm352_vm12, %v336_v33, %v368_v40 }
  0x28   : > { %538 = vmatpush.bf16.msra.mxu0 %v843_v4  ;;  %889 = vmatpush.bf16.msra.mxu2 %v843_v4  ;;  %v386_v47 = vsel %vm354_vm13, %v338_v34, %v370_v41  ;;  %v392_v48 = vsel %vm360_vm14, %v344_v35, %v376_v42  ;;  %v394_v49 = vsel %vm362_vm15, %v346_v18, %v378_v24  ;;  %v639_v24 = vlaneseq }
  0x29   : > { %567 = vmatpush.bf16.msra.mxu1 %v851_v10  ;;  %897 = vmatpush.bf16.msra.mxu3 %v851_v10  ;;  %v397_v50 = vpack.c.bf16 %v385_v30, %v383_v43  ;;  %v401_v51 = vpack.c.bf16 %v393_v45, %v391_v44  ;;  %v398_v52 = vpack.c.bf16 %v386_v47, %v384_v46 }
  0x2a   : > { %v402_v53 = vpack.c.bf16 %v394_v49, %v392_v48  ;;  %v640_v46 = vshrl.u32 %v639_v24, 7 }
  0x2b   : > { %539 = vmatmul.bf16.vlgmr.msra.gmra.mxu0 %v395_v17  ;;  %549 = vmatmul.bf16.vlgmr.msra.gmra.mxu2 %v399_v19 }
  0x2c   : > { %568 = vmatmul.bf16.vlgmr.msra.gmra.mxu1 %v396_v20  ;;  %578 = vmatmul.bf16.vlgmr.msra.gmra.mxu3 %v400_v22  ;;  %vm641_vm0 = vcmp.eq.s32.totalorder %v640_v46, 0 }
  0x3b   : > { %544 = vmatmul.bf16.gmra.mxu0 %v397_v50  ;;  %554 = vmatmul.bf16.gmra.mxu2 %v401_v51 }
  0x3c   : > { %573 = vmatmul.bf16.gmra.mxu1 %v398_v52  ;;  %583 = vmatmul.bf16.gmra.mxu3 %v402_v53 }
  0xa8   : > { %v540_v54 = vpop.f32.mrf.mxu0 }
  0xa9   : > { %v569_v55 = vpop.f32.mrf.mxu1 }
  0xaa   : > { %v570_v60 = vadd.f32 %v569_v55, %v540_v54 }
  0xac   : > { %v618_v11 = vmul.f32 %v570_v60, %v570_v60 }
  0xae   : > { %v550_v56 = vpop.f32.mrf.mxu2 }
  0xaf   : > { %v579_v57 = vpop.f32.mrf.mxu3 }
  0xb0   : > { %v542_v58 = vpop.f32.mrf.mxu0  ;;  %v580_v1 = vadd.f32 %v579_v57, %v550_v56 }
  0xb1   : > { %v571_v59 = vpop.f32.mrf.mxu1 }
  0xb2   : > { %v572_v61 = vadd.f32 %v571_v59, %v542_v58  ;;  %v622_v25 = vmul.f32 %v580_v1, %v580_v1 }
  0xb4   : > { %v862_v62 = vpack.c.bf16 %v572_v61, %v570_v60  ;;  %v619_v7 = vmul.f32 %v572_v61, %v572_v61  ;;  %v605_v12 = vadd.f32 %v572_v61, %v570_v60 }
  0xb6   : > { %863 = vst [vmem:[%s1084_s24] sm:$0xff] %v862_v62   ;;  %v552_v63 = vpop.f32.mrf.mxu2  ;;  %v626_v16 = vadd.f32 %v619_v7, %v618_v11 }
  0xb7   : > { %v581_v0 = vpop.f32.mrf.mxu3 }
  0xb8   : > { %v582_v2 = vadd.f32 %v581_v0, %v552_v63  ;;  %v545_v3 = vpop.f32.mrf.mxu0 }
  0xb9   : > { %v574_v4 = vpop.f32.mrf.mxu1 }
  0xba   : > { %v872_v5 = vpack.c.bf16 %v582_v2, %v580_v1  ;;  %v575_v6 = vadd.f32 %v574_v4, %v545_v3  ;;  %v623_v32 = vmul.f32 %v582_v2, %v582_v2 }
  0xbc   : > { %880 = vst [vmem:[%s1084_s24 + $0x10] sm:$0xff] %v872_v5   ;;  %v620_v13 = vmul.f32 %v575_v6, %v575_v6  ;;  %v606_v17 = vadd.f32 %v605_v12, %v575_v6 }
  0xbe   : > { %v555_v8 = vpop.f32.mrf.mxu2  ;;  %v627_v20 = vadd.f32 %v626_v16, %v620_v13 }
  0xbf   : > { %v584_v10 = vpop.f32.mrf.mxu3 }
  0xc0   : > { %v547_v14 = vpop.f32.mrf.mxu0  ;;  %v585_v26 = vadd.f32 %v584_v10, %v555_v8 }
  0xc1   : > { %v576_v15 = vpop.f32.mrf.mxu1 }
  0xc2   : > { %v577_v19 = vadd.f32 %v576_v15, %v547_v14  ;;  %v624_v35 = vmul.f32 %v585_v26, %v585_v26 }
  0xc4   : > { %v867_v21 = vpack.c.bf16 %v577_v19, %v575_v6  ;;  %v607_v22 = vadd.f32 %v606_v17, %v577_v19  ;;  %v621_v23 = vmul.f32 %v577_v19, %v577_v19 }
  0xc6   : > { %879 = vst [vmem:[%s1084_s24 + $0x8] sm:$0xff] %v867_v21   ;;  %v608_v27 = vadd.f32 %v607_v22, %v580_v1  ;;  %v628_v28 = vadd.f32 %v627_v20, %v621_v23  ;;  %v557_v29 = vpop.f32.mrf.mxu2 }
  0xc7   : > { %v586_v31 = vpop.f32.mrf.mxu3 }
  0xc8   : > { %v629_v9 = vadd.f32 %v628_v28, %v622_v25  ;;  %v587_v33 = vadd.f32 %v586_v31, %v557_v29  ;;  %v609_v34 = vadd.f32 %v608_v27, %v582_v2 }
  0xca   : > { %v877_v18 = vpack.c.bf16 %v587_v33, %v585_v26  ;;  %v610_v36 = vadd.f32 %v609_v34, %v585_v26  ;;  %v630_v37 = vadd.f32 %v629_v9, %v623_v32  ;;  %v625_v39 = vmul.f32 %v587_v33, %v587_v33 }
  0xcc   : > { %881 = vst [vmem:[%s1084_s24 + $0x18] sm:$0xff] %v877_v18   ;;  %v611_v38 = vadd.f32 %v610_v36, %v587_v33  ;;  %v631_v40 = vadd.f32 %v630_v37, %v624_v35 }
  0xce   : > { %v612_v41 = vrot.slane %v611_v38, 4  ;;  %v632_v42 = vadd.f32 %v631_v40, %v625_v39 }
  0xd0   : > { %v613_v43 = vadd.f32 %v612_v41, %v611_v38  ;;  %v633_v30 = vrot.slane %v632_v42, 4 }
  0xd2   : > { %v614_v44 = vrot.slane %v613_v43, 2  ;;  %v634_v45 = vadd.f32 %v633_v30, %v632_v42 }
  0xd4   : > { %v615_v47 = vadd.f32 %v614_v44, %v613_v43  ;;  %v635_v48 = vrot.slane %v634_v45, 2 }
  0xd6   : > { %v616_v49 = vrot.slane %v615_v47, 1  ;;  %v636_v50 = vadd.f32 %v635_v48, %v634_v45 }
  0xd8   : > { %v617_v51 = vadd.f32 %v616_v49, %v615_v47  ;;  %v637_v52 = vrot.slane %v636_v50, 1 }
  0xda   : > { %v638_v53 = vadd.f32 %v637_v52, %v636_v50  ;;  %v642_v54 = vsel %vm641_vm0, %v617_v51, 0.0 }
  0xdb   : > { %643 = vst [vmem:[%s274_s28] sm:$0xff] %v642_v54 }
  0xdc   : > { %v644_v55 = vsel %vm641_vm0, %v638_v53, 0.0 }
  0xdd   : > { %645 = vst [vmem:[%s278_s7] sm:$0xff] %v644_v55 }
  0xde PF: > { %s17_s21 = sadd.s32 1, %s912_s21  }
  0xdf   : > { %p14_p5 = scmp.ge.s32.totalorder %s17_s21, 4  }
  0xe1   :  { %16 = sbr.rel (!%p14_p5) target bundleno = 1 (0x1), region = 90 }

// kernel: _lambda_.16
= control target key start
LH: loop header
LB: loop body
LE: loop exit
PB: predicated region body
PF: predicated region fallthrough
CT: control target
= control target key end

     0   :  { %s771_s21 = smov 0   ;;  %s857_s0 = inlined_call_operand.vmem [shape: bf16[32,256], index: 0, kind: input, shape index: {}]   ;;  %s858_s1 = inlined_call_operand.vmem [shape: f32[1,256], index: 1, kind: input, shape index: {}]   ;;  %s859_s2 = inlined_call_operand.vmem [shape: f32[1,256], index: 2, kind: input, shape index: {}]   ;;  %s860_s3 = inlined_call_operand.vmem [shape: bf16[256,128], index: 3, kind: input, shape index: {}]   ;;  %s861_s4 = inlined_call_operand.vmem [shape: bf16[32,128], index: 4, kind: output, shape index: {0}]   ;;  %s862_s5 = inlined_call_operand.vmem [shape: f32[16,128], index: 5, kind: output, shape index: {1}]   ;;  %s863_s6 = inlined_call_operand.vmem [shape: f32[16,128], index: 6, kind: output, shape index: {2}]  }
   0x1 LB: > { %s777_s22 = sadd.s32 4294967295, %s734_s21   ;;  %p624_p0 = scmp.ge.s32.totalorder %s734_s21, 1  ;;  %s734_s21 = sphi %s771_s21, %s17_s21  }
   0x2   : > { %p219_p1 = scmp.lt.s32.totalorder %s734_s21, 3 }
   0x4   : > { %p220_p2 = pnand %p624_p0, %p219_p1 }
   0x5   : > { %s625_s27 = sshll.u32 (!%p220_p2), %s777_s22, 1  ;;  %p271_p4 = scmp.lt.s32.totalorder (!%p220_p2), %s777_s22, 1 }
   0x6   : > { %223 = sbr.rel (%p220_p2) target bundleno = 198 (0xc6), region = 36  ;;  %p259_p3 = scmp.lt.s32.totalorder (!%p220_p2), %s625_s27, 3 }
   0xb   : > { %v706_v0 = vld [vmem:[%s860_s3 + $0x38] sm:$0xff]  ;;  %v705_v2 = vld [vmem:[%s860_s3 + $0x30] sm:$0xff]  ;;  %s865_s27 = smov (!%p259_p3, %s625_s27), 3  ;;  %v704_v4 = vld [vmem:[%s860_s3 + $0x28] sm:$0xff]  ;;  %v495_v58 = vlaneseq  ;;  %s867_s22 = smov (!%p271_p4, %s777_s22), 1 }
   0xc   : > { %v714_v1 = vld [vmem:[%s860_s3 + $0x78] sm:$0xff]  ;;  %447 = vmatpush.bf16.msra.mxu0 %v706_v0  ;;  %v713_v3 = vld [vmem:[%s860_s3 + $0x70] sm:$0xff]  ;;  %s698_s8 = sshll.u32 %s865_s27, 3  ;;  %v712_v5 = vld [vmem:[%s860_s3 + $0x68] sm:$0xff]  ;;  %s629_s19 = sshll.u32 %s865_s27, 2 }
   0xd   : > { %461 = vmatpush.bf16.msra.mxu1 %v714_v1  ;;  %s263_s15 = scalar_lea.vmem %s857_s0, %s698_s8  ;;  %v285_v6 = vld [vmem:[%s858_s1] sm:$0x3]  ;;  %v702_v20 = vld [vmem:[%s860_s3 + $0x18] sm:$0xff]  ;;  %v701_v27 = vld [vmem:[%s860_s3 + $0x10] sm:$0xff]  ;;  %s269_s24 = scalar_lea.vmem %s861_s4, %s629_s19  ;;  %v496_v63 = vshrl.u32 %v495_v58, 7 }
   0xe   : > { %v279_v7 = vld [vmem:[%s263_s15] sm:$0xff]  ;;  %v280_v8 = vld [vmem:[%s263_s15 + $0x8] sm:$0xff]  ;;  %v287_v10 = vperm.slane %v285_v6, 0  ;;  %v288_v17 = vperm.slane %v285_v6, 1  ;;  %v710_v21 = vld [vmem:[%s860_s3 + $0x58] sm:$0xff]  ;;  %s630_s27 = sshll.u32 %s867_s22, 3 }
   0xf   : > { %v281_v9 = vunpack.c.l.bf16 %v279_v7  ;;  %v703_v11 = vld [vmem:[%s860_s3 + $0x20] sm:$0xff]  ;;  %v283_v13 = vunpack.c.l.bf16 %v280_v8  ;;  %v282_v15 = vunpack.c.h.bf16 %v279_v7  ;;  %v284_v16 = vunpack.c.h.bf16 %v280_v8  ;;  %v709_v28 = vld [vmem:[%s860_s3 + $0x50] sm:$0xff]  ;;  %v700_v32 = vld [vmem:[%s860_s3 + $0x8] sm:$0xff]  ;;  %s274_s28 = scalar_lea.vmem %s862_s5, %s630_s27  ;;  %s278_s7 = scalar_lea.vmem %s863_s6, %s630_s27 }
  0x10   : > { %448 = vmatpush.bf16.msra.mxu0 %v705_v2  ;;  %v711_v12 = vld [vmem:[%s860_s3 + $0x60] sm:$0xff]  ;;  %v708_v33 = vld [vmem:[%s860_s3 + $0x48] sm:$0xff]  ;;  %vm497_vm4 = vcmp.eq.s32.totalorder %v496_v63, 0 }
  0x11   : > { %462 = vmatpush.bf16.msra.mxu1 %v713_v3  ;;  %v295_v14 = vld [vmem:[%s859_s2] sm:$0x3]  ;;  %v291_v18 = vmul.f32 %v287_v10, %v281_v9  ;;  %v293_v22 = vmul.f32 %v287_v10, %v283_v13  ;;  %v292_v23 = vmul.f32 %v288_v17, %v282_v15  ;;  %v294_v24 = vmul.f32 %v288_v17, %v284_v16 }
  0x12   : > { %v297_v19 = vperm.slane %v295_v14, 0  ;;  %v298_v25 = vperm.slane %v295_v14, 1  ;;  %v699_v39 = vld [vmem:[%s860_s3] sm:$0xff] }
  0x13   : > { %v707_v40 = vld [vmem:[%s860_s3 + $0x40] sm:$0xff] }
  0x14   : > { %449 = vmatpush.bf16.msra.mxu0 %v704_v4  ;;  %v301_v26 = vadd.f32 %v297_v19, %v291_v18  ;;  %v303_v29 = vadd.f32 %v297_v19, %v293_v22  ;;  %v302_v30 = vadd.f32 %v298_v25, %v292_v23  ;;  %v304_v31 = vadd.f32 %v298_v25, %v294_v24 }
  0x15   : > { %463 = vmatpush.bf16.msra.mxu1 %v712_v5 }
  0x16   : > { %vm305_vm0 = vcmp.ge.f32.partialorder %v301_v26, 0.0  ;;  %v309_v34 = vmul.f32 0.2, %v301_v26  ;;  %v311_v35 = vmul.f32 0.2, %v303_v29  ;;  %vm307_vm1 = vcmp.ge.f32.partialorder %v303_v29, 0.0 }
  0x17   : > { %v310_v36 = vmul.f32 0.2, %v302_v30  ;;  %v312_v37 = vmul.f32 0.2, %v304_v31  ;;  %vm306_vm2 = vcmp.ge.f32.partialorder %v302_v30, 0.0  ;;  %vm308_vm3 = vcmp.ge.f32.partialorder %v304_v31, 0.0 }
  0x18   : > { %450 = vmatpush.bf16.msra.mxu0 %v703_v11  ;;  %v313_v38 = vsel %vm305_vm0, %v301_v26, %v309_v34  ;;  %v315_v41 = vsel %vm307_vm1, %v303_v29, %v311_v35 }
  0x19   : > { %464 = vmatpush.bf16.msra.mxu1 %v711_v12  ;;  %v314_v42 = vsel %vm306_vm2, %v302_v30, %v310_v36  ;;  %v316_v43 = vsel %vm308_vm3, %v304_v31, %v312_v37  ;;  %v317_v44 = vpack.c.bf16 %v315_v41, %v313_v38 }
  0x1a   : > { %v318_v45 = vpack.c.bf16 %v316_v43, %v314_v42 }
  0x1c   : > { %451 = vmatpush.bf16.msra.mxu0 %v702_v20 }
  0x1d   : > { %465 = vmatpush.bf16.msra.mxu1 %v710_v21 }
  0x20   : > { %452 = vmatpush.bf16.msra.mxu0 %v701_v27 }
  0x21   : > { %466 = vmatpush.bf16.msra.mxu1 %v709_v28 }
  0x24   : > { %453 = vmatpush.bf16.msra.mxu0 %v700_v32 }
  0x25   : > { %467 = vmatpush.bf16.msra.mxu1 %v708_v33 }
  0x28   : > { %454 = vmatpush.bf16.msra.mxu0 %v699_v39 }
  0x29   : > { %468 = vmatpush.bf16.msra.mxu1 %v707_v40 }
  0x2b   : > { %455 = vmatmul.bf16.vlgmr.msra.gmra.mxu0 %v317_v44 }
  0x2c   : > { %469 = vmatmul.bf16.vlgmr.msra.gmra.mxu1 %v318_v45 }
  0xa8   : > { %v456_v46 = vpop.f32.mrf.mxu0 }
  0xa9   : > { %v470_v47 = vpop.f32.mrf.mxu1 }
  0xaa   : > { %v471_v48 = vadd.f32 %v470_v47, %v456_v46 }
  0xac   : > { %v486_v52 = vmul.f32 %v471_v48, %v471_v48 }
  0xb0   : > { %v458_v49 = vpop.f32.mrf.mxu0 }
  0xb1   : > { %v472_v50 = vpop.f32.mrf.mxu1 }
  0xb2   : > { %v473_v51 = vadd.f32 %v472_v50, %v458_v49 }
  0xb4   : > { %v718_v53 = vpack.c.bf16 %v473_v51, %v471_v48  ;;  %v479_v54 = vadd.f32 %v473_v51, %v471_v48  ;;  %v487_v55 = vmul.f32 %v473_v51, %v473_v51 }
  0xb6   : > { %719 = vst [vmem:[%s269_s24] sm:$0xff] %v718_v53   ;;  %v480_v56 = vrot.slane %v479_v54, 4  ;;  %v488_v57 = vadd.f32 %v487_v55, %v486_v52 }
  0xb8   : > { %v481_v59 = vadd.f32 %v480_v56, %v479_v54  ;;  %v489_v60 = vrot.slane %v488_v57, 4 }
  0xba   : > { %v482_v61 = vrot.slane %v481_v59, 2  ;;  %v490_v62 = vadd.f32 %v489_v60, %v488_v57 }
  0xbc   : > { %v483_v0 = vadd.f32 %v482_v61, %v481_v59  ;;  %v491_v1 = vrot.slane %v490_v62, 2 }
  0xbe   : > { %v484_v2 = vrot.slane %v483_v0, 1  ;;  %v492_v3 = vadd.f32 %v491_v1, %v490_v62 }
  0xc0   : > { %v485_v4 = vadd.f32 %v484_v2, %v483_v0  ;;  %v493_v5 = vrot.slane %v492_v3, 1 }
  0xc2   : > { %v494_v6 = vadd.f32 %v493_v5, %v492_v3  ;;  %v498_v7 = vsel %vm497_vm4, %v485_v4, 0.0 }
  0xc3   : > { %499 = vst [vmem:[%s274_s28] sm:$0xff] %v498_v7 }
  0xc4   : > { %v500_v8 = vsel %vm497_vm4, %v494_v6, 0.0 }
  0xc5   : > { %501 = vst [vmem:[%s278_s7] sm:$0xff] %v500_v8 }
  0xc6 PF: > { %s17_s21 = sadd.s32 1, %s734_s21  }
  0xc7   : > { %p14_p5 = scmp.ge.s32.totalorder %s17_s21, 4  }
  0xc9   :  { %16 = sbr.rel (!%p14_p5) target bundleno = 1 (0x1), region = 90 }

// kernel: tile.153
= control target key start
LH: loop header
LB: loop body
LE: loop exit
PB: predicated region body
PF: predicated region fallthrough
CT: control target
= control target key end

     0   :  { %s28_s0 = inlined_call_operand.vmem [shape: f32[32], index: 0, kind: input, shape index: {}]   ;;  %s29_s1 = inlined_call_operand.vmem [shape: f32[9,32], index: 1, kind: output, shape index: {}]  }
   0x1   :  { %v4_v0 = vld [vmem:[%s28_s0] ss:$0 sm:$0xff] }
   0x2   :  { %5 = vst [vmem:[%s29_s1] sm:$0xff] %v4_v0 }
   0x3   :  { %8 = vst [vmem:[%s29_s1 + $0x8] sm:$0xff] %v4_v0 }

// kernel: tile.154
= control target key start
LH: loop header
LB: loop body
LE: loop exit
PB: predicated region body
PF: predicated region fallthrough
CT: control target
= control target key end

     0   :  { %s6_s6 = smov 3  ;;  %s38_s9 = smov 96   ;;  %vm3_vm0 = vcmask 261120   ;;  %vm10_vm1 = vcmask 1048320   ;;  %vm17_vm2 = vcmask 785920   ;;  %vm24_vm3 = vcmask 523520   ;;  %s66_s0 = inlined_call_operand.vmem [shape: f32[9,32], index: 0, kind: input, shape index: {}]   ;;  %s67_s1 = inlined_call_operand.vmem [shape: f32[288], index: 1, kind: output, shape index: {}]  }
   0x1   :  { %v32_v0 = vld [vmem:[%s66_s0 + $0x3] ss:$4 sm:%s6_s6]   ;;  %s20_s10 = smov 3  ;;  %s13_s13 = smov 3 }
   0x2   :  { %8 = vrot.lane.b32.xlu0 %v32_v0, %s38_s9  ;;  %v34_v1 = vld [vmem:[%s66_s0 + $0x1] ss:$4 sm:%s20_s10]   ;;  %s39_s14 = smov 32   ;;  %s40_s17 = smov 64  }
   0x3   :  { %22 = vrot.lane.b32.xlu1 %v34_v1, %s39_s14  ;;  %v33_v2 = vld [vmem:[%s66_s0 + $0x2] ss:$4 sm:%s13_s13]   ;;  %v2_v3 = vld [vmem:[%s66_s0] ss:$4 sm:$0x7]  }
   0x4   :  { %4 = vst.msk [vmem:[#allocation0] sm:$0x7] %vm3_vm0, %v2_v3  }
   0xa   :  { %15 = vrot.lane.b32.xlu0 %v33_v2, %s40_s17 }
  0x74   :  { %v9_v4 = vpop.permute.xlu0 %8  }
  0x75   :  { %11 = vst.msk [vmem:[#allocation0] sm:$0x3] %vm10_vm1, %v9_v4   ;;  %v23_v5 = vpop.permute.xlu1 %22  }
  0x7c   :  { %v16_v6 = vpop.permute.xlu0 %15  }
  0x7d   :  { %18 = vst.msk [vmem:[#allocation0] sm:$0x3] %vm17_vm2, %v16_v6  }
  0x7e   :  { %25 = vst.msk [vmem:[#allocation0] sm:$0x3] %vm24_vm3, %v23_v5  }
  0x85   :  { %v28_v7 = vld [vmem:[#allocation0] sm:$0xf] }
  0x86   :  { %31 = vst [vmem:[%s67_s1] sm:$0xf] %v28_v7 }

// kernel: _lambda_.18
= control target key start
LH: loop header
LB: loop body
LE: loop exit
PB: predicated region body
PF: predicated region fallthrough
CT: control target
= control target key end

     0   :  { %s618_s3 = inlined_call_operand.vmem [shape: bf16[384,128], index: 3, kind: input, shape index: {}]   ;;  %s619_s0 = inlined_call_operand.vmem [shape: bf16[16,384], index: 0, kind: input, shape index: {}]   ;;  %s620_s1 = inlined_call_operand.vmem [shape: f32[1,384], index: 1, kind: input, shape index: {}]   ;;  %s621_s2 = inlined_call_operand.vmem [shape: f32[1,384], index: 2, kind: input, shape index: {}]   ;;  %s622_s4 = inlined_call_operand.vmem [shape: bf16[16,128], index: 4, kind: output, shape index: {0}]   ;;  %s623_s5 = inlined_call_operand.vmem [shape: f32[8,128], index: 5, kind: output, shape index: {1}]   ;;  %s624_s6 = inlined_call_operand.vmem [shape: f32[8,128], index: 6, kind: output, shape index: {2}]  }
   0x1   :  { %v468_v0 = vld [vmem:[%s618_s3 + $0x38] sm:$0xff]  ;;  %v467_v3 = vld [vmem:[%s618_s3 + $0x30] sm:$0xff]  ;;  %v466_v6 = vld [vmem:[%s618_s3 + $0x28] sm:$0xff] }
   0x2   :  { %v476_v1 = vld [vmem:[%s618_s3 + $0x78] sm:$0xff]  ;;  %286 = vmatpush.bf16.msra.mxu0 %v468_v0  ;;  %v475_v4 = vld [vmem:[%s618_s3 + $0x70] sm:$0xff]  ;;  %v474_v7 = vld [vmem:[%s618_s3 + $0x68] sm:$0xff] }
   0x3   :  { %v484_v2 = vld [vmem:[%s618_s3 + $0xb8] sm:$0xff]  ;;  %300 = vmatpush.bf16.msra.mxu1 %v476_v1  ;;  %v483_v5 = vld [vmem:[%s618_s3 + $0xb0] sm:$0xff]  ;;  %v482_v8 = vld [vmem:[%s618_s3 + $0xa8] sm:$0xff] }
   0x4   :  { %314 = vmatpush.bf16.msra.mxu2 %v484_v2  ;;  %v20_v9 = vld [vmem:[%s619_s0] sm:$0xff]  ;;  %v21_v11 = vld [vmem:[%s619_s0 + $0x8] sm:$0xf]  ;;  %v464_v22 = vld [vmem:[%s618_s3 + $0x18] sm:$0xff] }
   0x5   :  { %v30_v10 = vld [vmem:[%s620_s1] sm:$0x7]  ;;  %v24_v14 = vunpack.c.l.bf16 %v20_v9  ;;  %v25_v16 = vunpack.c.h.bf16 %v20_v9  ;;  %v26_v20 = vunpack.c.l.bf16 %v21_v11  ;;  %v472_v23 = vld [vmem:[%s618_s3 + $0x58] sm:$0xff]  ;;  %v463_v31 = vld [vmem:[%s618_s3 + $0x10] sm:$0xff] }
   0x6   :  { %287 = vmatpush.bf16.msra.mxu0 %v467_v3  ;;  %v465_v12 = vld [vmem:[%s618_s3 + $0x20] sm:$0xff]  ;;  %v32_v15 = vperm.slane %v30_v10, 0  ;;  %v33_v17 = vperm.slane %v30_v10, 1  ;;  %v34_v21 = vperm.slane %v30_v10, 2  ;;  %v480_v28 = vld [vmem:[%s618_s3 + $0x98] sm:$0xff]  ;;  %v471_v32 = vld [vmem:[%s618_s3 + $0x50] sm:$0xff] }
   0x7   :  { %301 = vmatpush.bf16.msra.mxu1 %v475_v4  ;;  %v473_v13 = vld [vmem:[%s618_s3 + $0x60] sm:$0xff]  ;;  %v479_v35 = vld [vmem:[%s618_s3 + $0x90] sm:$0xff]  ;;  %v462_v37 = vld [vmem:[%s618_s3 + $0x8] sm:$0xff]  ;;  %v77_v4 = vlaneseq }
   0x8   :  { %315 = vmatpush.bf16.msra.mxu2 %v483_v5  ;;  %v481_v18 = vld [vmem:[%s618_s3 + $0xa0] sm:$0xff]  ;;  %v38_v24 = vmul.f32 %v32_v15, %v24_v14  ;;  %v39_v26 = vmul.f32 %v33_v17, %v25_v16  ;;  %v40_v29 = vmul.f32 %v34_v21, %v26_v20  ;;  %v470_v38 = vld [vmem:[%s618_s3 + $0x48] sm:$0xff] }
   0x9   :  { %v44_v19 = vld [vmem:[%s621_s2] sm:$0x7]  ;;  %v478_v41 = vld [vmem:[%s618_s3 + $0x88] sm:$0xff]  ;;  %v78_v9 = vshrl.u32 %v77_v4, 7 }
   0xa   :  { %288 = vmatpush.bf16.msra.mxu0 %v466_v6  ;;  %v46_v25 = vperm.slane %v44_v19, 0  ;;  %v47_v27 = vperm.slane %v44_v19, 1  ;;  %v48_v30 = vperm.slane %v44_v19, 2  ;;  %v461_v43 = vld [vmem:[%s618_s3] sm:$0xff] }
   0xb   :  { %302 = vmatpush.bf16.msra.mxu1 %v474_v7  ;;  %v469_v44 = vld [vmem:[%s618_s3 + $0x40] sm:$0xff]  ;;  %vm348_vm3 = vcmp.eq.s32.totalorder %v78_v9, 0 }
   0xc   :  { %316 = vmatpush.bf16.msra.mxu2 %v482_v8  ;;  %v52_v33 = vadd.f32 %v46_v25, %v38_v24  ;;  %v53_v34 = vadd.f32 %v47_v27, %v39_v26  ;;  %v54_v36 = vadd.f32 %v48_v30, %v40_v29  ;;  %v477_v47 = vld [vmem:[%s618_s3 + $0x80] sm:$0xff] }
   0xe   :  { %289 = vmatpush.bf16.msra.mxu0 %v465_v12  ;;  %v64_v39 = vmul.f32 0.2, %v52_v33  ;;  %v65_v40 = vmul.f32 0.2, %v53_v34  ;;  %vm58_vm0 = vcmp.ge.f32.partialorder %v52_v33, 0.0  ;;  %vm59_vm1 = vcmp.ge.f32.partialorder %v53_v34, 0.0 }
   0xf   :  { %303 = vmatpush.bf16.msra.mxu1 %v473_v13  ;;  %v66_v42 = vmul.f32 0.2, %v54_v36  ;;  %vm60_vm2 = vcmp.ge.f32.partialorder %v54_v36, 0.0 }
  0x10   :  { %317 = vmatpush.bf16.msra.mxu2 %v481_v18  ;;  %v70_v45 = vsel %vm58_vm0, %v52_v33, %v64_v39  ;;  %v71_v46 = vsel %vm59_vm1, %v53_v34, %v65_v40 }
  0x11   :  { %v72_v48 = vsel %vm60_vm2, %v54_v36, %v66_v42  ;;  %v91_v49 = vpack.c.bf16 0.0, %v70_v45  ;;  %v92_v50 = vpack.c.bf16 0.0, %v71_v46 }
  0x12   :  { %290 = vmatpush.bf16.msra.mxu0 %v464_v22  ;;  %v93_v51 = vpack.c.bf16 0.0, %v72_v48 }
  0x13   :  { %304 = vmatpush.bf16.msra.mxu1 %v472_v23 }
  0x14   :  { %318 = vmatpush.bf16.msra.mxu2 %v480_v28 }
  0x16   :  { %291 = vmatpush.bf16.msra.mxu0 %v463_v31 }
  0x17   :  { %305 = vmatpush.bf16.msra.mxu1 %v471_v32 }
  0x18   :  { %319 = vmatpush.bf16.msra.mxu2 %v479_v35 }
  0x1a   :  { %292 = vmatpush.bf16.msra.mxu0 %v462_v37 }
  0x1b   :  { %306 = vmatpush.bf16.msra.mxu1 %v470_v38 }
  0x1c   :  { %320 = vmatpush.bf16.msra.mxu2 %v478_v41 }
  0x1e   :  { %293 = vmatpush.bf16.msra.mxu0 %v461_v43 }
  0x1f   :  { %307 = vmatpush.bf16.msra.mxu1 %v469_v44 }
  0x20   :  { %321 = vmatpush.bf16.msra.mxu2 %v477_v47 }
  0x21   :  { %294 = vmatmul.bf16.vlgmr.msra.gmra.mxu0 %v91_v49 }
  0x22   :  { %308 = vmatmul.bf16.vlgmr.msra.gmra.mxu1 %v92_v50 }
  0x23   :  { %322 = vmatmul.bf16.vlgmr.msra.gmra.mxu2 %v93_v51 }
  0x9e   :  { %v295_v52 = vpop.f32.mrf.mxu0 }
  0x9f   :  { %v309_v53 = vpop.f32.mrf.mxu1 }
  0xa0   :  { %v310_v55 = vadd.f32 %v309_v53, %v295_v52 }
  0xa6   :  { %v323_v54 = vpop.f32.mrf.mxu2  ;;  %v297_v56 = vpop.f32.mrf.mxu0 }
  0xa7   :  { %v311_v57 = vpop.f32.mrf.mxu1  ;;  %v324_v58 = vadd.f32 %v323_v54, %v310_v55 }
  0xa8   :  { %v312_v59 = vadd.f32 %v311_v57, %v297_v56 }
  0xa9   :  { %v339_v62 = vmul.f32 %v324_v58, %v324_v58 }
  0xae   :  { %v325_v60 = vpop.f32.mrf.mxu2 }
  0xaf   :  { %v326_v61 = vadd.f32 %v325_v60, %v312_v59 }
  0xb1   :  { %v488_v63 = vpack.c.bf16 %v326_v61, %v324_v58  ;;  %v332_v0 = vadd.f32 %v326_v61, %v324_v58  ;;  %v340_v1 = vmul.f32 %v326_v61, %v326_v61 }
  0xb3   :  { %489 = vst [vmem:[%s622_s4] sm:$0xff] %v488_v63   ;;  %v333_v2 = vrot.slane %v332_v0, 4  ;;  %v341_v3 = vadd.f32 %v340_v1, %v339_v62 }
  0xb5   :  { %v334_v5 = vadd.f32 %v333_v2, %v332_v0  ;;  %v342_v6 = vrot.slane %v341_v3, 4 }
  0xb7   :  { %v335_v7 = vrot.slane %v334_v5, 2  ;;  %v343_v8 = vadd.f32 %v342_v6, %v341_v3 }
  0xb9   :  { %v336_v10 = vadd.f32 %v335_v7, %v334_v5  ;;  %v344_v11 = vrot.slane %v343_v8, 2 }
  0xbb   :  { %v337_v12 = vrot.slane %v336_v10, 1  ;;  %v345_v13 = vadd.f32 %v344_v11, %v343_v8 }
  0xbd   :  { %v338_v14 = vadd.f32 %v337_v12, %v336_v10  ;;  %v346_v15 = vrot.slane %v345_v13, 1 }
  0xbf   :  { %v347_v16 = vadd.f32 %v346_v15, %v345_v13  ;;  %v349_v17 = vsel %vm348_vm3, %v338_v14, 0.0 }
  0xc0   :  { %350 = vst [vmem:[%s623_s5] sm:$0xff] %v349_v17 }
  0xc1   :  { %v351_v18 = vsel %vm348_vm3, %v347_v16, 0.0 }
  0xc2   :  { %352 = vst [vmem:[%s624_s6] sm:$0xff] %v351_v18 }

// kernel: _lambda_.21
= control target key start
LH: loop header
LB: loop body
LE: loop exit
PB: predicated region body
PF: predicated region fallthrough
CT: control target
= control target key end

     0   :  { %s250_s3 = inlined_call_operand.vmem [shape: bf16[128,128], index: 3, kind: input, shape index: {}]   ;;  %s251_s1 = inlined_call_operand.vmem [shape: f32[1,128], index: 1, kind: input, shape index: {}]   ;;  %s252_s2 = inlined_call_operand.vmem [shape: f32[1,128], index: 2, kind: input, shape index: {}]   ;;  %s253_s4 = inlined_call_operand.vmem [shape: f32[1,128], index: 4, kind: input, shape index: {}]   ;;  %s254_s0 = inlined_call_operand.vmem [shape: bf16[16,128], index: 0, kind: input, shape index: {}]   ;;  %s255_s5 = inlined_call_operand.vmem [shape: f32[16,128], index: 5, kind: output, shape index: {}]  }
   0x1   :  { %v170_v0 = vld [vmem:[%s250_s3 + $0x38] sm:$0xff]  ;;  %v169_v1 = vld [vmem:[%s250_s3 + $0x30] sm:$0xff]  ;;  %v168_v2 = vld [vmem:[%s250_s3 + $0x28] sm:$0xff] }
   0x2   :  { %111 = vmatpush.bf16.msra.mxu0 %v170_v0  ;;  %v172_v3 = vld [vmem:[%s254_s0] sm:$0xff]   ;;  %v166_v8 = vld [vmem:[%s250_s3 + $0x18] sm:$0xff]  ;;  %v165_v12 = vld [vmem:[%s250_s3 + $0x10] sm:$0xff] }
   0x3   :  { %v167_v4 = vld [vmem:[%s250_s3 + $0x20] sm:$0xff]  ;;  %v173_v5 = vunpack.c.l.bf16 %v172_v3  ;;  %v174_v6 = vunpack.c.h.bf16 %v172_v3  ;;  %v164_v15 = vld [vmem:[%s250_s3 + $0x8] sm:$0xff] }
   0x4   :  { %v175_v7 = vld [vmem:[%s251_s1] ss:$0 sm:$0xff] }
   0x5   :  { %v28_v9 = vmul.f32 %v175_v7, %v173_v5  ;;  %v29_v10 = vmul.f32 %v175_v7, %v174_v6  ;;  %v176_v11 = vld [vmem:[%s252_s2] ss:$0 sm:$0xff] }
   0x6   :  { %112 = vmatpush.bf16.msra.mxu0 %v169_v1  ;;  %v163_v18 = vld [vmem:[%s250_s3] sm:$0xff] }
   0x7   :  { %v34_v13 = vadd.f32 %v176_v11, %v28_v9  ;;  %v35_v14 = vadd.f32 %v176_v11, %v29_v10  ;;  %v177_v22 = vld [vmem:[%s253_s4] ss:$0 sm:$0xff] }
   0x9   :  { %v38_v16 = vmul.f32 0.2, %v34_v13  ;;  %v39_v17 = vmul.f32 0.2, %v35_v14  ;;  %vm36_vm0 = vcmp.ge.f32.partialorder %v34_v13, 0.0  ;;  %vm37_vm1 = vcmp.ge.f32.partialorder %v35_v14, 0.0 }
   0xa   :  { %113 = vmatpush.bf16.msra.mxu0 %v168_v2 }
   0xb   :  { %v40_v19 = vsel %vm36_vm0, %v34_v13, %v38_v16  ;;  %v41_v20 = vsel %vm37_vm1, %v35_v14, %v39_v17 }
   0xc   :  { %v42_v21 = vpack.c.bf16 %v41_v20, %v40_v19 }
   0xe   :  { %114 = vmatpush.bf16.msra.mxu0 %v167_v4 }
  0x12   :  { %115 = vmatpush.bf16.msra.mxu0 %v166_v8 }
  0x16   :  { %116 = vmatpush.bf16.msra.mxu0 %v165_v12 }
  0x1a   :  { %117 = vmatpush.bf16.msra.mxu0 %v164_v15 }
  0x1e   :  { %118 = vmatpush.bf16.msra.mxu0 %v163_v18 }
  0x21   :  { %119 = vmatmul.bf16.vlgmr.msra.gmra.mxu0 %v42_v21 }
  0x9e   :  { %v120_v23 = vpop.f32.mrf.mxu0 }
  0x9f   :  { %v121_v24 = vadd.f32 %v177_v22, %v120_v23 }
  0xa1   :  { %125 = vst [vmem:[%s255_s5] sm:$0xff] %v121_v24 }
  0xa6   :  { %v122_v25 = vpop.f32.mrf.mxu0 }
  0xa7   :  { %v123_v26 = vadd.f32 %v177_v22, %v122_v25 }
  0xa9   :  { %126 = vst [vmem:[%s255_s5 + $0x8] sm:$0xff] %v123_v26 }

// kernel: _lambda_.20
= control target key start
LH: loop header
LB: loop body
LE: loop exit
PB: predicated region body
PF: predicated region fallthrough
CT: control target
= control target key end

     0   :  { %v77_v36 = vlaneseq  ;;  %vm500_vm4 = vmmov 1   ;;  %s629_s3 = inlined_call_operand.vmem [shape: bf16[384,128], index: 3, kind: input, shape index: {}]   ;;  %s630_s0 = inlined_call_operand.vmem [shape: bf16[16,384], index: 0, kind: input, shape index: {}]   ;;  %s631_s1 = inlined_call_operand.vmem [shape: f32[1,384], index: 1, kind: input, shape index: {}]   ;;  %s632_s2 = inlined_call_operand.vmem [shape: f32[1,384], index: 2, kind: input, shape index: {}]   ;;  %s633_s4 = inlined_call_operand.vmem [shape: bf16[16,128], index: 4, kind: output, shape index: {0}]   ;;  %s634_s5 = inlined_call_operand.vmem [shape: f32[8,128], index: 5, kind: output, shape index: {1}]   ;;  %s635_s6 = inlined_call_operand.vmem [shape: f32[8,128], index: 6, kind: output, shape index: {2}]  }
   0x1   :  { %v477_v0 = vld [vmem:[%s629_s3 + $0x38] sm:$0xff]  ;;  %v476_v3 = vld [vmem:[%s629_s3 + $0x30] sm:$0xff]  ;;  %v475_v6 = vld [vmem:[%s629_s3 + $0x28] sm:$0xff] }
   0x2   :  { %v485_v1 = vld [vmem:[%s629_s3 + $0x78] sm:$0xff]  ;;  %286 = vmatpush.bf16.msra.mxu0 %v477_v0  ;;  %v484_v4 = vld [vmem:[%s629_s3 + $0x70] sm:$0xff]  ;;  %v483_v7 = vld [vmem:[%s629_s3 + $0x68] sm:$0xff]  ;;  %v78_v43 = vshrl.u32 %v77_v36, 7 }
   0x3   :  { %v493_v2 = vld [vmem:[%s629_s3 + $0xb8] sm:$0xff]  ;;  %300 = vmatpush.bf16.msra.mxu1 %v485_v1  ;;  %v492_v5 = vld [vmem:[%s629_s3 + $0xb0] sm:$0xff]  ;;  %v491_v8 = vld [vmem:[%s629_s3 + $0xa8] sm:$0xff] }
   0x4   :  { %314 = vmatpush.bf16.msra.mxu2 %v493_v2  ;;  %v20_v9 = vld [vmem:[%s630_s0] sm:$0xff]  ;;  %v21_v11 = vld [vmem:[%s630_s0 + $0x8] sm:$0xf]  ;;  %v473_v22 = vld [vmem:[%s629_s3 + $0x18] sm:$0xff]  ;;  %vm83_vm3 = vcmp.lt.s32.totalorder %v78_v43, 2  ;;  %vm348_vm6 = vcmp.eq.s32.totalorder %v78_v43, 0 }
   0x5   :  { %v30_v10 = vld [vmem:[%s631_s1] sm:$0x7]  ;;  %v24_v14 = vunpack.c.l.bf16 %v20_v9  ;;  %v25_v16 = vunpack.c.h.bf16 %v20_v9  ;;  %v26_v20 = vunpack.c.l.bf16 %v21_v11  ;;  %v481_v23 = vld [vmem:[%s629_s3 + $0x58] sm:$0xff]  ;;  %v472_v31 = vld [vmem:[%s629_s3 + $0x10] sm:$0xff] }
   0x6   :  { %287 = vmatpush.bf16.msra.mxu0 %v476_v3  ;;  %v474_v12 = vld [vmem:[%s629_s3 + $0x20] sm:$0xff]  ;;  %v32_v15 = vperm.slane %v30_v10, 0  ;;  %v33_v17 = vperm.slane %v30_v10, 1  ;;  %v34_v21 = vperm.slane %v30_v10, 2  ;;  %v489_v28 = vld [vmem:[%s629_s3 + $0x98] sm:$0xff]  ;;  %v480_v32 = vld [vmem:[%s629_s3 + $0x50] sm:$0xff] }
   0x7   :  { %301 = vmatpush.bf16.msra.mxu1 %v484_v4  ;;  %v482_v13 = vld [vmem:[%s629_s3 + $0x60] sm:$0xff]  ;;  %v488_v35 = vld [vmem:[%s629_s3 + $0x90] sm:$0xff]  ;;  %v471_v38 = vld [vmem:[%s629_s3 + $0x8] sm:$0xff] }
   0x8   :  { %315 = vmatpush.bf16.msra.mxu2 %v492_v5  ;;  %v490_v18 = vld [vmem:[%s629_s3 + $0xa0] sm:$0xff]  ;;  %v38_v24 = vmul.f32 %v32_v15, %v24_v14  ;;  %v39_v26 = vmul.f32 %v33_v17, %v25_v16  ;;  %v40_v29 = vmul.f32 %v34_v21, %v26_v20  ;;  %v479_v39 = vld [vmem:[%s629_s3 + $0x48] sm:$0xff]  ;;  %vm461_vm5 = vmpackc.low %vm500_vm4, %vm83_vm3 }
   0x9   :  { %v44_v19 = vld [vmem:[%s632_s2] sm:$0x7]  ;;  %v487_v42 = vld [vmem:[%s629_s3 + $0x88] sm:$0xff] }
   0xa   :  { %288 = vmatpush.bf16.msra.mxu0 %v475_v6  ;;  %v46_v25 = vperm.slane %v44_v19, 0  ;;  %v47_v27 = vperm.slane %v44_v19, 1  ;;  %v48_v30 = vperm.slane %v44_v19, 2  ;;  %v470_v45 = vld [vmem:[%s629_s3] sm:$0xff] }
   0xb   :  { %302 = vmatpush.bf16.msra.mxu1 %v483_v7  ;;  %v478_v46 = vld [vmem:[%s629_s3 + $0x40] sm:$0xff] }
   0xc   :  { %316 = vmatpush.bf16.msra.mxu2 %v491_v8  ;;  %v52_v33 = vadd.f32 %v46_v25, %v38_v24  ;;  %v53_v34 = vadd.f32 %v47_v27, %v39_v26  ;;  %v54_v37 = vadd.f32 %v48_v30, %v40_v29  ;;  %v486_v49 = vld [vmem:[%s629_s3 + $0x80] sm:$0xff] }
   0xe   :  { %289 = vmatpush.bf16.msra.mxu0 %v474_v12  ;;  %v64_v40 = vmul.f32 0.2, %v52_v33  ;;  %v65_v41 = vmul.f32 0.2, %v53_v34  ;;  %vm58_vm0 = vcmp.ge.f32.partialorder %v52_v33, 0.0  ;;  %vm59_vm1 = vcmp.ge.f32.partialorder %v53_v34, 0.0 }
   0xf   :  { %303 = vmatpush.bf16.msra.mxu1 %v482_v13  ;;  %v66_v44 = vmul.f32 0.2, %v54_v37  ;;  %vm60_vm2 = vcmp.ge.f32.partialorder %v54_v37, 0.0 }
  0x10   :  { %317 = vmatpush.bf16.msra.mxu2 %v490_v18  ;;  %v70_v47 = vsel %vm58_vm0, %v52_v33, %v64_v40  ;;  %v71_v48 = vsel %vm59_vm1, %v53_v34, %v65_v41 }
  0x11   :  { %v72_v50 = vsel %vm60_vm2, %v54_v37, %v66_v44  ;;  %v462_v51 = vpack.c.bf16 0.0, %v70_v47  ;;  %v465_v52 = vpack.c.bf16 0.0, %v71_v48 }
  0x12   :  { %290 = vmatpush.bf16.msra.mxu0 %v473_v22  ;;  %v468_v53 = vpack.c.bf16 0.0, %v72_v50 }
  0x13   :  { %304 = vmatpush.bf16.msra.mxu1 %v481_v23 }
  0x14   :  { %318 = vmatpush.bf16.msra.mxu2 %v489_v28 }
  0x16   :  { %291 = vmatpush.bf16.msra.mxu0 %v472_v31 }
  0x17   :  { %305 = vmatpush.bf16.msra.mxu1 %v480_v32 }
  0x18   :  { %319 = vmatpush.bf16.msra.mxu2 %v488_v35 }
  0x1a   :  { %292 = vmatpush.bf16.msra.mxu0 %v471_v38 }
  0x1b   :  { %306 = vmatpush.bf16.msra.mxu1 %v479_v39 }
  0x1c   :  { %320 = vmatpush.bf16.msra.mxu2 %v487_v42 }
  0x1e   :  { %293 = vmatpush.bf16.msra.mxu0 %v470_v45 }
  0x1f   :  { %307 = vmatpush.bf16.msra.mxu1 %v478_v46 }
  0x20   :  { %321 = vmatpush.bf16.msra.mxu2 %v486_v49 }
  0x21   :  { %463 = vmatmul.msk.bf16.vlgmr.msra.gmra.mxu0 %vm461_vm5, %v462_v51 }
  0x22   :  { %466 = vmatmul.msk.bf16.vlgmr.msra.gmra.mxu1 %vm461_vm5, %v465_v52 }
  0x23   :  { %469 = vmatmul.msk.bf16.vlgmr.msra.gmra.mxu2 %vm461_vm5, %v468_v53 }
  0x9e   :  { %v295_v54 = vpop.f32.mrf.mxu0 }
  0x9f   :  { %v309_v55 = vpop.f32.mrf.mxu1 }
  0xa0   :  { %v310_v57 = vadd.f32 %v309_v55, %v295_v54 }
  0xa6   :  { %v323_v56 = vpop.f32.mrf.mxu2  ;;  %v297_v58 = vpop.f32.mrf.mxu0 }
  0xa7   :  { %v311_v59 = vpop.f32.mrf.mxu1  ;;  %v324_v60 = vadd.f32 %v323_v56, %v310_v57 }
  0xa8   :  { %v312_v61 = vadd.f32 %v311_v59, %v297_v58 }
  0xa9   :  { %v339_v0 = vmul.f32 %v324_v60, %v324_v60 }
  0xae   :  { %v325_v62 = vpop.f32.mrf.mxu2 }
  0xaf   :  { %v326_v63 = vadd.f32 %v325_v62, %v312_v61 }
  0xb1   :  { %v497_v1 = vpack.c.bf16 %v326_v63, %v324_v60  ;;  %v332_v2 = vadd.f32 %v326_v63, %v324_v60  ;;  %v340_v3 = vmul.f32 %v326_v63, %v326_v63 }
  0xb3   :  { %498 = vst [vmem:[%s633_s4] sm:$0xff] %v497_v1   ;;  %v333_v4 = vrot.slane %v332_v2, 4  ;;  %v341_v5 = vadd.f32 %v340_v3, %v339_v0 }
  0xb5   :  { %v334_v6 = vadd.f32 %v333_v4, %v332_v2  ;;  %v342_v7 = vrot.slane %v341_v5, 4 }
  0xb7   :  { %v335_v8 = vrot.slane %v334_v6, 2  ;;  %v343_v9 = vadd.f32 %v342_v7, %v341_v5 }
  0xb9   :  { %v336_v10 = vadd.f32 %v335_v8, %v334_v6  ;;  %v344_v11 = vrot.slane %v343_v9, 2 }
  0xbb   :  { %v337_v12 = vrot.slane %v336_v10, 1  ;;  %v345_v13 = vadd.f32 %v344_v11, %v343_v9 }
  0xbd   :  { %v338_v14 = vadd.f32 %v337_v12, %v336_v10  ;;  %v346_v15 = vrot.slane %v345_v13, 1 }
  0xbf   :  { %v347_v16 = vadd.f32 %v346_v15, %v345_v13  ;;  %v349_v17 = vsel %vm348_vm6, %v338_v14, 0.0 }
  0xc0   :  { %350 = vst [vmem:[%s634_s5] sm:$0xff] %v349_v17 }
  0xc1   :  { %v351_v18 = vsel %vm348_vm6, %v347_v16, 0.0 }
  0xc2   :  { %352 = vst [vmem:[%s635_s6] sm:$0xff] %v351_v18 }

</bundles_post_ra>
